<compile_context>
chip_gen: v6e
topology: v6e:2x2x1
jax: 0.10.0
libtpu: 0.0.40
codegen_flags: <defaults>
</compile_context>

<pallas_src>
import functools

import jax
import jax.numpy as jnp
from jax import lax
from jax.experimental import pallas as pl
from jax.experimental.pallas import tpu as pltpu

EPS = 1e-5
LANE = 128


def _round_up(x, m):
    return ((x + m - 1) // m) * m


def _pick_row_tile(Ho, Wo, target_m=512):
    """Largest divisor of Ho with RT * Wo <= max(target_m, Wo)."""
    limit = max(target_m, Wo)
    best = 1
    for rt in range(1, Ho + 1):
        if Ho % rt == 0 and rt * Wo <= limit:
            best = rt
    return best


# ------------------------------ Pallas kernel --------------------------------

def _make_conv_kernel(taps, RT, Wo, Cin, Cout, relu, has_res):
    """Direct conv(+BN shift)(+ReLU)(+residual) kernel for one (n, row-block)."""

    def kernel(x_ref, w_ref, sh_ref, *rest):
        if has_res:
            res_ref, o_ref = rest
        else:
            (o_ref,) = rest
        r = pl.program_id(1)
        acc = jnp.zeros((RT * Wo, Cout), jnp.float32)
        # Unrolled loop over the k*k filter taps: each tap is a lane-dense
        # (RT*Wo, Cin) x (Cin, Cout) MXU matmul accumulated in f32.
        for t, (ph, qy, qx) in enumerate(taps):
            xs = x_ref[ph, pl.ds(r * RT + qy, RT), pl.ds(qx, Wo), :]
            acc = acc + jnp.dot(xs.reshape(RT * Wo, Cin), w_ref[t],
                                preferred_element_type=jnp.float32)
        out = acc + sh_ref[...]                       # folded-BN shift (f32)
        if relu:
            out = jnp.maximum(out, 0.0)
        if has_res:
            out = out + res_ref[0].reshape(RT * Wo, Cout).astype(jnp.float32)
        o_ref[0] = out.reshape(RT, Wo, Cout).astype(o_ref.dtype)

    return kernel


def conv_bn_act(x, w, shift, *, stride, padding, relu=False, residual=None,
                compute_dtype=jnp.float32, out_dtype=jnp.float32):
    """Fused Conv2d + folded BatchNorm (+ReLU) (+residual add) on NHWC input.

    x:        (N, H, W, Cin)    channel-padded NHWC input
    w:        (k, k, Cin, Cout) HWIO weights with BN scale already folded in
    shift:    (Cout,)           folded BN shift ((bias - mean) * scale + beta)
    residual: (N, Ho, Wo, Cout) optional tensor added after BN (f32 epilogue)
    """
    N, H, W, Cin = x.shape
    k = w.shape[0]
    Cout = w.shape[3]
    assert w.shape[1] == k and w.shape[2] == Cin
    assert Cin % LANE == 0 and Cout % LANE == 0
    s = stride
    Ho = (H + 2 * padding - k) // s + 1
    Wo = (W + 2 * padding - k) // s + 1

    # ---- space-to-depth phase decomposition (unit-stride in-kernel access) --
    phase_of = {}
    taps = []
    for dy in range(k):
        for dx in range(k):
            ph = (dy % s, dx % s)
            if ph not in phase_of:
                phase_of[ph] = len(phase_of)
            taps.append((phase_of[ph], dy // s, dx // s))
    P = len(phase_of)
    Hq = Ho + (k - 1) // s
    Wq = Wo + (k - 1) // s
    Hp = max(s * Hq, H + 2 * padding)
    Wp = max(s * Wq, W + 2 * padding)
    xp = jnp.pad(x, ((0, 0), (padding, Hp - H - padding),
                     (padding, Wp - W - padding), (0, 0)))
    xph = jnp.stack(
        [xp[:, ry::s, rx::s, :][:, :Hq, :Wq, :] for (ry, rx) in phase_of],
        axis=1).astype(compute_dtype)                   # (N, P, Hq, Wq, Cin)
    xph = xph.reshape(N * P, Hq, Wq, Cin)

    wmat = w.reshape(k * k, Cin, Cout).astype(compute_dtype)
    shift2 = shift.reshape(1, Cout).astype(jnp.float32)

    RT = _pick_row_tile(Ho, Wo)
    grid = (N, Ho // RT)

    in_specs = [
        pl.BlockSpec((P, Hq, Wq, Cin), lambda n, r: (n, 0, 0, 0)),
        pl.BlockSpec((k * k, Cin, Cout), lambda n, r: (0, 0, 0)),
        pl.BlockSpec((1, Cout), lambda n, r: (0, 0)),
    ]
    args = [xph, wmat, shift2]
    if residual is not None:
        residual = residual.astype(jnp.float32)
        assert residual.shape == (N, Ho, Wo, Cout)
        in_specs.append(pl.BlockSpec((1, RT, Wo, Cout),
                                     lambda n, r: (n, r, 0, 0)))
        args.append(residual)

    # Advisory cost estimate for the XLA scheduler around the custom call.
    out_bytes = N * Ho * Wo * Cout * jnp.dtype(out_dtype).itemsize
    bytes_accessed = (int(xph.size) * xph.dtype.itemsize
                      + int(wmat.size) * wmat.dtype.itemsize
                      + int(shift2.size) * 4 + out_bytes)
    if residual is not None:
        bytes_accessed += int(residual.size) * residual.dtype.itemsize
    cost = pl.CostEstimate(flops=2 * N * Ho * Wo * k * k * Cin * Cout,
                           transcendentals=0,
                           bytes_accessed=int(bytes_accessed))

    # Explicit VMEM budget: double-buffered blocks + f32 accumulator, capped
    # below the smallest physical VMEM (v7x: 64 MiB).
    itc = jnp.dtype(compute_dtype).itemsize
    per_step = (P * Hq * Wq * Cin * itc + k * k * Cin * Cout * itc + Cout * 4
                + RT * Wo * Cout * jnp.dtype(out_dtype).itemsize
                + (RT * Wo * Cout * 4 if residual is not None else 0))
    vmem_limit = int(min(max(3 * per_step + 4 * RT * Wo * Cout * 4, 16 << 20),
                         64 << 20))

    kernel = _make_conv_kernel(taps, RT, Wo, Cin, Cout, relu,
                               residual is not None)
    return pl.pallas_call(
        kernel,
        out_shape=jax.ShapeDtypeStruct((N, Ho, Wo, Cout), out_dtype),
        grid_spec=pltpu.PrefetchScalarGridSpec(
            num_scalar_prefetch=0,
            grid=grid,
            in_specs=in_specs,
            out_specs=pl.BlockSpec((1, RT, Wo, Cout),
                                   lambda n, r: (n, r, 0, 0)),
        ),
        compiler_params=pltpu.CompilerParams(
            dimension_semantics=("parallel", "parallel"),
            vmem_limit_bytes=vmem_limit),
        cost_estimate=cost,
    )(*args)


# ------------------------------- glue (JAX) ----------------------------------

def _fold_bn(w_hwio, bn_params, bias=None):
    gamma, beta, mean, var = bn_params
    scale = gamma * lax.rsqrt(var + EPS)
    w_f = w_hwio * scale[None, None, None, :]
    base = bias if bias is not None else jnp.zeros_like(mean)
    shift = (base - mean) * scale + beta
    return w_f, shift


def _pad_last(a, new):
    return jnp.pad(a, ((0, 0),) * (a.ndim - 1) + ((0, new - a.shape[-1]),))


def _pad_w(w, cin_new, cout_new):
    return jnp.pad(w, ((0, 0), (0, 0),
                       (0, cin_new - w.shape[2]), (0, cout_new - w.shape[3])))


def init_basic_block_params(key, inch, outch, ksize):
    ks = jax.random.split(key, 8)

    def conv_w(k, kh, kw, cin, cout):
        # weights stored HWIO: (kh, kw, cin, cout)
        return 0.1 * jax.random.normal(k, (kh, kw, cin, cout), jnp.float32)

    def bn(k, c):
        gamma = 1.0 + 0.1 * jax.random.normal(k, (c,), jnp.float32)
        beta = 0.05 * jnp.arange(c, dtype=jnp.float32)
        mean = 0.02 * jnp.arange(c, dtype=jnp.float32)
        var = 1.0 + 0.01 * jnp.arange(c, dtype=jnp.float32)
        return gamma, beta, mean, var

    params = {
        "conv1_w": conv_w(ks[0], ksize, ksize, inch, outch),
        "bn1": bn(ks[1], outch),
        "conv2_w": conv_w(ks[2], ksize, ksize, outch, outch),
        "bn2": bn(ks[3], outch),
    }
    if inch != outch:
        params["ds_w"] = conv_w(ks[4], 1, 1, inch, outch)
        params["ds_b"] = 0.1 * jax.random.normal(ks[5], (outch,), jnp.float32)
        params["ds_bn"] = bn(ks[6], outch)
    return params


@functools.partial(jax.jit, static_argnames=(
    "inch", "outch", "ksize", "striding", "padding", "compute_dtype"))
def basic_block_forward(x_nchw, params, *, inch, outch, ksize, striding,
                        padding, compute_dtype=jnp.float32):
    x = jnp.transpose(x_nchw, (0, 2, 3, 1))            # NCHW -> NHWC
    N, H, W, _ = x.shape
    cin_p = _round_up(inch, LANE)
    cout_p = _round_up(outch, LANE)
    x_p = _pad_last(x, cin_p)                          # lane-dense channels

    # conv1 (no bias) + BN1 + ReLU
    w1, sh1 = _fold_bn(params["conv1_w"], params["bn1"])
    h = conv_bn_act(x_p, _pad_w(w1, cin_p, cout_p), _pad_last(sh1, cout_p),
                    stride=striding, padding=padding, relu=True,
                    compute_dtype=compute_dtype, out_dtype=compute_dtype)

    # residual branch
    if inch == outch:
        if h.shape[1:3] != (H, W):
            raise ValueError("identity residual requires a shape-preserving "
                             "conv1 (stride/padding mismatch)")
        res = x_p.astype(jnp.float32)                  # cin_p == cout_p here
    else:
        wd, shd = _fold_bn(params["ds_w"], params["ds_bn"],
                           bias=params["ds_b"])
        res = conv_bn_act(x_p, _pad_w(wd, cin_p, cout_p),
                          _pad_last(shd, cout_p), stride=2, padding=0,
                          relu=False, compute_dtype=compute_dtype,
                          out_dtype=jnp.float32)

    # conv2 (no bias, stride 1, pad 1) + BN2, residual add fused in the kernel.
    # NOTE: no ReLU after the add -- matches the reference module.
    w2, sh2 = _fold_bn(params["conv2_w"], params["bn2"])
    out = conv_bn_act(h, _pad_w(w2, cout_p, cout_p), _pad_last(sh2, cout_p),
                      stride=1, padding=1, relu=False, residual=res,
                      compute_dtype=compute_dtype, out_dtype=jnp.float32)
    out = out[..., :outch]
    return jnp.transpose(out, (0, 3, 1, 2))            # NHWC -> NCHW


# ---------------------------- pure-JAX reference ------------------------------

def reference_forward(x_nchw, params, inch, outch, ksize, striding, padding):
    def conv(x, w_hwio, stride, pad, bias=None):
        out = lax.conv_general_dilated(
            x, w_hwio, window_strides=(stride, stride),
            padding=[(pad, pad), (pad, pad)],
            dimension_numbers=("NCHW", "HWIO", "NCHW"))
        if bias is not None:
            out = out + bias.reshape(1, -1, 1, 1)
        return out

    def bn(x, p):
        g, b, m, v = (t.reshape(1, -1, 1, 1) for t in p)
        return (x - m) / jnp.sqrt(v + EPS) * g + b

    h = conv(x_nchw, params["conv1_w"], striding, padding)
    h = jnp.maximum(bn(h, params["bn1"]), 0.0)
    h = conv(h, params["conv2_w"], 1, 1)
    h = bn(h, params["bn2"])
    if inch == outch:
        return h + x_nchw
    d = conv(x_nchw, params["ds_w"], 2, 0, bias=params["ds_b"])
    return h + bn(d, params["ds_bn"])


# ------------------------------------ main ------------------------------------

if __name__ == "__main__":
    key = jax.random.PRNGKey(0)
    kx, kx2, kp1, kp2 = jax.random.split(key, 4)

    # Case 1: inch != outch -> downsample residual path (stride-2 convs).
    N, inch, outch, H, W = 2, 4, 8, 16, 16
    x = jax.random.normal(kx, (N, inch, H, W), jnp.float32)
    params = init_basic_block_params(kp1, inch, outch, 3)
    out = jax.block_until_ready(basic_block_forward(
        x, params, inch=inch, outch=outch, ksize=3, striding=2, padding=1))
    ref = reference_forward(x, params, inch, outch, 3, 2, 1)
    assert out.shape == (N, outch, 8, 8), out.shape
    assert jnp.allclose(out, ref, atol=1e-4, rtol=1e-4), \
        float(jnp.max(jnp.abs(out - ref)))

    # Case 2: inch == outch -> identity residual path (stride 1).
    inch2 = outch2 = 8
    x2 = jax.random.normal(kx2, (N, inch2, H, W), jnp.float32)
    params2 = init_basic_block_params(kp2, inch2, outch2, 3)
    out2 = jax.block_until_ready(basic_block_forward(
        x2, params2, inch=inch2, outch=outch2, ksize=3, striding=1, padding=1))
    ref2 = reference_forward(x2, params2, inch2, outch2, 3, 1, 1)
    assert out2.shape == (N, outch2, H, W), out2.shape
    assert jnp.allclose(out2, ref2, atol=1e-4, rtol=1e-4), \
        float(jnp.max(jnp.abs(out2 - ref2)))

    # bf16 operand / f32 accumulation mode (HBM-bandwidth mode for v6e/v7x).
    out_bf = jax.block_until_ready(basic_block_forward(
        x, params, inch=inch, outch=outch, ksize=3, striding=2, padding=1,
        compute_dtype=jnp.bfloat16))
    assert out_bf.shape == (N, outch, 8, 8), out_bf.shape
    assert float(jnp.max(jnp.abs(out_bf - ref))) < 5e-2

    print("KERNEL_OK")
</pallas_src>

<mosaic_0001>
module attributes {stable_mosaic.version = 11 : i64} {
  func.func @kernel(%arg0: i32, %arg1: i32, %arg2: memref<4x9x9x128xf32, #tpu.memory_space<vmem>>, %arg3: memref<9x128x128xf32, #tpu.memory_space<vmem>>, %arg4: memref<1x128xf32, #tpu.memory_space<vmem>>, %arg5: memref<1x8x8x128xf32, #tpu.memory_space<vmem>>) attributes {dimension_semantics = [#tpu.dimension_semantics<parallel>, #tpu.dimension_semantics<parallel>], iteration_bounds = array<i64: 2, 1>, scalar_prefetch = 0 : i64, scratch_operands = 0 : i64, tpu.core_type = #tpu.core_type<tc>, window_params = [{transform_indices = @transform_0, window_bounds = array<i64: 4, 9, 9, 128>}, {pipeline_mode = #tpu.pipeline_mode<synchronous>, transform_indices = @transform_1, window_bounds = array<i64: 9, 128, 128>}, {pipeline_mode = #tpu.pipeline_mode<synchronous>, transform_indices = @transform_2, window_bounds = array<i64: 1, 128>}, {transform_indices = @transform_3, window_bounds = array<i64: 1, 8, 8, 128>}]} {
    %cst = arith.constant 0.000000e+00 : f32
    %0 = vector.broadcast %cst : f32 to vector<64x128xf32>
    %c8_i32 = arith.constant 8 : i32
    %1 = arith.muli %arg1, %c8_i32 : i32
    %c0_i32 = arith.constant 0 : i32
    %2 = arith.addi %1, %c0_i32 : i32
    %c0 = arith.constant 0 : index
    %3 = arith.index_cast %2 : i32 to index
    %c0_0 = arith.constant 0 : index
    %c0_1 = arith.constant 0 : index
    %4 = vector.load %arg2[%c0, %3, %c0_0, %c0_1] : memref<4x9x9x128xf32, #tpu.memory_space<vmem>>, vector<1x8x8x128xf32>
    %5 = vector.shape_cast %4 : vector<1x8x8x128xf32> to vector<8x8x128xf32>
    %6 = vector.shape_cast %5 : vector<8x8x128xf32> to vector<64x128xf32>
    %c0_2 = arith.constant 0 : index
    %c0_3 = arith.constant 0 : index
    %c0_4 = arith.constant 0 : index
    %7 = vector.load %arg3[%c0_2, %c0_3, %c0_4] : memref<9x128x128xf32, #tpu.memory_space<vmem>>, vector<1x128x128xf32>
    %8 = vector.shape_cast %7 : vector<1x128x128xf32> to vector<128x128xf32>
    %cst_5 = arith.constant dense<0.000000e+00> : vector<64x128xf32>
    %9 = tpu.matmul %6, %8, %cst_5 {dimension_numbers = #tpu.dot_dimension_numbers<[1], [0], [0], [1], [0, 0, 1, 1], [], []>} : vector<64x128xf32>, vector<128x128xf32>, vector<64x128xf32> -> vector<64x128xf32>
    %10 = arith.addf %0, %9 : vector<64x128xf32>
    %c8_i32_6 = arith.constant 8 : i32
    %11 = arith.muli %arg1, %c8_i32_6 : i32
    %c0_i32_7 = arith.constant 0 : i32
    %12 = arith.addi %11, %c0_i32_7 : i32
    %c1 = arith.constant 1 : index
    %13 = arith.index_cast %12 : i32 to index
    %c0_8 = arith.constant 0 : index
    %c0_9 = arith.constant 0 : index
    %14 = vector.load %arg2[%c1, %13, %c0_8, %c0_9] : memref<4x9x9x128xf32, #tpu.memory_space<vmem>>, vector<1x8x8x128xf32>
    %15 = vector.shape_cast %14 : vector<1x8x8x128xf32> to vector<8x8x128xf32>
    %16 = vector.shape_cast %15 : vector<8x8x128xf32> to vector<64x128xf32>
    %c1_10 = arith.constant 1 : index
    %c0_11 = arith.constant 0 : index
    %c0_12 = arith.constant 0 : index
    %17 = vector.load %arg3[%c1_10, %c0_11, %c0_12] : memref<9x128x128xf32, #tpu.memory_space<vmem>>, vector<1x128x128xf32>
    %18 = vector.shape_cast %17 : vector<1x128x128xf32> to vector<128x128xf32>
    %cst_13 = arith.constant dense<0.000000e+00> : vector<64x128xf32>
    %19 = tpu.matmul %16, %18, %cst_13 {dimension_numbers = #tpu.dot_dimension_numbers<[1], [0], [0], [1], [0, 0, 1, 1], [], []>} : vector<64x128xf32>, vector<128x128xf32>, vector<64x128xf32> -> vector<64x128xf32>
    %20 = arith.addf %10, %19 : vector<64x128xf32>
    %c8_i32_14 = arith.constant 8 : i32
    %21 = arith.muli %arg1, %c8_i32_14 : i32
    %c0_i32_15 = arith.constant 0 : i32
    %22 = arith.addi %21, %c0_i32_15 : i32
    %c0_16 = arith.constant 0 : index
    %23 = arith.index_cast %22 : i32 to index
    %c1_17 = arith.constant 1 : index
    %c0_18 = arith.constant 0 : index
    %24 = vector.load %arg2[%c0_16, %23, %c1_17, %c0_18] : memref<4x9x9x128xf32, #tpu.memory_space<vmem>>, vector<1x8x8x128xf32>
    %25 = vector.shape_cast %24 : vector<1x8x8x128xf32> to vector<8x8x128xf32>
    %26 = vector.shape_cast %25 : vector<8x8x128xf32> to vector<64x128xf32>
    %c2 = arith.constant 2 : index
    %c0_19 = arith.constant 0 : index
    %c0_20 = arith.constant 0 : index
    %27 = vector.load %arg3[%c2, %c0_19, %c0_20] : memref<9x128x128xf32, #tpu.memory_space<vmem>>, vector<1x128x128xf32>
    %28 = vector.shape_cast %27 : vector<1x128x128xf32> to vector<128x128xf32>
    %cst_21 = arith.constant dense<0.000000e+00> : vector<64x128xf32>
    %29 = tpu.matmul %26, %28, %cst_21 {dimension_numbers = #tpu.dot_dimension_numbers<[1], [0], [0], [1], [0, 0, 1, 1], [], []>} : vector<64x128xf32>, vector<128x128xf32>, vector<64x128xf32> -> vector<64x128xf32>
    %30 = arith.addf %20, %29 : vector<64x128xf32>
    %c8_i32_22 = arith.constant 8 : i32
    %31 = arith.muli %arg1, %c8_i32_22 : i32
    %c0_i32_23 = arith.constant 0 : i32
    %32 = arith.addi %31, %c0_i32_23 : i32
    %c2_24 = arith.constant 2 : index
    %33 = arith.index_cast %32 : i32 to index
    %c0_25 = arith.constant 0 : index
    %c0_26 = arith.constant 0 : index
    %34 = vector.load %arg2[%c2_24, %33, %c0_25, %c0_26] : memref<4x9x9x128xf32, #tpu.memory_space<vmem>>, vector<1x8x8x128xf32>
    %35 = vector.shape_cast %34 : vector<1x8x8x128xf32> to vector<8x8x128xf32>
    %36 = vector.shape_cast %35 : vector<8x8x128xf32> to vector<64x128xf32>
    %c3 = arith.constant 3 : index
    %c0_27 = arith.constant 0 : index
    %c0_28 = arith.constant 0 : index
    %37 = vector.load %arg3[%c3, %c0_27, %c0_28] : memref<9x128x128xf32, #tpu.memory_space<vmem>>, vector<1x128x128xf32>
    %38 = vector.shape_cast %37 : vector<1x128x128xf32> to vector<128x128xf32>
    %cst_29 = arith.constant dense<0.000000e+00> : vector<64x128xf32>
    %39 = tpu.matmul %36, %38, %cst_29 {dimension_numbers = #tpu.dot_dimension_numbers<[1], [0], [0], [1], [0, 0, 1, 1], [], []>} : vector<64x128xf32>, vector<128x128xf32>, vector<64x128xf32> -> vector<64x128xf32>
    %40 = arith.addf %30, %39 : vector<64x128xf32>
    %c8_i32_30 = arith.constant 8 : i32
    %41 = arith.muli %arg1, %c8_i32_30 : i32
    %c0_i32_31 = arith.constant 0 : i32
    %42 = arith.addi %41, %c0_i32_31 : i32
    %c3_32 = arith.constant 3 : index
    %43 = arith.index_cast %42 : i32 to index
    %c0_33 = arith.constant 0 : index
    %c0_34 = arith.constant 0 : index
    %44 = vector.load %arg2[%c3_32, %43, %c0_33, %c0_34] : memref<4x9x9x128xf32, #tpu.memory_space<vmem>>, vector<1x8x8x128xf32>
    %45 = vector.shape_cast %44 : vector<1x8x8x128xf32> to vector<8x8x128xf32>
    %46 = vector.shape_cast %45 : vector<8x8x128xf32> to vector<64x128xf32>
    %c4 = arith.constant 4 : index
    %c0_35 = arith.constant 0 : index
    %c0_36 = arith.constant 0 : index
    %47 = vector.load %arg3[%c4, %c0_35, %c0_36] : memref<9x128x128xf32, #tpu.memory_space<vmem>>, vector<1x128x128xf32>
    %48 = vector.shape_cast %47 : vector<1x128x128xf32> to vector<128x128xf32>
    %cst_37 = arith.constant dense<0.000000e+00> : vector<64x128xf32>
    %49 = tpu.matmul %46, %48, %cst_37 {dimension_numbers = #tpu.dot_dimension_numbers<[1], [0], [0], [1], [0, 0, 1, 1], [], []>} : vector<64x128xf32>, vector<128x128xf32>, vector<64x128xf32> -> vector<64x128xf32>
    %50 = arith.addf %40, %49 : vector<64x128xf32>
    %c8_i32_38 = arith.constant 8 : i32
    %51 = arith.muli %arg1, %c8_i32_38 : i32
    %c0_i32_39 = arith.constant 0 : i32
    %52 = arith.addi %51, %c0_i32_39 : i32
    %c2_40 = arith.constant 2 : index
    %53 = arith.index_cast %52 : i32 to index
    %c1_41 = arith.constant 1 : index
    %c0_42 = arith.constant 0 : index
    %54 = vector.load %arg2[%c2_40, %53, %c1_41, %c0_42] : memref<4x9x9x128xf32, #tpu.memory_space<vmem>>, vector<1x8x8x128xf32>
    %55 = vector.shape_cast %54 : vector<1x8x8x128xf32> to vector<8x8x128xf32>
    %56 = vector.shape_cast %55 : vector<8x8x128xf32> to vector<64x128xf32>
    %c5 = arith.constant 5 : index
    %c0_43 = arith.constant 0 : index
    %c0_44 = arith.constant 0 : index
    %57 = vector.load %arg3[%c5, %c0_43, %c0_44] : memref<9x128x128xf32, #tpu.memory_space<vmem>>, vector<1x128x128xf32>
    %58 = vector.shape_cast %57 : vector<1x128x128xf32> to vector<128x128xf32>
    %cst_45 = arith.constant dense<0.000000e+00> : vector<64x128xf32>
    %59 = tpu.matmul %56, %58, %cst_45 {dimension_numbers = #tpu.dot_dimension_numbers<[1], [0], [0], [1], [0, 0, 1, 1], [], []>} : vector<64x128xf32>, vector<128x128xf32>, vector<64x128xf32> -> vector<64x128xf32>
    %60 = arith.addf %50, %59 : vector<64x128xf32>
    %c8_i32_46 = arith.constant 8 : i32
    %61 = arith.muli %arg1, %c8_i32_46 : i32
    %c1_i32 = arith.constant 1 : i32
    %62 = arith.addi %61, %c1_i32 : i32
    %c0_47 = arith.constant 0 : index
    %63 = arith.index_cast %62 : i32 to index
    %c0_48 = arith.constant 0 : index
    %c0_49 = arith.constant 0 : index
    %64 = vector.load %arg2[%c0_47, %63, %c0_48, %c0_49] : memref<4x9x9x128xf32, #tpu.memory_space<vmem>>, vector<1x8x8x128xf32>
    %65 = vector.shape_cast %64 : vector<1x8x8x128xf32> to vector<8x8x128xf32>
    %66 = vector.shape_cast %65 : vector<8x8x128xf32> to vector<64x128xf32>
    %c6 = arith.constant 6 : index
    %c0_50 = arith.constant 0 : index
    %c0_51 = arith.constant 0 : index
    %67 = vector.load %arg3[%c6, %c0_50, %c0_51] : memref<9x128x128xf32, #tpu.memory_space<vmem>>, vector<1x128x128xf32>
    %68 = vector.shape_cast %67 : vector<1x128x128xf32> to vector<128x128xf32>
    %cst_52 = arith.constant dense<0.000000e+00> : vector<64x128xf32>
    %69 = tpu.matmul %66, %68, %cst_52 {dimension_numbers = #tpu.dot_dimension_numbers<[1], [0], [0], [1], [0, 0, 1, 1], [], []>} : vector<64x128xf32>, vector<128x128xf32>, vector<64x128xf32> -> vector<64x128xf32>
    %70 = arith.addf %60, %69 : vector<64x128xf32>
    %c8_i32_53 = arith.constant 8 : i32
    %71 = arith.muli %arg1, %c8_i32_53 : i32
    %c1_i32_54 = arith.constant 1 : i32
    %72 = arith.addi %71, %c1_i32_54 : i32
    %c1_55 = arith.constant 1 : index
    %73 = arith.index_cast %72 : i32 to index
    %c0_56 = arith.constant 0 : index
    %c0_57 = arith.constant 0 : index
    %74 = vector.load %arg2[%c1_55, %73, %c0_56, %c0_57] : memref<4x9x9x128xf32, #tpu.memory_space<vmem>>, vector<1x8x8x128xf32>
    %75 = vector.shape_cast %74 : vector<1x8x8x128xf32> to vector<8x8x128xf32>
    %76 = vector.shape_cast %75 : vector<8x8x128xf32> to vector<64x128xf32>
    %c7 = arith.constant 7 : index
    %c0_58 = arith.constant 0 : index
    %c0_59 = arith.constant 0 : index
    %77 = vector.load %arg3[%c7, %c0_58, %c0_59] : memref<9x128x128xf32, #tpu.memory_space<vmem>>, vector<1x128x128xf32>
    %78 = vector.shape_cast %77 : vector<1x128x128xf32> to vector<128x128xf32>
    %cst_60 = arith.constant dense<0.000000e+00> : vector<64x128xf32>
    %79 = tpu.matmul %76, %78, %cst_60 {dimension_numbers = #tpu.dot_dimension_numbers<[1], [0], [0], [1], [0, 0, 1, 1], [], []>} : vector<64x128xf32>, vector<128x128xf32>, vector<64x128xf32> -> vector<64x128xf32>
    %80 = arith.addf %70, %79 : vector<64x128xf32>
    %c8_i32_61 = arith.constant 8 : i32
    %81 = arith.muli %arg1, %c8_i32_61 : i32
    %c1_i32_62 = arith.constant 1 : i32
    %82 = arith.addi %81, %c1_i32_62 : i32
    %c0_63 = arith.constant 0 : index
    %83 = arith.index_cast %82 : i32 to index
    %c1_64 = arith.constant 1 : index
    %c0_65 = arith.constant 0 : index
    %84 = vector.load %arg2[%c0_63, %83, %c1_64, %c0_65] : memref<4x9x9x128xf32, #tpu.memory_space<vmem>>, vector<1x8x8x128xf32>
    %85 = vector.shape_cast %84 : vector<1x8x8x128xf32> to vector<8x8x128xf32>
    %86 = vector.shape_cast %85 : vector<8x8x128xf32> to vector<64x128xf32>
    %c8 = arith.constant 8 : index
    %c0_66 = arith.constant 0 : index
    %c0_67 = arith.constant 0 : index
    %87 = vector.load %arg3[%c8, %c0_66, %c0_67] : memref<9x128x128xf32, #tpu.memory_space<vmem>>, vector<1x128x128xf32>
    %88 = vector.shape_cast %87 : vector<1x128x128xf32> to vector<128x128xf32>
    %cst_68 = arith.constant dense<0.000000e+00> : vector<64x128xf32>
    %89 = tpu.matmul %86, %88, %cst_68 {dimension_numbers = #tpu.dot_dimension_numbers<[1], [0], [0], [1], [0, 0, 1, 1], [], []>} : vector<64x128xf32>, vector<128x128xf32>, vector<64x128xf32> -> vector<64x128xf32>
    %90 = arith.addf %80, %89 : vector<64x128xf32>
    %c0_69 = arith.constant 0 : index
    %c0_70 = arith.constant 0 : index
    %91 = vector.load %arg4[%c0_69, %c0_70] : memref<1x128xf32, #tpu.memory_space<vmem>>, vector<1x128xf32>
    %92 = vector.broadcast %91 : vector<1x128xf32> to vector<64x128xf32>
    %93 = arith.addf %90, %92 : vector<64x128xf32>
    %cst_71 = arith.constant 0.000000e+00 : f32
    %94 = vector.broadcast %cst_71 : f32 to vector<64x128xf32>
    %95 = arith.maximumf %93, %94 : vector<64x128xf32>
    %96 = vector.shape_cast %95 : vector<64x128xf32> to vector<8x8x128xf32>
    %c0_72 = arith.constant 0 : index
    %c0_73 = arith.constant 0 : index
    %c0_74 = arith.constant 0 : index
    %c0_75 = arith.constant 0 : index
    %97 = vector.load %arg5[%c0_72, %c0_73, %c0_74, %c0_75] : memref<1x8x8x128xf32, #tpu.memory_space<vmem>>, vector<1x8x8x128xf32>
    %98 = vector.shape_cast %97 : vector<1x8x8x128xf32> to vector<8x8x128xf32>
    %99 = vector.shape_cast %96 : vector<8x8x128xf32> to vector<1x8x8x128xf32>
    tpu.vector_store %arg5[%c0_72, %c0_73, %c0_74, %c0_75], %99 {strides = array<i32>} : memref<1x8x8x128xf32, #tpu.memory_space<vmem>>, vector<1x8x8x128xf32>,
    return
  }
  func.func @transform_0(%arg0: i32, %arg1: i32) -> (i32, i32, i32, i32) {
    %c0_i32 = arith.constant 0 : i32
    %c0_i32_0 = arith.constant 0 : i32
    %c0_i32_1 = arith.constant 0 : i32
    %c0_i32_2 = arith.constant 0 : i32
    return %arg0, %c0_i32, %c0_i32_0, %c0_i32_1 : i32, i32, i32, i32
  }
  func.func @transform_1(%arg0: i32, %arg1: i32) -> (i32, i32, i32) {
    %c0_i32 = arith.constant 0 : i32
    %c0_i32_0 = arith.constant 0 : i32
    %c0_i32_1 = arith.constant 0 : i32
    %c0_i32_2 = arith.constant 0 : i32
    return %c0_i32, %c0_i32_0, %c0_i32_1 : i32, i32, i32
  }
  func.func @transform_2(%arg0: i32, %arg1: i32) -> (i32, i32) {
    %c0_i32 = arith.constant 0 : i32
    %c0_i32_0 = arith.constant 0 : i32
    %c0_i32_1 = arith.constant 0 : i32
    return %c0_i32, %c0_i32_0 : i32, i32
  }
  func.func @transform_3(%arg0: i32, %arg1: i32) -> (i32, i32, i32, i32) {
    %c0_i32 = arith.constant 0 : i32
    %c0_i32_0 = arith.constant 0 : i32
    %c0_i32_1 = arith.constant 0 : i32
    return %arg0, %arg1, %c0_i32, %c0_i32_0 : i32, i32, i32, i32
  }
}

module attributes {stable_mosaic.version = 11 : i64} {
  func.func @kernel(%arg0: i32, %arg1: i32, %arg2: memref<1x8x8x128xf32, #tpu.memory_space<vmem>>, %arg3: memref<1x128x128xf32, #tpu.memory_space<vmem>>, %arg4: memref<1x128xf32, #tpu.memory_space<vmem>>, %arg5: memref<1x8x8x128xf32, #tpu.memory_space<vmem>>) attributes {dimension_semantics = [#tpu.dimension_semantics<parallel>, #tpu.dimension_semantics<parallel>], iteration_bounds = array<i64: 2, 1>, scalar_prefetch = 0 : i64, scratch_operands = 0 : i64, tpu.core_type = #tpu.core_type<tc>, window_params = [{transform_indices = @transform_0, window_bounds = array<i64: 1, 8, 8, 128>}, {pipeline_mode = #tpu.pipeline_mode<synchronous>, transform_indices = @transform_1, window_bounds = array<i64: 1, 128, 128>}, {pipeline_mode = #tpu.pipeline_mode<synchronous>, transform_indices = @transform_2, window_bounds = array<i64: 1, 128>}, {transform_indices = @transform_3, window_bounds = array<i64: 1, 8, 8, 128>}]} {
    %cst = arith.constant 0.000000e+00 : f32
    %0 = vector.broadcast %cst : f32 to vector<64x128xf32>
    %c8_i32 = arith.constant 8 : i32
    %1 = arith.muli %arg1, %c8_i32 : i32
    %c0_i32 = arith.constant 0 : i32
    %2 = arith.addi %1, %c0_i32 : i32
    %c0 = arith.constant 0 : index
    %3 = arith.index_cast %2 : i32 to index
    %c0_0 = arith.constant 0 : index
    %c0_1 = arith.constant 0 : index
    %4 = vector.load %arg2[%c0, %3, %c0_0, %c0_1] : memref<1x8x8x128xf32, #tpu.memory_space<vmem>>, vector<1x8x8x128xf32>
    %5 = vector.shape_cast %4 : vector<1x8x8x128xf32> to vector<8x8x128xf32>
    %6 = vector.shape_cast %5 : vector<8x8x128xf32> to vector<64x128xf32>
    %c0_2 = arith.constant 0 : index
    %c0_3 = arith.constant 0 : index
    %c0_4 = arith.constant 0 : index
    %7 = vector.load %arg3[%c0_2, %c0_3, %c0_4] : memref<1x128x128xf32, #tpu.memory_space<vmem>>, vector<1x128x128xf32>
    %8 = vector.shape_cast %7 : vector<1x128x128xf32> to vector<128x128xf32>
    %cst_5 = arith.constant dense<0.000000e+00> : vector<64x128xf32>
    %9 = tpu.matmul %6, %8, %cst_5 {dimension_numbers = #tpu.dot_dimension_numbers<[1], [0], [0], [1], [0, 0, 1, 1], [], []>} : vector<64x128xf32>, vector<128x128xf32>, vector<64x128xf32> -> vector<64x128xf32>
    %10 = arith.addf %0, %9 : vector<64x128xf32>
    %c0_6 = arith.constant 0 : index
    %c0_7 = arith.constant 0 : index
    %11 = vector.load %arg4[%c0_6, %c0_7] : memref<1x128xf32, #tpu.memory_space<vmem>>, vector<1x128xf32>
    %12 = vector.broadcast %11 : vector<1x128xf32> to vector<64x128xf32>
    %13 = arith.addf %10, %12 : vector<64x128xf32>
    %14 = vector.shape_cast %13 : vector<64x128xf32> to vector<8x8x128xf32>
    %c0_8 = arith.constant 0 : index
    %c0_9 = arith.constant 0 : index
    %c0_10 = arith.constant 0 : index
    %c0_11 = arith.constant 0 : index
    %15 = vector.load %arg5[%c0_8, %c0_9, %c0_10, %c0_11] : memref<1x8x8x128xf32, #tpu.memory_space<vmem>>, vector<1x8x8x128xf32>
    %16 = vector.shape_cast %15 : vector<1x8x8x128xf32> to vector<8x8x128xf32>
    %17 = vector.shape_cast %14 : vector<8x8x128xf32> to vector<1x8x8x128xf32>
    tpu.vector_store %arg5[%c0_8, %c0_9, %c0_10, %c0_11], %17 {strides = array<i32>} : memref<1x8x8x128xf32, #tpu.memory_space<vmem>>, vector<1x8x8x128xf32>,
    return
  }
  func.func @transform_0(%arg0: i32, %arg1: i32) -> (i32, i32, i32, i32) {
    %c0_i32 = arith.constant 0 : i32
    %c0_i32_0 = arith.constant 0 : i32
    %c0_i32_1 = arith.constant 0 : i32
    %c0_i32_2 = arith.constant 0 : i32
    return %arg0, %c0_i32, %c0_i32_0, %c0_i32_1 : i32, i32, i32, i32
  }
  func.func @transform_1(%arg0: i32, %arg1: i32) -> (i32, i32, i32) {
    %c0_i32 = arith.constant 0 : i32
    %c0_i32_0 = arith.constant 0 : i32
    %c0_i32_1 = arith.constant 0 : i32
    %c0_i32_2 = arith.constant 0 : i32
    return %c0_i32, %c0_i32_0, %c0_i32_1 : i32, i32, i32
  }
  func.func @transform_2(%arg0: i32, %arg1: i32) -> (i32, i32) {
    %c0_i32 = arith.constant 0 : i32
    %c0_i32_0 = arith.constant 0 : i32
    %c0_i32_1 = arith.constant 0 : i32
    return %c0_i32, %c0_i32_0 : i32, i32
  }
  func.func @transform_3(%arg0: i32, %arg1: i32) -> (i32, i32, i32, i32) {
    %c0_i32 = arith.constant 0 : i32
    %c0_i32_0 = arith.constant 0 : i32
    %c0_i32_1 = arith.constant 0 : i32
    return %arg0, %arg1, %c0_i32, %c0_i32_0 : i32, i32, i32, i32
  }
}

module attributes {stable_mosaic.version = 11 : i64} {
  func.func @kernel(%arg0: i32, %arg1: i32, %arg2: memref<1x10x10x128xf32, #tpu.memory_space<vmem>>, %arg3: memref<9x128x128xf32, #tpu.memory_space<vmem>>, %arg4: memref<1x128xf32, #tpu.memory_space<vmem>>, %arg5: memref<1x8x8x128xf32, #tpu.memory_space<vmem>>, %arg6: memref<1x8x8x128xf32, #tpu.memory_space<vmem>>) attributes {dimension_semantics = [#tpu.dimension_semantics<parallel>, #tpu.dimension_semantics<parallel>], iteration_bounds = array<i64: 2, 1>, scalar_prefetch = 0 : i64, scratch_operands = 0 : i64, tpu.core_type = #tpu.core_type<tc>, window_params = [{transform_indices = @transform_0, window_bounds = array<i64: 1, 10, 10, 128>}, {pipeline_mode = #tpu.pipeline_mode<synchronous>, transform_indices = @transform_1, window_bounds = array<i64: 9, 128, 128>}, {pipeline_mode = #tpu.pipeline_mode<synchronous>, transform_indices = @transform_2, window_bounds = array<i64: 1, 128>}, {transform_indices = @transform_3, window_bounds = array<i64: 1, 8, 8, 128>}, {transform_indices = @transform_4, window_bounds = array<i64: 1, 8, 8, 128>}]} {
    %cst = arith.constant 0.000000e+00 : f32
    %0 = vector.broadcast %cst : f32 to vector<64x128xf32>
    %c8_i32 = arith.constant 8 : i32
    %1 = arith.muli %arg1, %c8_i32 : i32
    %c0_i32 = arith.constant 0 : i32
    %2 = arith.addi %1, %c0_i32 : i32
    %c0 = arith.constant 0 : index
    %3 = arith.index_cast %2 : i32 to index
    %c0_0 = arith.constant 0 : index
    %c0_1 = arith.constant 0 : index
    %4 = vector.load %arg2[%c0, %3, %c0_0, %c0_1] : memref<1x10x10x128xf32, #tpu.memory_space<vmem>>, vector<1x8x8x128xf32>
    %5 = vector.shape_cast %4 : vector<1x8x8x128xf32> to vector<8x8x128xf32>
    %6 = vector.shape_cast %5 : vector<8x8x128xf32> to vector<64x128xf32>
    %c0_2 = arith.constant 0 : index
    %c0_3 = arith.constant 0 : index
    %c0_4 = arith.constant 0 : index
    %7 = vector.load %arg3[%c0_2, %c0_3, %c0_4] : memref<9x128x128xf32, #tpu.memory_space<vmem>>, vector<1x128x128xf32>
    %8 = vector.shape_cast %7 : vector<1x128x128xf32> to vector<128x128xf32>
    %cst_5 = arith.constant dense<0.000000e+00> : vector<64x128xf32>
    %9 = tpu.matmul %6, %8, %cst_5 {dimension_numbers = #tpu.dot_dimension_numbers<[1], [0], [0], [1], [0, 0, 1, 1], [], []>} : vector<64x128xf32>, vector<128x128xf32>, vector<64x128xf32> -> vector<64x128xf32>
    %10 = arith.addf %0, %9 : vector<64x128xf32>
    %c8_i32_6 = arith.constant 8 : i32
    %11 = arith.muli %arg1, %c8_i32_6 : i32
    %c0_i32_7 = arith.constant 0 : i32
    %12 = arith.addi %11, %c0_i32_7 : i32
    %c0_8 = arith.constant 0 : index
    %13 = arith.index_cast %12 : i32 to index
    %c1 = arith.constant 1 : index
    %c0_9 = arith.constant 0 : index
    %14 = vector.load %arg2[%c0_8, %13, %c1, %c0_9] : memref<1x10x10x128xf32, #tpu.memory_space<vmem>>, vector<1x8x8x128xf32>
    %15 = vector.shape_cast %14 : vector<1x8x8x128xf32> to vector<8x8x128xf32>
    %16 = vector.shape_cast %15 : vector<8x8x128xf32> to vector<64x128xf32>
    %c1_10 = arith.constant 1 : index
    %c0_11 = arith.constant 0 : index
    %c0_12 = arith.constant 0 : index
    %17 = vector.load %arg3[%c1_10, %c0_11, %c0_12] : memref<9x128x128xf32, #tpu.memory_space<vmem>>, vector<1x128x128xf32>
    %18 = vector.shape_cast %17 : vector<1x128x128xf32> to vector<128x128xf32>
    %cst_13 = arith.constant dense<0.000000e+00> : vector<64x128xf32>
    %19 = tpu.matmul %16, %18, %cst_13 {dimension_numbers = #tpu.dot_dimension_numbers<[1], [0], [0], [1], [0, 0, 1, 1], [], []>} : vector<64x128xf32>, vector<128x128xf32>, vector<64x128xf32> -> vector<64x128xf32>
    %20 = arith.addf %10, %19 : vector<64x128xf32>
    %c8_i32_14 = arith.constant 8 : i32
    %21 = arith.muli %arg1, %c8_i32_14 : i32
    %c0_i32_15 = arith.constant 0 : i32
    %22 = arith.addi %21, %c0_i32_15 : i32
    %c0_16 = arith.constant 0 : index
    %23 = arith.index_cast %22 : i32 to index
    %c2 = arith.constant 2 : index
    %c0_17 = arith.constant 0 : index
    %24 = vector.load %arg2[%c0_16, %23, %c2, %c0_17] : memref<1x10x10x128xf32, #tpu.memory_space<vmem>>, vector<1x8x8x128xf32>
    %25 = vector.shape_cast %24 : vector<1x8x8x128xf32> to vector<8x8x128xf32>
    %26 = vector.shape_cast %25 : vector<8x8x128xf32> to vector<64x128xf32>
    %c2_18 = arith.constant 2 : index
    %c0_19 = arith.constant 0 : index
    %c0_20 = arith.constant 0 : index
    %27 = vector.load %arg3[%c2_18, %c0_19, %c0_20] : memref<9x128x128xf32, #tpu.memory_space<vmem>>, vector<1x128x128xf32>
    %28 = vector.shape_cast %27 : vector<1x128x128xf32> to vector<128x128xf32>
    %cst_21 = arith.constant dense<0.000000e+00> : vector<64x128xf32>
    %29 = tpu.matmul %26, %28, %cst_21 {dimension_numbers = #tpu.dot_dimension_numbers<[1], [0], [0], [1], [0, 0, 1, 1], [], []>} : vector<64x128xf32>, vector<128x128xf32>, vector<64x128xf32> -> vector<64x128xf32>
    %30 = arith.addf %20, %29 : vector<64x128xf32>
    %c8_i32_22 = arith.constant 8 : i32
    %31 = arith.muli %arg1, %c8_i32_22 : i32
    %c1_i32 = arith.constant 1 : i32
    %32 = arith.addi %31, %c1_i32 : i32
    %c0_23 = arith.constant 0 : index
    %33 = arith.index_cast %32 : i32 to index
    %c0_24 = arith.constant 0 : index
    %c0_25 = arith.constant 0 : index
    %34 = vector.load %arg2[%c0_23, %33, %c0_24, %c0_25] : memref<1x10x10x128xf32, #tpu.memory_space<vmem>>, vector<1x8x8x128xf32>
    %35 = vector.shape_cast %34 : vector<1x8x8x128xf32> to vector<8x8x128xf32>
    %36 = vector.shape_cast %35 : vector<8x8x128xf32> to vector<64x128xf32>
    %c3 = arith.constant 3 : index
    %c0_26 = arith.constant 0 : index
    %c0_27 = arith.constant 0 : index
    %37 = vector.load %arg3[%c3, %c0_26, %c0_27] : memref<9x128x128xf32, #tpu.memory_space<vmem>>, vector<1x128x128xf32>
    %38 = vector.shape_cast %37 : vector<1x128x128xf32> to vector<128x128xf32>
    %cst_28 = arith.constant dense<0.000000e+00> : vector<64x128xf32>
    %39 = tpu.matmul %36, %38, %cst_28 {dimension_numbers = #tpu.dot_dimension_numbers<[1], [0], [0], [1], [0, 0, 1, 1], [], []>} : vector<64x128xf32>, vector<128x128xf32>, vector<64x128xf32> -> vector<64x128xf32>
    %40 = arith.addf %30, %39 : vector<64x128xf32>
    %c8_i32_29 = arith.constant 8 : i32
    %41 = arith.muli %arg1, %c8_i32_29 : i32
    %c1_i32_30 = arith.constant 1 : i32
    %42 = arith.addi %41, %c1_i32_30 : i32
    %c0_31 = arith.constant 0 : index
    %43 = arith.index_cast %42 : i32 to index
    %c1_32 = arith.constant 1 : index
    %c0_33 = arith.constant 0 : index
    %44 = vector.load %arg2[%c0_31, %43, %c1_32, %c0_33] : memref<1x10x10x128xf32, #tpu.memory_space<vmem>>, vector<1x8x8x128xf32>
    %45 = vector.shape_cast %44 : vector<1x8x8x128xf32> to vector<8x8x128xf32>
    %46 = vector.shape_cast %45 : vector<8x8x128xf32> to vector<64x128xf32>
    %c4 = arith.constant 4 : index
    %c0_34 = arith.constant 0 : index
    %c0_35 = arith.constant 0 : index
    %47 = vector.load %arg3[%c4, %c0_34, %c0_35] : memref<9x128x128xf32, #tpu.memory_space<vmem>>, vector<1x128x128xf32>
    %48 = vector.shape_cast %47 : vector<1x128x128xf32> to vector<128x128xf32>
    %cst_36 = arith.constant dense<0.000000e+00> : vector<64x128xf32>
    %49 = tpu.matmul %46, %48, %cst_36 {dimension_numbers = #tpu.dot_dimension_numbers<[1], [0], [0], [1], [0, 0, 1, 1], [], []>} : vector<64x128xf32>, vector<128x128xf32>, vector<64x128xf32> -> vector<64x128xf32>
    %50 = arith.addf %40, %49 : vector<64x128xf32>
    %c8_i32_37 = arith.constant 8 : i32
    %51 = arith.muli %arg1, %c8_i32_37 : i32
    %c1_i32_38 = arith.constant 1 : i32
    %52 = arith.addi %51, %c1_i32_38 : i32
    %c0_39 = arith.constant 0 : index
    %53 = arith.index_cast %52 : i32 to index
    %c2_40 = arith.constant 2 : index
    %c0_41 = arith.constant 0 : index
    %54 = vector.load %arg2[%c0_39, %53, %c2_40, %c0_41] : memref<1x10x10x128xf32, #tpu.memory_space<vmem>>, vector<1x8x8x128xf32>
    %55 = vector.shape_cast %54 : vector<1x8x8x128xf32> to vector<8x8x128xf32>
    %56 = vector.shape_cast %55 : vector<8x8x128xf32> to vector<64x128xf32>
    %c5 = arith.constant 5 : index
    %c0_42 = arith.constant 0 : index
    %c0_43 = arith.constant 0 : index
    %57 = vector.load %arg3[%c5, %c0_42, %c0_43] : memref<9x128x128xf32, #tpu.memory_space<vmem>>, vector<1x128x128xf32>
    %58 = vector.shape_cast %57 : vector<1x128x128xf32> to vector<128x128xf32>
    %cst_44 = arith.constant dense<0.000000e+00> : vector<64x128xf32>
    %59 = tpu.matmul %56, %58, %cst_44 {dimension_numbers = #tpu.dot_dimension_numbers<[1], [0], [0], [1], [0, 0, 1, 1], [], []>} : vector<64x128xf32>, vector<128x128xf32>, vector<64x128xf32> -> vector<64x128xf32>
    %60 = arith.addf %50, %59 : vector<64x128xf32>
    %c8_i32_45 = arith.constant 8 : i32
    %61 = arith.muli %arg1, %c8_i32_45 : i32
    %c2_i32 = arith.constant 2 : i32
    %62 = arith.addi %61, %c2_i32 : i32
    %c0_46 = arith.constant 0 : index
    %63 = arith.index_cast %62 : i32 to index
    %c0_47 = arith.constant 0 : index
    %c0_48 = arith.constant 0 : index
    %64 = vector.load %arg2[%c0_46, %63, %c0_47, %c0_48] : memref<1x10x10x128xf32, #tpu.memory_space<vmem>>, vector<1x8x8x128xf32>
    %65 = vector.shape_cast %64 : vector<1x8x8x128xf32> to vector<8x8x128xf32>
    %66 = vector.shape_cast %65 : vector<8x8x128xf32> to vector<64x128xf32>
    %c6 = arith.constant 6 : index
    %c0_49 = arith.constant 0 : index
    %c0_50 = arith.constant 0 : index
    %67 = vector.load %arg3[%c6, %c0_49, %c0_50] : memref<9x128x128xf32, #tpu.memory_space<vmem>>, vector<1x128x128xf32>
    %68 = vector.shape_cast %67 : vector<1x128x128xf32> to vector<128x128xf32>
    %cst_51 = arith.constant dense<0.000000e+00> : vector<64x128xf32>
    %69 = tpu.matmul %66, %68, %cst_51 {dimension_numbers = #tpu.dot_dimension_numbers<[1], [0], [0], [1], [0, 0, 1, 1], [], []>} : vector<64x128xf32>, vector<128x128xf32>, vector<64x128xf32> -> vector<64x128xf32>
    %70 = arith.addf %60, %69 : vector<64x128xf32>
    %c8_i32_52 = arith.constant 8 : i32
    %71 = arith.muli %arg1, %c8_i32_52 : i32
    %c2_i32_53 = arith.constant 2 : i32
    %72 = arith.addi %71, %c2_i32_53 : i32
    %c0_54 = arith.constant 0 : index
    %73 = arith.index_cast %72 : i32 to index
    %c1_55 = arith.constant 1 : index
    %c0_56 = arith.constant 0 : index
    %74 = vector.load %arg2[%c0_54, %73, %c1_55, %c0_56] : memref<1x10x10x128xf32, #tpu.memory_space<vmem>>, vector<1x8x8x128xf32>
    %75 = vector.shape_cast %74 : vector<1x8x8x128xf32> to vector<8x8x128xf32>
    %76 = vector.shape_cast %75 : vector<8x8x128xf32> to vector<64x128xf32>
    %c7 = arith.constant 7 : index
    %c0_57 = arith.constant 0 : index
    %c0_58 = arith.constant 0 : index
    %77 = vector.load %arg3[%c7, %c0_57, %c0_58] : memref<9x128x128xf32, #tpu.memory_space<vmem>>, vector<1x128x128xf32>
    %78 = vector.shape_cast %77 : vector<1x128x128xf32> to vector<128x128xf32>
    %cst_59 = arith.constant dense<0.000000e+00> : vector<64x128xf32>
    %79 = tpu.matmul %76, %78, %cst_59 {dimension_numbers = #tpu.dot_dimension_numbers<[1], [0], [0], [1], [0, 0, 1, 1], [], []>} : vector<64x128xf32>, vector<128x128xf32>, vector<64x128xf32> -> vector<64x128xf32>
    %80 = arith.addf %70, %79 : vector<64x128xf32>
    %c8_i32_60 = arith.constant 8 : i32
    %81 = arith.muli %arg1, %c8_i32_60 : i32
    %c2_i32_61 = arith.constant 2 : i32
    %82 = arith.addi %81, %c2_i32_61 : i32
    %c0_62 = arith.constant 0 : index
    %83 = arith.index_cast %82 : i32 to index
    %c2_63 = arith.constant 2 : index
    %c0_64 = arith.constant 0 : index
    %84 = vector.load %arg2[%c0_62, %83, %c2_63, %c0_64] : memref<1x10x10x128xf32, #tpu.memory_space<vmem>>, vector<1x8x8x128xf32>
    %85 = vector.shape_cast %84 : vector<1x8x8x128xf32> to vector<8x8x128xf32>
    %86 = vector.shape_cast %85 : vector<8x8x128xf32> to vector<64x128xf32>
    %c8 = arith.constant 8 : index
    %c0_65 = arith.constant 0 : index
    %c0_66 = arith.constant 0 : index
    %87 = vector.load %arg3[%c8, %c0_65, %c0_66] : memref<9x128x128xf32, #tpu.memory_space<vmem>>, vector<1x128x128xf32>
    %88 = vector.shape_cast %87 : vector<1x128x128xf32> to vector<128x128xf32>
    %cst_67 = arith.constant dense<0.000000e+00> : vector<64x128xf32>
    %89 = tpu.matmul %86, %88, %cst_67 {dimension_numbers = #tpu.dot_dimension_numbers<[1], [0], [0], [1], [0, 0, 1, 1], [], []>} : vector<64x128xf32>, vector<128x128xf32>, vector<64x128xf32> -> vector<64x128xf32>
    %90 = arith.addf %80, %89 : vector<64x128xf32>
    %c0_68 = arith.constant 0 : index
    %c0_69 = arith.constant 0 : index
    %91 = vector.load %arg4[%c0_68, %c0_69] : memref<1x128xf32, #tpu.memory_space<vmem>>, vector<1x128xf32>
    %92 = vector.broadcast %91 : vector<1x128xf32> to vector<64x128xf32>
    %93 = arith.addf %90, %92 : vector<64x128xf32>
    %c0_70 = arith.constant 0 : index
    %c0_71 = arith.constant 0 : index
    %c0_72 = arith.constant 0 : index
    %c0_73 = arith.constant 0 : index
    %94 = vector.load %arg5[%c0_70, %c0_71, %c0_72, %c0_73] : memref<1x8x8x128xf32, #tpu.memory_space<vmem>>, vector<1x8x8x128xf32>
    %95 = vector.shape_cast %94 : vector<1x8x8x128xf32> to vector<8x8x128xf32>
    %96 = vector.shape_cast %95 : vector<8x8x128xf32> to vector<64x128xf32>
    %97 = arith.addf %93, %96 : vector<64x128xf32>
    %98 = vector.shape_cast %97 : vector<64x128xf32> to vector<8x8x128xf32>
    %c0_74 = arith.constant 0 : index
    %c0_75 = arith.constant 0 : index
    %c0_76 = arith.constant 0 : index
    %c0_77 = arith.constant 0 : index
    %99 = vector.load %arg6[%c0_74, %c0_75, %c0_76, %c0_77] : memref<1x8x8x128xf32, #tpu.memory_space<vmem>>, vector<1x8x8x128xf32>
    %100 = vector.shape_cast %99 : vector<1x8x8x128xf32> to vector<8x8x128xf32>
    %101 = vector.shape_cast %98 : vector<8x8x128xf32> to vector<1x8x8x128xf32>
    tpu.vector_store %arg6[%c0_74, %c0_75, %c0_76, %c0_77], %101 {strides = array<i32>} : memref<1x8x8x128xf32, #tpu.memory_space<vmem>>, vector<1x8x8x128xf32>,
    return
  }
  func.func @transform_0(%arg0: i32, %arg1: i32) -> (i32, i32, i32, i32) {
    %c0_i32 = arith.constant 0 : i32
    %c0_i32_0 = arith.constant 0 : i32
    %c0_i32_1 = arith.constant 0 : i32
    %c0_i32_2 = arith.constant 0 : i32
    return %arg0, %c0_i32, %c0_i32_0, %c0_i32_1 : i32, i32, i32, i32
  }
  func.func @transform_1(%arg0: i32, %arg1: i32) -> (i32, i32, i32) {
    %c0_i32 = arith.constant 0 : i32
    %c0_i32_0 = arith.constant 0 : i32
    %c0_i32_1 = arith.constant 0 : i32
    %c0_i32_2 = arith.constant 0 : i32
    return %c0_i32, %c0_i32_0, %c0_i32_1 : i32, i32, i32
  }
  func.func @transform_2(%arg0: i32, %arg1: i32) -> (i32, i32) {
    %c0_i32 = arith.constant 0 : i32
    %c0_i32_0 = arith.constant 0 : i32
    %c0_i32_1 = arith.constant 0 : i32
    return %c0_i32, %c0_i32_0 : i32, i32
  }
  func.func @transform_3(%arg0: i32, %arg1: i32) -> (i32, i32, i32, i32) {
    %c0_i32 = arith.constant 0 : i32
    %c0_i32_0 = arith.constant 0 : i32
    %c0_i32_1 = arith.constant 0 : i32
    return %arg0, %arg1, %c0_i32, %c0_i32_0 : i32, i32, i32, i32
  }
  func.func @transform_4(%arg0: i32, %arg1: i32) -> (i32, i32, i32, i32) {
    %c0_i32 = arith.constant 0 : i32
    %c0_i32_0 = arith.constant 0 : i32
    %c0_i32_1 = arith.constant 0 : i32
    return %arg0, %arg1, %c0_i32, %c0_i32_0 : i32, i32, i32, i32
  }
}

</mosaic_0001>

<bundles_post_ra>
// kernel: basic_block_forward.4
= control target key start
LH: loop header
LB: loop body
LE: loop exit
PB: predicated region body
PF: predicated region fallthrough
CT: control target
= control target key end

     0   :  { %s606_s12 = smov 0   ;;  %s608_s13 = smov 0   ;;  %s701_s0 = inlined_call_operand.vmem [shape: f32[2,8,8,128], index: 0, kind: input, shape index: {}]   ;;  %s702_s1 = inlined_call_operand.vmem [shape: f32[1,128,128], index: 1, kind: input, shape index: {}]   ;;  %s703_s2 = inlined_call_operand.vmem [shape: f32[1,128], index: 2, kind: input, shape index: {}]   ;;  %s704_s3 = inlined_call_operand.vmem [shape: f32[2,8,8,128], index: 3, kind: output, shape index: {}]  }
   0x1   :  { %s610_s14 = smov 0  }
   0x2 LB: > { %s25_s15 = sadd.s32 1, %s580_s13  ;;  %p428_p0 = scmp.ge.s32.totalorder %s584_s14, 1  ;;  %s584_s14 = sphi %s610_s14, %s13_s14   ;;  %s580_s13 = sphi %s608_s13, %s706_s13   ;;  %s576_s12 = sphi %s606_s12, %s705_s12  }
   0x3   : > { %p27_p1 = scmp.ge.s32.totalorder %s25_s15, 2  ;;  %p151_p2 = scmp.lt.s32.totalorder %s584_s14, 3 }
   0x5   : > { %s708_s15 = smov (%p27_p1, %s25_s15), 0  ;;  %p152_p3 = pnand %p428_p0, %p151_p2 }
   0x6   : > { %p179_p4 = scmp.lt.s32.totalorder (!%p152_p3), %s576_s12, 1 }
   0x7   : > { %155 = sbr.rel (%p152_p3) target bundleno = 248 (0xf8), region = 32 }
   0xc   : > { %v220_v0 = vld [vmem:[%s702_s1 + $0x78] sm:$0xff]  ;;  %v219_v1 = vld [vmem:[%s702_s1 + $0x70] sm:$0xff]  ;;  %v218_v2 = vld [vmem:[%s702_s1 + $0x68] sm:$0xff]  ;;  %s710_s12 = smov (!%p179_p4, %s576_s12), 1 }
   0xd   : > { %462 = vmatprep.subr.mxu0 %v220_v0  ;;  %506 = vmatprep.subr.mxu1 %v220_v0  ;;  %v217_v3 = vld [vmem:[%s702_s1 + $0x60] sm:$0xff]  ;;  %v216_v4 = vld [vmem:[%s702_s1 + $0x58] sm:$0xff]  ;;  %v215_v5 = vld [vmem:[%s702_s1 + $0x50] sm:$0xff]  ;;  %s436_s21 = sshll.u32 %s710_s12, 6 }
   0xe   : > { %463 = vmatpush3.msra.mxu0 %v220_v0  ;;  %522 = vmatpush3.msra.mxu1 %v220_v0  ;;  %v214_v6 = vld [vmem:[%s702_s1 + $0x48] sm:$0xff]  ;;  %v213_v7 = vld [vmem:[%s702_s1 + $0x40] sm:$0xff]  ;;  %v212_v8 = vld [vmem:[%s702_s1 + $0x38] sm:$0xff]  ;;  %s183_s26 = scalar_lea.vmem %s701_s0, %s436_s21  ;;  %s192_s6 = scalar_lea.vmem %s704_s3, %s436_s21 }
   0xf   : > { %464 = vmatprep.subr.mxu0 %v219_v1  ;;  %507 = vmatprep.subr.mxu1 %v219_v1  ;;  %v211_v9 = vld [vmem:[%s702_s1 + $0x30] sm:$0xff]  ;;  %v210_v10 = vld [vmem:[%s702_s1 + $0x28] sm:$0xff]  ;;  %v209_v11 = vld [vmem:[%s702_s1 + $0x20] sm:$0xff] }
  0x10   : > { %465 = vmatpush3.msra.mxu0 %v219_v1  ;;  %523 = vmatpush3.msra.mxu1 %v219_v1  ;;  %v208_v12 = vld [vmem:[%s702_s1 + $0x18] sm:$0xff]  ;;  %v207_v13 = vld [vmem:[%s702_s1 + $0x10] sm:$0xff]  ;;  %v206_v14 = vld [vmem:[%s702_s1 + $0x8] sm:$0xff] }
  0x11   : > { %466 = vmatprep.subr.mxu0 %v218_v2  ;;  %508 = vmatprep.subr.mxu1 %v218_v2  ;;  %v205_v15 = vld [vmem:[%s702_s1] sm:$0xff]  ;;  %v198_v18 = vld [vmem:[%s183_s26 + $0x8] sm:$0xff]  ;;  %v199_v20 = vld [vmem:[%s183_s26 + $0x10] sm:$0xff] }
  0x12   : > { %467 = vmatpush3.msra.mxu0 %v218_v2  ;;  %524 = vmatpush3.msra.mxu1 %v218_v2  ;;  %v197_v16 = vld [vmem:[%s183_s26] sm:$0xff]  ;;  %v202_v19 = vld [vmem:[%s183_s26 + $0x28] sm:$0xff]  ;;  %v203_v21 = vld [vmem:[%s183_s26 + $0x30] sm:$0xff] }
  0x13   : > { %468 = vmatprep.subr.mxu0 %v217_v3  ;;  %509 = vmatprep.subr.mxu1 %v217_v3  ;;  %v201_v17 = vld [vmem:[%s183_s26 + $0x20] sm:$0xff]  ;;  %v200_v22 = vld [vmem:[%s183_s26 + $0x18] sm:$0xff] }
  0x14   : > { %469 = vmatpush3.msra.mxu0 %v217_v3  ;;  %525 = vmatpush3.msra.mxu1 %v217_v3  ;;  %v204_v23 = vld [vmem:[%s183_s26 + $0x38] sm:$0xff]  ;;  %v433_v24 = vld [vmem:[%s703_s2] ss:$0 sm:$0xff] }
  0x15   : > { %470 = vmatprep.subr.mxu0 %v216_v4  ;;  %510 = vmatprep.subr.mxu1 %v216_v4 }
  0x16   : > { %471 = vmatpush3.msra.mxu0 %v216_v4  ;;  %526 = vmatpush3.msra.mxu1 %v216_v4 }
  0x17   : > { %472 = vmatprep.subr.mxu0 %v215_v5  ;;  %511 = vmatprep.subr.mxu1 %v215_v5 }
  0x18   : > { %473 = vmatpush3.msra.mxu0 %v215_v5  ;;  %527 = vmatpush3.msra.mxu1 %v215_v5 }
  0x19   : > { %474 = vmatprep.subr.mxu0 %v214_v6  ;;  %512 = vmatprep.subr.mxu1 %v214_v6 }
  0x1a   : > { %475 = vmatpush3.msra.mxu0 %v214_v6  ;;  %528 = vmatpush3.msra.mxu1 %v214_v6 }
  0x1b   : > { %476 = vmatprep.subr.mxu0 %v213_v7  ;;  %513 = vmatprep.subr.mxu1 %v213_v7 }
  0x1c   : > { %477 = vmatpush3.msra.mxu0 %v213_v7  ;;  %529 = vmatpush3.msra.mxu1 %v213_v7 }
  0x1d   : > { %478 = vmatprep.subr.mxu0 %v212_v8  ;;  %514 = vmatprep.subr.mxu1 %v212_v8 }
  0x1e   : > { %479 = vmatpush3.msra.mxu0 %v212_v8  ;;  %530 = vmatpush3.msra.mxu1 %v212_v8 }
  0x1f   : > { %480 = vmatprep.subr.mxu0 %v211_v9  ;;  %515 = vmatprep.subr.mxu1 %v211_v9 }
  0x20   : > { %481 = vmatpush3.msra.mxu0 %v211_v9  ;;  %531 = vmatpush3.msra.mxu1 %v211_v9 }
  0x21   : > { %482 = vmatprep.subr.mxu0 %v210_v10  ;;  %516 = vmatprep.subr.mxu1 %v210_v10 }
  0x22   : > { %483 = vmatpush3.msra.mxu0 %v210_v10  ;;  %532 = vmatpush3.msra.mxu1 %v210_v10 }
  0x23   : > { %484 = vmatprep.subr.mxu0 %v209_v11  ;;  %517 = vmatprep.subr.mxu1 %v209_v11 }
  0x24   : > { %485 = vmatpush3.msra.mxu0 %v209_v11  ;;  %533 = vmatpush3.msra.mxu1 %v209_v11 }
  0x25   : > { %486 = vmatprep.subr.mxu0 %v208_v12  ;;  %518 = vmatprep.subr.mxu1 %v208_v12 }
  0x26   : > { %487 = vmatpush3.msra.mxu0 %v208_v12  ;;  %534 = vmatpush3.msra.mxu1 %v208_v12 }
  0x27   : > { %488 = vmatprep.subr.mxu0 %v207_v13  ;;  %519 = vmatprep.subr.mxu1 %v207_v13 }
  0x28   : > { %489 = vmatpush3.msra.mxu0 %v207_v13  ;;  %535 = vmatpush3.msra.mxu1 %v207_v13 }
  0x29   : > { %490 = vmatprep.subr.mxu0 %v206_v14  ;;  %520 = vmatprep.subr.mxu1 %v206_v14 }
  0x2a   : > { %491 = vmatpush3.msra.mxu0 %v206_v14  ;;  %536 = vmatpush3.msra.mxu1 %v206_v14 }
  0x2b   : > { %492 = vmatprep.subr.mxu0 %v205_v15  ;;  %521 = vmatprep.subr.mxu1 %v205_v15 }
  0x2c   : > { %493 = vmatpush3.msra.mxu0 %v205_v15  ;;  %537 = vmatpush3.msra.mxu1 %v205_v15 }
  0x2d   : > { %494 = vmatprep.mubr.f32.mxu0 %v197_v16  ;;  %500 = vmatprep.mubr.f32.mxu1 %v201_v17 }
  0x2e   : > { %495 = vmatmul.mubr.f32.vlgmr.msra.gmra.mxu0 %v198_v18  ;;  %501 = vmatmul.mubr.f32.vlgmr.msra.gmra.mxu1 %v202_v19 }
  0x2f   : > { %497 = vmatprep.mubr.f32.mxu0 %v199_v20  ;;  %503 = vmatprep.mubr.f32.mxu1 %v203_v21 }
  0x32   : > { %498 = vmatmul.mubr.f32.gmra.mxu0 %v200_v22  ;;  %504 = vmatmul.mubr.f32.gmra.mxu1 %v204_v23 }
  0xee   : > { %v496_v25 = vpop.f32.mrf.mxu0  ;;  %v502_v26 = vpop.f32.mrf.mxu1 }
  0xef   : > { %v300_v27 = vadd.f32 %v496_v25, %v433_v24  ;;  %v320_v28 = vadd.f32 %v502_v26, %v433_v24 }
  0xf0   : > { %v294_v29 = vpop.f32.mrf.mxu0  ;;  %v314_v30 = vpop.f32.mrf.mxu1 }
  0xf1   : > { %334 = vst [vmem:[%s192_s6 + $0x8] sm:$0xff] %v300_v27  ;;  %338 = vst [vmem:[%s192_s6 + $0x28] sm:$0xff] %v320_v28  ;;  %v295_v31 = vadd.f32 %v433_v24, %v294_v29  ;;  %v315_v32 = vadd.f32 %v433_v24, %v314_v30 }
  0xf2   : > { %v499_v33 = vpop.f32.mrf.mxu0  ;;  %v505_v34 = vpop.f32.mrf.mxu1 }
  0xf3   : > { %333 = vst [vmem:[%s192_s6] sm:$0xff] %v295_v31  ;;  %337 = vst [vmem:[%s192_s6 + $0x20] sm:$0xff] %v315_v32  ;;  %v310_v35 = vadd.f32 %v499_v33, %v433_v24  ;;  %v330_v36 = vadd.f32 %v505_v34, %v433_v24 }
  0xf4   : > { %v304_v37 = vpop.f32.mrf.mxu0  ;;  %v324_v38 = vpop.f32.mrf.mxu1 }
  0xf5   : > { %336 = vst [vmem:[%s192_s6 + $0x18] sm:$0xff] %v310_v35  ;;  %340 = vst [vmem:[%s192_s6 + $0x38] sm:$0xff] %v330_v36  ;;  %v305_v39 = vadd.f32 %v433_v24, %v304_v37  ;;  %v325_v40 = vadd.f32 %v433_v24, %v324_v38 }
  0xf7   : > { %335 = vst [vmem:[%s192_s6 + $0x10] sm:$0xff] %v305_v39  ;;  %339 = vst [vmem:[%s192_s6 + $0x30] sm:$0xff] %v325_v40 }
  0xf8 PF: > { %s13_s14 = sadd.s32 1, %s584_s14   ;;  %s705_s12 = smov %s580_s13 }
  0xf9   : > { %p10_p5 = scmp.ge.s32.totalorder %s13_s14, 4   ;;  %s706_s13 = smov %s708_s15 }
  0xfb   :  { %12 = sbr.rel (!%p10_p5) target bundleno = 2 (0x2), region = 63 }

// kernel: basic_block_forward.3
= control target key start
LH: loop header
LB: loop body
LE: loop exit
PB: predicated region body
PF: predicated region fallthrough
CT: control target
= control target key end

     0   :  { %s2479_s12 = smov 0   ;;  %s2481_s13 = smov 0   ;;  %s3110_s0 = inlined_call_operand.vmem [shape: f32[8,9,9,128], index: 0, kind: input, shape index: {}]   ;;  %s3111_s1 = inlined_call_operand.vmem [shape: f32[9,128,128], index: 1, kind: input, shape index: {}]   ;;  %s3112_s2 = inlined_call_operand.vmem [shape: f32[1,128], index: 2, kind: input, shape index: {}]   ;;  %s3113_s3 = inlined_call_operand.vmem [shape: f32[2,8,8,128], index: 3, kind: output, shape index: {}]  }
   0x1   :  { %s2483_s14 = smov 0  }
   0x2 LB: > { %s25_s15 = sadd.s32 1, %s2453_s13  ;;  %p1573_p0 = scmp.ge.s32.totalorder %s2457_s14, 1  ;;  %s2457_s14 = sphi %s2483_s14, %s13_s14   ;;  %s2453_s13 = sphi %s2481_s13, %s3125_s13   ;;  %s2449_s12 = sphi %s2479_s12, %s3124_s12  }
   0x3   : > { %p27_p1 = scmp.ge.s32.totalorder %s25_s15, 2  ;;  %p153_p2 = scmp.lt.s32.totalorder %s2457_s14, 3 }
   0x5   : > { %s3127_s15 = smov (%p27_p1, %s25_s15), 0  ;;  %p154_p3 = pnand %p1573_p0, %p153_p2 }
   0x7   : > { %157 = sbr.rel (%p154_p3) target bundleno = 413 (0x19d), region = 32 }
   0xc   : > { %v1601_v0 = vld [vmem:[%s3111_s1 + $0xf8] sm:$0xff]  ;;  %v1600_v2 = vld [vmem:[%s3111_s1 + $0xf0] sm:$0xff]  ;;  %v1599_v4 = vld [vmem:[%s3111_s1 + $0xe8] sm:$0xff]  ;;  %s1574_s21 = sshll.u32 %s2449_s12, 2  ;;  %p190_p5 = scmp.lt.s32.totalorder %s2449_s12, 1 }
   0xd   : > { %v225_v1 = vld [vmem:[%s3111_s1 + $0x78] sm:$0xff]  ;;  %1982 = vmatprep.subr.mxu0 %v1601_v0  ;;  %v224_v3 = vld [vmem:[%s3111_s1 + $0x70] sm:$0xff]  ;;  %v223_v5 = vld [vmem:[%s3111_s1 + $0x68] sm:$0xff]  ;;  %p183_p4 = scmp.lt.s32.totalorder %s1574_s21, 7 }
   0xe   : > { %2026 = vmatprep.subr.mxu1 %v225_v1  ;;  %1983 = vmatpush3.msra.mxu0 %v1601_v0  ;;  %v1598_v6 = vld [vmem:[%s3111_s1 + $0xe0] sm:$0xff]  ;;  %v1597_v8 = vld [vmem:[%s3111_s1 + $0xd8] sm:$0xff]  ;;  %v1596_v10 = vld [vmem:[%s3111_s1 + $0xd0] sm:$0xff]  ;;  %s3131_s12 = smov (!%p190_p5, %s2449_s12), 1 }
   0xf   : > { %2027 = vmatpush3.msra.mxu1 %v225_v1  ;;  %1984 = vmatprep.subr.mxu0 %v1600_v2  ;;  %v222_v7 = vld [vmem:[%s3111_s1 + $0x60] sm:$0xff]  ;;  %v221_v9 = vld [vmem:[%s3111_s1 + $0x58] sm:$0xff]  ;;  %v220_v11 = vld [vmem:[%s3111_s1 + $0x50] sm:$0xff]  ;;  %s3129_s21 = smov (!%p183_p4, %s1574_s21), 7  ;;  %s1765_s22 = sshll.u32 %s3131_s12, 6 }
  0x10   : > { %2028 = vmatprep.subr.mxu1 %v224_v3  ;;  %1985 = vmatpush3.msra.mxu0 %v1600_v2  ;;  %v1595_v12 = vld [vmem:[%s3111_s1 + $0xc8] sm:$0xff]  ;;  %v1594_v14 = vld [vmem:[%s3111_s1 + $0xc0] sm:$0xff]  ;;  %v1593_v16 = vld [vmem:[%s3111_s1 + $0xb8] sm:$0xff]  ;;  %s2410_s24 = smul.u32 144, %s3129_s21  ;;  %s197_s25 = scalar_lea.vmem %s3113_s3, %s1765_s22 }
  0x11   : > { %2029 = vmatpush3.msra.mxu1 %v224_v3  ;;  %1986 = vmatprep.subr.mxu0 %v1599_v4  ;;  %v219_v13 = vld [vmem:[%s3111_s1 + $0x48] sm:$0xff]  ;;  %v218_v15 = vld [vmem:[%s3111_s1 + $0x40] sm:$0xff]  ;;  %v217_v17 = vld [vmem:[%s3111_s1 + $0x38] sm:$0xff] }
  0x12   : > { %2030 = vmatprep.subr.mxu1 %v223_v5  ;;  %1987 = vmatpush3.msra.mxu0 %v1599_v4  ;;  %v1592_v18 = vld [vmem:[%s3111_s1 + $0xb0] sm:$0xff]  ;;  %v1591_v20 = vld [vmem:[%s3111_s1 + $0xa8] sm:$0xff]  ;;  %v1590_v22 = vld [vmem:[%s3111_s1 + $0xa0] sm:$0xff]  ;;  %s2593_s7 = scalar_lea.vmem %s3110_s0, %s2410_s24 }
  0x13   : > { %2031 = vmatpush3.msra.mxu1 %v223_v5  ;;  %1988 = vmatprep.subr.mxu0 %v1598_v6  ;;  %v216_v19 = vld [vmem:[%s3111_s1 + $0x30] sm:$0xff]  ;;  %v215_v21 = vld [vmem:[%s3111_s1 + $0x28] sm:$0xff]  ;;  %v214_v23 = vld [vmem:[%s3111_s1 + $0x20] sm:$0xff] }
  0x14   : > { %2032 = vmatprep.subr.mxu1 %v222_v7  ;;  %1989 = vmatpush3.msra.mxu0 %v1598_v6  ;;  %v1589_v24 = vld [vmem:[%s3111_s1 + $0x98] sm:$0xff]  ;;  %v1588_v26 = vld [vmem:[%s3111_s1 + $0x90] sm:$0xff]  ;;  %v1587_v28 = vld [vmem:[%s3111_s1 + $0x88] sm:$0xff] }
  0x15   : > { %2033 = vmatpush3.msra.mxu1 %v222_v7  ;;  %1990 = vmatprep.subr.mxu0 %v1597_v8  ;;  %v213_v25 = vld [vmem:[%s3111_s1 + $0x18] sm:$0xff]  ;;  %v212_v27 = vld [vmem:[%s3111_s1 + $0x10] sm:$0xff]  ;;  %v211_v29 = vld [vmem:[%s3111_s1 + $0x8] sm:$0xff] }
  0x16   : > { %2034 = vmatprep.subr.mxu1 %v221_v9  ;;  %1991 = vmatpush3.msra.mxu0 %v1597_v8  ;;  %v1586_v30 = vld [vmem:[%s3111_s1 + $0x80] sm:$0xff]  ;;  %v1578_v32 = vld [vmem:[%s2593_s7 + $0x90] sm:$0xff]  ;;  %v1617_v36 = vld [vmem:[%s3111_s1 + $0x178] sm:$0xff] }
  0x17   : > { %2035 = vmatpush3.msra.mxu1 %v221_v9  ;;  %1992 = vmatprep.subr.mxu0 %v1596_v10  ;;  %v210_v31 = vld [vmem:[%s3111_s1] sm:$0xff]  ;;  %v2607_v35 = vld [vmem:[%s2593_s7 + $0x10] sm:$0xff]  ;;  %v1641_v37 = vld [vmem:[%s3111_s1 + $0x1f8] sm:$0xff] }
  0x18   : > { %2036 = vmatprep.subr.mxu1 %v220_v11  ;;  %1993 = vmatpush3.msra.mxu0 %v1596_v10  ;;  %v202_v33 = vld [vmem:[%s2593_s7] sm:$0xff]  ;;  %v1616_v38 = vld [vmem:[%s3111_s1 + $0x170] sm:$0xff]  ;;  %v1615_v40 = vld [vmem:[%s3111_s1 + $0x168] sm:$0xff] }
  0x19   : > { %2037 = vmatpush3.msra.mxu1 %v220_v11  ;;  %1994 = vmatprep.subr.mxu0 %v1595_v12  ;;  %v2604_v34 = vld [vmem:[%s2593_s7 + $0xa0] sm:$0xff]  ;;  %v1640_v39 = vld [vmem:[%s3111_s1 + $0x1f0] sm:$0xff]  ;;  %v1639_v41 = vld [vmem:[%s3111_s1 + $0x1e8] sm:$0xff] }
  0x1a   : > { %2038 = vmatprep.subr.mxu1 %v219_v13  ;;  %1995 = vmatpush3.msra.mxu0 %v1595_v12  ;;  %v1614_v42 = vld [vmem:[%s3111_s1 + $0x160] sm:$0xff]  ;;  %v1613_v44 = vld [vmem:[%s3111_s1 + $0x158] sm:$0xff]  ;;  %v1612_v46 = vld [vmem:[%s3111_s1 + $0x150] sm:$0xff] }
  0x1b   : > { %2039 = vmatpush3.msra.mxu1 %v219_v13  ;;  %1996 = vmatprep.subr.mxu0 %v1594_v14  ;;  %v1638_v43 = vld [vmem:[%s3111_s1 + $0x1e0] sm:$0xff]  ;;  %v1637_v45 = vld [vmem:[%s3111_s1 + $0x1d8] sm:$0xff]  ;;  %v1636_v47 = vld [vmem:[%s3111_s1 + $0x1d0] sm:$0xff] }
  0x1c   : > { %2040 = vmatprep.subr.mxu1 %v218_v15  ;;  %1997 = vmatpush3.msra.mxu0 %v1594_v14  ;;  %v1611_v48 = vld [vmem:[%s3111_s1 + $0x148] sm:$0xff]  ;;  %v1610_v50 = vld [vmem:[%s3111_s1 + $0x140] sm:$0xff]  ;;  %v1609_v52 = vld [vmem:[%s3111_s1 + $0x138] sm:$0xff] }
  0x1d   : > { %2041 = vmatpush3.msra.mxu1 %v218_v15  ;;  %1998 = vmatprep.subr.mxu0 %v1593_v16  ;;  %v1635_v49 = vld [vmem:[%s3111_s1 + $0x1c8] sm:$0xff]  ;;  %v1634_v51 = vld [vmem:[%s3111_s1 + $0x1c0] sm:$0xff]  ;;  %v1633_v53 = vld [vmem:[%s3111_s1 + $0x1b8] sm:$0xff] }
  0x1e   : > { %2042 = vmatprep.subr.mxu1 %v217_v17  ;;  %1999 = vmatpush3.msra.mxu0 %v1593_v16  ;;  %v2666_v54 = vld [vmem:[%s2593_s7 + $0xb0] sm:$0xff]  ;;  %v2669_v55 = vld [vmem:[%s2593_s7 + $0x20] sm:$0xff]  ;;  %v1607_v60 = vld [vmem:[%s3111_s1 + $0x128] sm:$0xff] }
  0x1f   : > { %2043 = vmatpush3.msra.mxu1 %v217_v17  ;;  %2000 = vmatprep.subr.mxu0 %v1592_v18  ;;  %v1608_v56 = vld [vmem:[%s3111_s1 + $0x130] sm:$0xff]  ;;  %v2678_v58 = vld [vmem:[%s2593_s7 + $0xc0] sm:$0xff]  ;;  %v1631_v61 = vld [vmem:[%s3111_s1 + $0x1a8] sm:$0xff] }
  0x20   : > { %2044 = vmatprep.subr.mxu1 %v216_v19  ;;  %2001 = vmatpush3.msra.mxu0 %v1592_v18  ;;  %v1632_v57 = vld [vmem:[%s3111_s1 + $0x1b0] sm:$0xff]  ;;  %v2697_v63 = vld [vmem:[%s2593_s7 + $0x40] sm:$0xff]  ;;  %v1605_v4 = vld [vmem:[%s3111_s1 + $0x118] sm:$0xff] }
  0x21   : > { %2045 = vmatpush3.msra.mxu1 %v216_v19  ;;  %2002 = vmatprep.subr.mxu0 %v1591_v20  ;;  %v2681_v59 = vld [vmem:[%s2593_s7 + $0x30] sm:$0xff]  ;;  %v1606_v0 = vld [vmem:[%s3111_s1 + $0x120] sm:$0xff]  ;;  %v1629_v5 = vld [vmem:[%s3111_s1 + $0x198] sm:$0xff] }
  0x22   : > { %2046 = vmatprep.subr.mxu1 %v215_v21  ;;  %2003 = vmatpush3.msra.mxu0 %v1591_v20  ;;  %v2694_v62 = vld [vmem:[%s2593_s7 + $0xd0] sm:$0xff]  ;;  %v1630_v1 = vld [vmem:[%s3111_s1 + $0x1a0] sm:$0xff]  ;;  %v1603_v12 = vld [vmem:[%s3111_s1 + $0x108] sm:$0xff] }
  0x23   : > { %2047 = vmatpush3.msra.mxu1 %v215_v21  ;;  %2004 = vmatprep.subr.mxu0 %v1590_v22  ;;  %v2706_v2 = vld [vmem:[%s2593_s7 + $0xe0] sm:$0xff]  ;;  %v2709_v3 = vld [vmem:[%s2593_s7 + $0x50] sm:$0xff]  ;;  %v1627_v13 = vld [vmem:[%s3111_s1 + $0x188] sm:$0xff] }
  0x24   : > { %2048 = vmatprep.subr.mxu1 %v214_v23  ;;  %2005 = vmatpush3.msra.mxu0 %v1590_v22  ;;  %v2722_v6 = vld [vmem:[%s2593_s7 + $0xf0] sm:$0xff]  ;;  %v2725_v7 = vld [vmem:[%s2593_s7 + $0x60] sm:$0xff]  ;;  %v1665_v20 = vld [vmem:[%s3111_s1 + $0x278] sm:$0xff] }
  0x25   : > { %2049 = vmatpush3.msra.mxu1 %v214_v23  ;;  %2006 = vmatprep.subr.mxu0 %v1589_v24  ;;  %v1604_v8 = vld [vmem:[%s3111_s1 + $0x110] sm:$0xff]  ;;  %v2734_v10 = vld [vmem:[%s2593_s7 + $0x100] sm:$0xff]  ;;  %v1689_v21 = vld [vmem:[%s3111_s1 + $0x2f8] sm:$0xff] }
  0x26   : > { %2050 = vmatprep.subr.mxu1 %v213_v25  ;;  %2007 = vmatpush3.msra.mxu0 %v1589_v24  ;;  %v1628_v9 = vld [vmem:[%s3111_s1 + $0x190] sm:$0xff]  ;;  %v1602_v14 = vld [vmem:[%s3111_s1 + $0x100] sm:$0xff] }
  0x27   : > { %2051 = vmatpush3.msra.mxu1 %v213_v25  ;;  %2008 = vmatprep.subr.mxu0 %v1588_v26  ;;  %v2737_v11 = vld [vmem:[%s2593_s7 + $0x70] sm:$0xff]  ;;  %v1626_v15 = vld [vmem:[%s3111_s1 + $0x180] sm:$0xff] }
  0x28   : > { %2052 = vmatprep.subr.mxu1 %v212_v27  ;;  %2009 = vmatpush3.msra.mxu0 %v1588_v26  ;;  %v463_v16 = vld [vmem:[%s2593_s7 + $0x1] sm:$0xff]  ;;  %v2758_v18 = vld [vmem:[%s2593_s7 + $0x11] sm:$0xff] }
  0x29   : > { %2053 = vmatpush3.msra.mxu1 %v212_v27  ;;  %2010 = vmatprep.subr.mxu0 %v1587_v28  ;;  %v1618_v17 = vld [vmem:[%s2593_s7 + $0x120] sm:$0xff]  ;;  %v1619_v19 = vld [vmem:[%s2593_s7 + $0x130] sm:$0xff]  ;;  %v1663_v26 = vld [vmem:[%s3111_s1 + $0x268] sm:$0xff] }
  0x2a   : > { %2054 = vmatprep.subr.mxu1 %v211_v29  ;;  %2011 = vmatpush3.msra.mxu0 %v1587_v28  ;;  %v1664_v22 = vld [vmem:[%s3111_s1 + $0x270] sm:$0xff]  ;;  %v2775_v24 = vld [vmem:[%s2593_s7 + $0x21] sm:$0xff] }
  0x2b   : > { %2055 = vmatpush3.msra.mxu1 %v211_v29  ;;  %2012 = vmatprep.subr.mxu0 %v1586_v30  ;;  %v1688_v23 = vld [vmem:[%s3111_s1 + $0x2f0] sm:$0xff]  ;;  %v1687_v27 = vld [vmem:[%s3111_s1 + $0x2e8] sm:$0xff]  ;;  %v1620_v28 = vld [vmem:[%s2593_s7 + $0x140] sm:$0xff] }
  0x2c   : > { %2056 = vmatprep.subr.mxu1 %v210_v31  ;;  %2013 = vmatpush3.msra.mxu0 %v1586_v30  ;;  %v2778_v25 = vld [vmem:[%s2593_s7 + $0x31] sm:$0xff]  ;;  %v1662_v29 = vld [vmem:[%s3111_s1 + $0x260] sm:$0xff] }
  0x2d   : > { %2014 = vmatprep.mubr.f32.mxu0 %v1578_v32  ;;  %2057 = vmatpush3.msra.mxu1 %v210_v31  ;;  %v1621_v30 = vld [vmem:[%s2593_s7 + $0x150] sm:$0xff]  ;;  %v1686_v31 = vld [vmem:[%s3111_s1 + $0x2e0] sm:$0xff] }
  0x2e   : > { %2058 = vmatprep.mubr.f32.mxu1 %v202_v33  ;;  %2015 = vmatmul.mubr.f32.vlgmr.msra.gmra.mxu0 %v2604_v34  ;;  %v2797_v32 = vld [vmem:[%s2593_s7 + $0x41] sm:$0xff]  ;;  %v2800_v33 = vld [vmem:[%s2593_s7 + $0x51] sm:$0xff] }
  0x2f   : > { %2059 = vmatmul.mubr.f32.vlgmr.msra.gmra.mxu1 %v2607_v35  ;;  %2070 = vmatprep.subr.mxu0 %v1617_v36 }
  0x30   : > { %2114 = vmatprep.subr.mxu1 %v1641_v37  ;;  %2071 = vmatpush3.msra.mxu0 %v1617_v36  ;;  %v1661_v36 = vld [vmem:[%s3111_s1 + $0x258] sm:$0xff] }
  0x31   : > { %2115 = vmatpush3.msra.mxu1 %v1641_v37  ;;  %2072 = vmatprep.subr.mxu0 %v1616_v38  ;;  %v1685_v37 = vld [vmem:[%s3111_s1 + $0x2d8] sm:$0xff] }
  0x32   : > { %2116 = vmatprep.subr.mxu1 %v1640_v39  ;;  %2073 = vmatpush3.msra.mxu0 %v1616_v38  ;;  %v1622_v38 = vld [vmem:[%s2593_s7 + $0x160] sm:$0xff] }
  0x33   : > { %2117 = vmatpush3.msra.mxu1 %v1640_v39  ;;  %2074 = vmatprep.subr.mxu0 %v1615_v40  ;;  %v1660_v39 = vld [vmem:[%s3111_s1 + $0x250] sm:$0xff] }
  0x34   : > { %2118 = vmatprep.subr.mxu1 %v1639_v41  ;;  %2075 = vmatpush3.msra.mxu0 %v1615_v40  ;;  %v1623_v40 = vld [vmem:[%s2593_s7 + $0x170] sm:$0xff] }
  0x35   : > { %2119 = vmatpush3.msra.mxu1 %v1639_v41  ;;  %2076 = vmatprep.subr.mxu0 %v1614_v42  ;;  %v1684_v41 = vld [vmem:[%s3111_s1 + $0x2d0] sm:$0xff] }
  0x36   : > { %2120 = vmatprep.subr.mxu1 %v1638_v43  ;;  %2077 = vmatpush3.msra.mxu0 %v1614_v42  ;;  %v2819_v42 = vld [vmem:[%s2593_s7 + $0x61] sm:$0xff] }
  0x37   : > { %2121 = vmatpush3.msra.mxu1 %v1638_v43  ;;  %2078 = vmatprep.subr.mxu0 %v1613_v44  ;;  %v2822_v43 = vld [vmem:[%s2593_s7 + $0x71] sm:$0xff] }
  0x38   : > { %2122 = vmatprep.subr.mxu1 %v1637_v45  ;;  %2079 = vmatpush3.msra.mxu0 %v1613_v44  ;;  %v1659_v44 = vld [vmem:[%s3111_s1 + $0x248] sm:$0xff] }
  0x39   : > { %2123 = vmatpush3.msra.mxu1 %v1637_v45  ;;  %2080 = vmatprep.subr.mxu0 %v1612_v46  ;;  %v1683_v45 = vld [vmem:[%s3111_s1 + $0x2c8] sm:$0xff] }
  0x3a   : > { %2124 = vmatprep.subr.mxu1 %v1636_v47  ;;  %2081 = vmatpush3.msra.mxu0 %v1612_v46  ;;  %v1624_v46 = vld [vmem:[%s2593_s7 + $0x180] sm:$0xff] }
  0x3b   : > { %2125 = vmatpush3.msra.mxu1 %v1636_v47  ;;  %2082 = vmatprep.subr.mxu0 %v1611_v48  ;;  %v1658_v47 = vld [vmem:[%s3111_s1 + $0x240] sm:$0xff] }
  0x3c   : > { %2126 = vmatprep.subr.mxu1 %v1635_v49  ;;  %2083 = vmatpush3.msra.mxu0 %v1611_v48  ;;  %v1625_v48 = vld [vmem:[%s2593_s7 + $0x190] sm:$0xff] }
  0x3d   : > { %2127 = vmatpush3.msra.mxu1 %v1635_v49  ;;  %2084 = vmatprep.subr.mxu0 %v1610_v50  ;;  %v1682_v49 = vld [vmem:[%s3111_s1 + $0x2c0] sm:$0xff] }
  0x3e   : > { %2128 = vmatprep.subr.mxu1 %v1634_v51  ;;  %2085 = vmatpush3.msra.mxu0 %v1610_v50  ;;  %v1657_v50 = vld [vmem:[%s3111_s1 + $0x238] sm:$0xff] }
  0x3f   : > { %2129 = vmatpush3.msra.mxu1 %v1634_v51  ;;  %2086 = vmatprep.subr.mxu0 %v1609_v52  ;;  %v1681_v51 = vld [vmem:[%s3111_s1 + $0x2b8] sm:$0xff] }
  0x40   : > { %2130 = vmatprep.subr.mxu1 %v1633_v53  ;;  %2087 = vmatpush3.msra.mxu0 %v1609_v52  ;;  %v1656_v52 = vld [vmem:[%s3111_s1 + $0x230] sm:$0xff] }
  0x41   : > { %2131 = vmatpush3.msra.mxu1 %v1633_v53  ;;  %2017 = vmatprep.mubr.f32.mxu0 %v2666_v54  ;;  %v1680_v53 = vld [vmem:[%s3111_s1 + $0x2b0] sm:$0xff] }
  0x42   : > { %2061 = vmatprep.mubr.f32.mxu1 %v2669_v55  ;;  %2088 = vmatprep.subr.mxu0 %v1608_v56 }
  0x43   : > { %2132 = vmatprep.subr.mxu1 %v1632_v57  ;;  %2018 = vmatmul.mubr.f32.gmra.mxu0 %v2678_v58 }
  0x44   : > { %2062 = vmatmul.mubr.f32.gmra.mxu1 %v2681_v59  ;;  %2089 = vmatpush3.msra.mxu0 %v1608_v56  ;;  %v1655_v56 = vld [vmem:[%s3111_s1 + $0x228] sm:$0xff] }
  0x45   : > { %2133 = vmatpush3.msra.mxu1 %v1632_v57  ;;  %2090 = vmatprep.subr.mxu0 %v1607_v60  ;;  %v1679_v57 = vld [vmem:[%s3111_s1 + $0x2a8] sm:$0xff] }
  0x46   : > { %2134 = vmatprep.subr.mxu1 %v1631_v61  ;;  %2091 = vmatpush3.msra.mxu0 %v1607_v60  ;;  %v1654_v60 = vld [vmem:[%s3111_s1 + $0x220] sm:$0xff] }
  0x47   : > { %2135 = vmatpush3.msra.mxu1 %v1631_v61  ;;  %2020 = vmatprep.mubr.f32.mxu0 %v2694_v62  ;;  %v1678_v61 = vld [vmem:[%s3111_s1 + $0x2a0] sm:$0xff] }
  0x48   : > { %2064 = vmatprep.mubr.f32.mxu1 %v2697_v63  ;;  %2092 = vmatprep.subr.mxu0 %v1606_v0 }
  0x49   : > { %2136 = vmatprep.subr.mxu1 %v1630_v1  ;;  %2021 = vmatmul.mubr.f32.gmra.mxu0 %v2706_v2 }
  0x4a   : > { %2065 = vmatmul.mubr.f32.gmra.mxu1 %v2709_v3  ;;  %2093 = vmatpush3.msra.mxu0 %v1606_v0  ;;  %v1653_v0 = vld [vmem:[%s3111_s1 + $0x218] sm:$0xff] }
  0x4b   : > { %2137 = vmatpush3.msra.mxu1 %v1630_v1  ;;  %2094 = vmatprep.subr.mxu0 %v1605_v4  ;;  %v1677_v1 = vld [vmem:[%s3111_s1 + $0x298] sm:$0xff] }
  0x4c   : > { %2138 = vmatprep.subr.mxu1 %v1629_v5  ;;  %2095 = vmatpush3.msra.mxu0 %v1605_v4  ;;  %v1652_v4 = vld [vmem:[%s3111_s1 + $0x210] sm:$0xff] }
  0x4d   : > { %2139 = vmatpush3.msra.mxu1 %v1629_v5  ;;  %2023 = vmatprep.mubr.f32.mxu0 %v2722_v6  ;;  %v1676_v5 = vld [vmem:[%s3111_s1 + $0x290] sm:$0xff] }
  0x4e   : > { %2067 = vmatprep.mubr.f32.mxu1 %v2725_v7  ;;  %2096 = vmatprep.subr.mxu0 %v1604_v8 }
  0x4f   : > { %2140 = vmatprep.subr.mxu1 %v1628_v9  ;;  %2024 = vmatmul.mubr.f32.gmra.mxu0 %v2734_v10 }
  0x50   : > { %2068 = vmatmul.mubr.f32.gmra.mxu1 %v2737_v11  ;;  %2097 = vmatpush3.msra.mxu0 %v1604_v8  ;;  %v1651_v8 = vld [vmem:[%s3111_s1 + $0x208] sm:$0xff] }
  0x51   : > { %2141 = vmatpush3.msra.mxu1 %v1628_v9  ;;  %2098 = vmatprep.subr.mxu0 %v1603_v12  ;;  %v1675_v9 = vld [vmem:[%s3111_s1 + $0x288] sm:$0xff] }
  0x52   : > { %2142 = vmatprep.subr.mxu1 %v1627_v13  ;;  %2099 = vmatpush3.msra.mxu0 %v1603_v12  ;;  %v1650_v12 = vld [vmem:[%s3111_s1 + $0x200] sm:$0xff] }
  0x53   : > { %2143 = vmatpush3.msra.mxu1 %v1627_v13  ;;  %2100 = vmatprep.subr.mxu0 %v1602_v14  ;;  %v1674_v13 = vld [vmem:[%s3111_s1 + $0x280] sm:$0xff] }
  0x54   : > { %2144 = vmatprep.subr.mxu1 %v1626_v15  ;;  %2101 = vmatpush3.msra.mxu0 %v1602_v14  ;;  %v1642_v14 = vld [vmem:[%s2593_s7 + $0x1b0] sm:$0xff] }
  0x55   : > { %2102 = vmatprep.mubr.f32.mxu0 %v463_v16  ;;  %2145 = vmatpush3.msra.mxu1 %v1626_v15  ;;  %v1666_v15 = vld [vmem:[%s2593_s7 + $0x121] sm:$0xff] }
  0x56   : > { %2146 = vmatprep.mubr.f32.mxu1 %v1618_v17  ;;  %2103 = vmatmul.mubr.f32.vlgmr.msra.gmra.mxu0 %v2758_v18  ;;  %v1643_v16 = vld [vmem:[%s2593_s7 + $0x1c0] sm:$0xff]  ;;  %v1667_v17 = vld [vmem:[%s2593_s7 + $0x131] sm:$0xff] }
  0x57   : > { %2147 = vmatmul.mubr.f32.vlgmr.msra.gmra.mxu1 %v1619_v19  ;;  %2158 = vmatprep.subr.mxu0 %v1665_v20  ;;  %v1713_v19 = vld [vmem:[%s3111_s1 + $0x378] sm:$0xff] }
  0x58   : > { %2202 = vmatprep.subr.mxu1 %v1689_v21  ;;  %2159 = vmatpush3.msra.mxu0 %v1665_v20  ;;  %v1737_v20 = vld [vmem:[%s3111_s1 + $0x3f8] sm:$0xff] }
  0x59   : > { %2203 = vmatpush3.msra.mxu1 %v1689_v21  ;;  %2160 = vmatprep.subr.mxu0 %v1664_v22  ;;  %v1712_v21 = vld [vmem:[%s3111_s1 + $0x370] sm:$0xff] }
  0x5a   : > { %2204 = vmatprep.subr.mxu1 %v1688_v23  ;;  %2105 = vmatprep.mubr.f32.mxu0 %v2775_v24 }
  0x5b   : > { %2161 = vmatpush3.msra.mxu0 %v1664_v22  ;;  %2205 = vmatpush3.msra.mxu1 %v1688_v23  ;;  %v1736_v22 = vld [vmem:[%s3111_s1 + $0x3f0] sm:$0xff] }
  0x5c   : > { %2106 = vmatmul.mubr.f32.gmra.mxu0 %v2778_v25  ;;  %2162 = vmatprep.subr.mxu0 %v1663_v26  ;;  %v1644_v23 = vld [vmem:[%s2593_s7 + $0x1d0] sm:$0xff] }
  0x5d   : > { %2206 = vmatprep.subr.mxu1 %v1687_v27  ;;  %2149 = vmatprep.mubr.f32.mxu1 %v1620_v28  ;;  %v1735_v28 = vld [vmem:[%s3111_s1 + $0x3e8] sm:$0xff] }
  0x5e   : > { %2163 = vmatpush3.msra.mxu0 %v1663_v26  ;;  %2207 = vmatpush3.msra.mxu1 %v1687_v27  ;;  %v1645_v26 = vld [vmem:[%s2593_s7 + $0x1e0] sm:$0xff]  ;;  %v1711_v27 = vld [vmem:[%s3111_s1 + $0x368] sm:$0xff] }
  0x5f   : > { %2164 = vmatprep.subr.mxu0 %v1662_v29  ;;  %2150 = vmatmul.mubr.f32.gmra.mxu1 %v1621_v30  ;;  %v1710_v30 = vld [vmem:[%s3111_s1 + $0x360] sm:$0xff] }
  0x60   : > { %2208 = vmatprep.subr.mxu1 %v1686_v31  ;;  %2108 = vmatprep.mubr.f32.mxu0 %v2797_v32 }
  0x61   : > { %2165 = vmatpush3.msra.mxu0 %v1662_v29  ;;  %2209 = vmatpush3.msra.mxu1 %v1686_v31  ;;  %v1668_v29 = vld [vmem:[%s2593_s7 + $0x141] sm:$0xff]  ;;  %v1669_v31 = vld [vmem:[%s2593_s7 + $0x151] sm:$0xff] }
  0x62   : > { %2109 = vmatmul.mubr.f32.gmra.mxu0 %v2800_v33  ;;  %2166 = vmatprep.subr.mxu0 %v1661_v36 }
  0x63   : > { %2210 = vmatprep.subr.mxu1 %v1685_v37  ;;  %2152 = vmatprep.mubr.f32.mxu1 %v1622_v38  ;;  %v1647_v38 = vld [vmem:[%s2593_s7 + $0x200] sm:$0xff] }
  0x64   : > { %2167 = vmatpush3.msra.mxu0 %v1661_v36  ;;  %2211 = vmatpush3.msra.mxu1 %v1685_v37  ;;  %v1734_v36 = vld [vmem:[%s3111_s1 + $0x3e0] sm:$0xff]  ;;  %v1646_v37 = vld [vmem:[%s2593_s7 + $0x1f0] sm:$0xff] }
  0x65   : > { %2168 = vmatprep.subr.mxu0 %v1660_v39  ;;  %2153 = vmatmul.mubr.f32.gmra.mxu1 %v1623_v40  ;;  %v1733_v40 = vld [vmem:[%s3111_s1 + $0x3d8] sm:$0xff] }
  0x66   : > { %2212 = vmatprep.subr.mxu1 %v1684_v41  ;;  %2111 = vmatprep.mubr.f32.mxu0 %v2819_v42 }
  0x67   : > { %2169 = vmatpush3.msra.mxu0 %v1660_v39  ;;  %2213 = vmatpush3.msra.mxu1 %v1684_v41  ;;  %v1709_v39 = vld [vmem:[%s3111_s1 + $0x358] sm:$0xff]  ;;  %v1670_v41 = vld [vmem:[%s2593_s7 + $0x161] sm:$0xff] }
  0x68   : > { %2112 = vmatmul.mubr.f32.gmra.mxu0 %v2822_v43  ;;  %2170 = vmatprep.subr.mxu0 %v1659_v44 }
  0x69   : > { %2214 = vmatprep.subr.mxu1 %v1683_v45  ;;  %2155 = vmatprep.mubr.f32.mxu1 %v1624_v46  ;;  %v1732_v46 = vld [vmem:[%s3111_s1 + $0x3d0] sm:$0xff] }
  0x6a   : > { %2171 = vmatpush3.msra.mxu0 %v1659_v44  ;;  %2215 = vmatpush3.msra.mxu1 %v1683_v45  ;;  %v1708_v44 = vld [vmem:[%s3111_s1 + $0x350] sm:$0xff] }
  0x6b   : > { %2172 = vmatprep.subr.mxu0 %v1658_v47  ;;  %2156 = vmatmul.mubr.f32.gmra.mxu1 %v1625_v48  ;;  %v1671_v45 = vld [vmem:[%s2593_s7 + $0x171] sm:$0xff]  ;;  %v1649_v48 = vld [vmem:[%s2593_s7 + $0x220] sm:$0xff] }
  0x6c   : > { %2216 = vmatprep.subr.mxu1 %v1682_v49  ;;  %2173 = vmatpush3.msra.mxu0 %v1658_v47  ;;  %v1648_v47 = vld [vmem:[%s2593_s7 + $0x210] sm:$0xff] }
  0x6d   : > { %2217 = vmatpush3.msra.mxu1 %v1682_v49  ;;  %2174 = vmatprep.subr.mxu0 %v1657_v50  ;;  %v1707_v49 = vld [vmem:[%s3111_s1 + $0x348] sm:$0xff] }
  0x6e   : > { %2218 = vmatprep.subr.mxu1 %v1681_v51  ;;  %2175 = vmatpush3.msra.mxu0 %v1657_v50  ;;  %v1731_v50 = vld [vmem:[%s3111_s1 + $0x3c8] sm:$0xff] }
  0x6f   : > { %2219 = vmatpush3.msra.mxu1 %v1681_v51  ;;  %2176 = vmatprep.subr.mxu0 %v1656_v52  ;;  %v1672_v51 = vld [vmem:[%s2593_s7 + $0x181] sm:$0xff] }
  0x70   : > { %2220 = vmatprep.subr.mxu1 %v1680_v53  ;;  %2177 = vmatpush3.msra.mxu0 %v1656_v52  ;;  %v1706_v52 = vld [vmem:[%s3111_s1 + $0x340] sm:$0xff] }
  0x71   : > { %2221 = vmatpush3.msra.mxu1 %v1680_v53  ;;  %2178 = vmatprep.subr.mxu0 %v1655_v56  ;;  %v1673_v53 = vld [vmem:[%s2593_s7 + $0x191] sm:$0xff] }
  0x72   : > { %2222 = vmatprep.subr.mxu1 %v1679_v57  ;;  %2179 = vmatpush3.msra.mxu0 %v1655_v56  ;;  %v1730_v56 = vld [vmem:[%s3111_s1 + $0x3c0] sm:$0xff] }
  0x73   : > { %2223 = vmatpush3.msra.mxu1 %v1679_v57  ;;  %2180 = vmatprep.subr.mxu0 %v1654_v60  ;;  %v1705_v57 = vld [vmem:[%s3111_s1 + $0x338] sm:$0xff] }
  0x74   : > { %2224 = vmatprep.subr.mxu1 %v1678_v61  ;;  %2181 = vmatpush3.msra.mxu0 %v1654_v60  ;;  %v1729_v60 = vld [vmem:[%s3111_s1 + $0x3b8] sm:$0xff] }
  0x75   : > { %2225 = vmatpush3.msra.mxu1 %v1678_v61  ;;  %2182 = vmatprep.subr.mxu0 %v1653_v0  ;;  %v1704_v61 = vld [vmem:[%s3111_s1 + $0x330] sm:$0xff] }
  0x76   : > { %2226 = vmatprep.subr.mxu1 %v1677_v1  ;;  %2183 = vmatpush3.msra.mxu0 %v1653_v0  ;;  %v1728_v0 = vld [vmem:[%s3111_s1 + $0x3b0] sm:$0xff] }
  0x77   : > { %2227 = vmatpush3.msra.mxu1 %v1677_v1  ;;  %2184 = vmatprep.subr.mxu0 %v1652_v4  ;;  %v1703_v1 = vld [vmem:[%s3111_s1 + $0x328] sm:$0xff] }
  0x78   : > { %2228 = vmatprep.subr.mxu1 %v1676_v5  ;;  %2185 = vmatpush3.msra.mxu0 %v1652_v4  ;;  %v1727_v4 = vld [vmem:[%s3111_s1 + $0x3a8] sm:$0xff] }
  0x79   : > { %2229 = vmatpush3.msra.mxu1 %v1676_v5  ;;  %2186 = vmatprep.subr.mxu0 %v1651_v8  ;;  %v1702_v5 = vld [vmem:[%s3111_s1 + $0x320] sm:$0xff] }
  0x7a   : > { %2230 = vmatprep.subr.mxu1 %v1675_v9  ;;  %2187 = vmatpush3.msra.mxu0 %v1651_v8  ;;  %v1726_v8 = vld [vmem:[%s3111_s1 + $0x3a0] sm:$0xff] }
  0x7b   : > { %2231 = vmatpush3.msra.mxu1 %v1675_v9  ;;  %2188 = vmatprep.subr.mxu0 %v1650_v12  ;;  %v1701_v9 = vld [vmem:[%s3111_s1 + $0x318] sm:$0xff] }
  0x7c   : > { %2232 = vmatprep.subr.mxu1 %v1674_v13  ;;  %2189 = vmatpush3.msra.mxu0 %v1650_v12  ;;  %v1725_v12 = vld [vmem:[%s3111_s1 + $0x398] sm:$0xff] }
  0x7d   : > { %2190 = vmatprep.mubr.f32.mxu0 %v1642_v14  ;;  %2233 = vmatpush3.msra.mxu1 %v1674_v13  ;;  %v1700_v13 = vld [vmem:[%s3111_s1 + $0x310] sm:$0xff] }
  0x7e   : > { %2234 = vmatprep.mubr.f32.mxu1 %v1666_v15  ;;  %2191 = vmatmul.mubr.f32.vlgmr.msra.gmra.mxu0 %v1643_v16  ;;  %v1724_v14 = vld [vmem:[%s3111_s1 + $0x390] sm:$0xff]  ;;  %v1699_v15 = vld [vmem:[%s3111_s1 + $0x308] sm:$0xff] }
  0x7f   : > { %2235 = vmatmul.mubr.f32.vlgmr.msra.gmra.mxu1 %v1667_v17  ;;  %2246 = vmatprep.subr.mxu0 %v1713_v19  ;;  %v1723_v16 = vld [vmem:[%s3111_s1 + $0x388] sm:$0xff]  ;;  %v1698_v17 = vld [vmem:[%s3111_s1 + $0x300] sm:$0xff] }
  0x80   : > { %2290 = vmatprep.subr.mxu1 %v1737_v20  ;;  %2247 = vmatpush3.msra.mxu0 %v1713_v19  ;;  %v1722_v19 = vld [vmem:[%s3111_s1 + $0x380] sm:$0xff] }
  0x81   : > { %2291 = vmatpush3.msra.mxu1 %v1737_v20  ;;  %2248 = vmatprep.subr.mxu0 %v1712_v21  ;;  %v1761_v20 = vld [vmem:[%s3111_s1 + $0x478] sm:$0xff] }
  0x82   : > { %2292 = vmatprep.subr.mxu1 %v1736_v22  ;;  %2193 = vmatprep.mubr.f32.mxu0 %v1644_v23  ;;  %v1746_v23 = vld [vmem:[%s3111_s1 + $0x400] sm:$0xff] }
  0x83   : > { %2249 = vmatpush3.msra.mxu0 %v1712_v21  ;;  %2293 = vmatpush3.msra.mxu1 %v1736_v22  ;;  %v1760_v21 = vld [vmem:[%s3111_s1 + $0x470] sm:$0xff]  ;;  %v1747_v22 = vld [vmem:[%s3111_s1 + $0x408] sm:$0xff] }
  0x84   : > { %2194 = vmatmul.mubr.f32.gmra.mxu0 %v1645_v26  ;;  %2250 = vmatprep.subr.mxu0 %v1711_v27  ;;  %v1745_v26 = vld [vmem:[%s2593_s7 + $0x81] sm:$0xff] }
  0x85   : > { %2294 = vmatprep.subr.mxu1 %v1735_v28  ;;  %2237 = vmatprep.mubr.f32.mxu1 %v1668_v29 }
  0x86   : > { %2251 = vmatpush3.msra.mxu0 %v1711_v27  ;;  %2295 = vmatpush3.msra.mxu1 %v1735_v28 }
  0x87   : > { %2252 = vmatprep.subr.mxu0 %v1710_v30  ;;  %2238 = vmatmul.mubr.f32.gmra.mxu1 %v1669_v31 }
  0x88   : > { %2296 = vmatprep.subr.mxu1 %v1734_v36  ;;  %2196 = vmatprep.mubr.f32.mxu0 %v1646_v37 }
  0x89   : > { %2253 = vmatpush3.msra.mxu0 %v1710_v30  ;;  %2297 = vmatpush3.msra.mxu1 %v1734_v36 }
  0x8a   : > { %2197 = vmatmul.mubr.f32.gmra.mxu0 %v1647_v38  ;;  %2254 = vmatprep.subr.mxu0 %v1709_v39 }
  0x8b   : > { %2298 = vmatprep.subr.mxu1 %v1733_v40  ;;  %2240 = vmatprep.mubr.f32.mxu1 %v1670_v41 }
  0x8c   : > { %2255 = vmatpush3.msra.mxu0 %v1709_v39  ;;  %2299 = vmatpush3.msra.mxu1 %v1733_v40 }
  0x8d   : > { %2256 = vmatprep.subr.mxu0 %v1708_v44  ;;  %2241 = vmatmul.mubr.f32.gmra.mxu1 %v1671_v45 }
  0x8e   : > { %2300 = vmatprep.subr.mxu1 %v1732_v46  ;;  %2199 = vmatprep.mubr.f32.mxu0 %v1648_v47 }
  0x8f   : > { %2257 = vmatpush3.msra.mxu0 %v1708_v44  ;;  %2301 = vmatpush3.msra.mxu1 %v1732_v46 }
  0x90   : > { %2200 = vmatmul.mubr.f32.gmra.mxu0 %v1649_v48  ;;  %2258 = vmatprep.subr.mxu0 %v1707_v49 }
  0x91   : > { %2302 = vmatprep.subr.mxu1 %v1731_v50  ;;  %2243 = vmatprep.mubr.f32.mxu1 %v1672_v51 }
  0x92   : > { %2259 = vmatpush3.msra.mxu0 %v1707_v49  ;;  %2303 = vmatpush3.msra.mxu1 %v1731_v50 }
  0x93   : > { %2260 = vmatprep.subr.mxu0 %v1706_v52  ;;  %2244 = vmatmul.mubr.f32.gmra.mxu1 %v1673_v53 }
  0x94   : > { %2304 = vmatprep.subr.mxu1 %v1730_v56  ;;  %2261 = vmatpush3.msra.mxu0 %v1706_v52 }
  0x95   : > { %2305 = vmatpush3.msra.mxu1 %v1730_v56  ;;  %2262 = vmatprep.subr.mxu0 %v1705_v57 }
  0x96   : > { %2306 = vmatprep.subr.mxu1 %v1729_v60  ;;  %2263 = vmatpush3.msra.mxu0 %v1705_v57 }
  0x97   : > { %2307 = vmatpush3.msra.mxu1 %v1729_v60  ;;  %2264 = vmatprep.subr.mxu0 %v1704_v61 }
  0x98   : > { %2308 = vmatprep.subr.mxu1 %v1728_v0  ;;  %2265 = vmatpush3.msra.mxu0 %v1704_v61 }
  0x99   : > { %2309 = vmatpush3.msra.mxu1 %v1728_v0  ;;  %2266 = vmatprep.subr.mxu0 %v1703_v1 }
  0x9a   : > { %2310 = vmatprep.subr.mxu1 %v1727_v4  ;;  %2267 = vmatpush3.msra.mxu0 %v1703_v1 }
  0x9b   : > { %2311 = vmatpush3.msra.mxu1 %v1727_v4  ;;  %2268 = vmatprep.subr.mxu0 %v1702_v5 }
  0x9c   : > { %2312 = vmatprep.subr.mxu1 %v1726_v8  ;;  %2269 = vmatpush3.msra.mxu0 %v1702_v5 }
  0x9d   : > { %2313 = vmatpush3.msra.mxu1 %v1726_v8  ;;  %2270 = vmatprep.subr.mxu0 %v1701_v9 }
  0x9e   : > { %2314 = vmatprep.subr.mxu1 %v1725_v12  ;;  %2271 = vmatpush3.msra.mxu0 %v1701_v9 }
  0x9f   : > { %2315 = vmatpush3.msra.mxu1 %v1725_v12  ;;  %2272 = vmatprep.subr.mxu0 %v1700_v13 }
  0xa0   : > { %2316 = vmatprep.subr.mxu1 %v1724_v14  ;;  %2273 = vmatpush3.msra.mxu0 %v1700_v13 }
  0xa1   : > { %2317 = vmatpush3.msra.mxu1 %v1724_v14  ;;  %2274 = vmatprep.subr.mxu0 %v1699_v15 }
  0xa2   : > { %2318 = vmatprep.subr.mxu1 %v1723_v16  ;;  %2275 = vmatpush3.msra.mxu0 %v1699_v15 }
  0xa3   : > { %2319 = vmatpush3.msra.mxu1 %v1723_v16  ;;  %2276 = vmatprep.subr.mxu0 %v1698_v17 }
  0xa4   : > { %2320 = vmatprep.subr.mxu1 %v1722_v19  ;;  %2277 = vmatpush3.msra.mxu0 %v1698_v17 }
  0xa5   : > { %2278 = vmatprep.mubr.f32.mxu0 %v2607_v35  ;;  %2321 = vmatpush3.msra.mxu1 %v1722_v19  ;;  %v1759_v35 = vld [vmem:[%s3111_s1 + $0x468] sm:$0xff] }
  0xa6   : > { %2322 = vmatprep.mubr.f32.mxu1 %v2604_v34  ;;  %2279 = vmatmul.mubr.f32.vlgmr.msra.gmra.mxu0 %v2669_v55  ;;  %v1758_v34 = vld [vmem:[%s3111_s1 + $0x460] sm:$0xff]  ;;  %v1756_v55 = vld [vmem:[%s3111_s1 + $0x450] sm:$0xff] }
  0xa7   : > { %2323 = vmatmul.mubr.f32.vlgmr.msra.gmra.mxu1 %v2666_v54  ;;  %2334 = vmatprep.subr.mxu0 %v1761_v20  ;;  %v1757_v54 = vld [vmem:[%s3111_s1 + $0x458] sm:$0xff] }
  0xa8   : > { %2378 = vmatprep.subr.mxu1 %v1761_v20  ;;  %2335 = vmatpush3.msra.mxu0 %v1761_v20 }
  0xa9   : > { %2394 = vmatpush3.msra.mxu1 %v1761_v20  ;;  %2336 = vmatprep.subr.mxu0 %v1760_v21 }
  0xaa   : > { %2379 = vmatprep.subr.mxu1 %v1760_v21  ;;  %2281 = vmatprep.mubr.f32.mxu0 %v2681_v59  ;;  %v1755_v59 = vld [vmem:[%s3111_s1 + $0x448] sm:$0xff] }
  0xab   : > { %2337 = vmatpush3.msra.mxu0 %v1760_v21  ;;  %2395 = vmatpush3.msra.mxu1 %v1760_v21 }
  0xac   : > { %2282 = vmatmul.mubr.f32.gmra.mxu0 %v2697_v63  ;;  %2338 = vmatprep.subr.mxu0 %v1759_v35  ;;  %v1721_v63 = vld [vmem:[%s2593_s7 + $0x110] sm:$0xff] }
  0xad   : > { %2380 = vmatprep.subr.mxu1 %v1759_v35  ;;  %2325 = vmatprep.mubr.f32.mxu1 %v2678_v58  ;;  %v1697_v58 = vld [vmem:[%s2593_s7 + $0x80] sm:$0xff] }
  0xae   : > { %2339 = vmatpush3.msra.mxu0 %v1759_v35  ;;  %2396 = vmatpush3.msra.mxu1 %v1759_v35 }
  0xaf   : > { %2340 = vmatprep.subr.mxu0 %v1758_v34  ;;  %2326 = vmatmul.mubr.f32.gmra.mxu1 %v2694_v62  ;;  %v1754_v62 = vld [vmem:[%s3111_s1 + $0x440] sm:$0xff] }
  0xb0   : > { %2381 = vmatprep.subr.mxu1 %v1758_v34  ;;  %2284 = vmatprep.mubr.f32.mxu0 %v2709_v3  ;;  %v1752_v3 = vld [vmem:[%s3111_s1 + $0x430] sm:$0xff] }
  0xb1   : > { %2341 = vmatpush3.msra.mxu0 %v1758_v34  ;;  %2397 = vmatpush3.msra.mxu1 %v1758_v34 }
  0xb2   : > { %2285 = vmatmul.mubr.f32.gmra.mxu0 %v2725_v7  ;;  %2342 = vmatprep.subr.mxu0 %v1757_v54  ;;  %v1750_v7 = vld [vmem:[%s3111_s1 + $0x420] sm:$0xff] }
  0xb3   : > { %2382 = vmatprep.subr.mxu1 %v1757_v54  ;;  %2328 = vmatprep.mubr.f32.mxu1 %v2706_v2  ;;  %v1753_v2 = vld [vmem:[%s3111_s1 + $0x438] sm:$0xff] }
  0xb4   : > { %2343 = vmatpush3.msra.mxu0 %v1757_v54  ;;  %2398 = vmatpush3.msra.mxu1 %v1757_v54 }
  0xb5   : > { %2344 = vmatprep.subr.mxu0 %v1756_v55  ;;  %2329 = vmatmul.mubr.f32.gmra.mxu1 %v2722_v6  ;;  %v1751_v6 = vld [vmem:[%s3111_s1 + $0x428] sm:$0xff] }
  0xb6   : > { %2383 = vmatprep.subr.mxu1 %v1756_v55  ;;  %2287 = vmatprep.mubr.f32.mxu0 %v2737_v11  ;;  %v1748_v11 = vld [vmem:[%s3111_s1 + $0x410] sm:$0xff] }
  0xb7   : > { %2345 = vmatpush3.msra.mxu0 %v1756_v55  ;;  %2399 = vmatpush3.msra.mxu1 %v1756_v55 }
  0xb8   : > { %2288 = vmatmul.mubr.f32.gmra.mxu0 %v1697_v58  ;;  %2346 = vmatprep.subr.mxu0 %v1755_v59 }
  0xb9   : > { %2384 = vmatprep.subr.mxu1 %v1755_v59  ;;  %2331 = vmatprep.mubr.f32.mxu1 %v2734_v10  ;;  %v1749_v10 = vld [vmem:[%s3111_s1 + $0x418] sm:$0xff] }
  0xba   : > { %2347 = vmatpush3.msra.mxu0 %v1755_v59  ;;  %2400 = vmatpush3.msra.mxu1 %v1755_v59 }
  0xbb   : > { %2348 = vmatprep.subr.mxu0 %v1754_v62  ;;  %2332 = vmatmul.mubr.f32.gmra.mxu1 %v1721_v63 }
  0xbc   : > { %2385 = vmatprep.subr.mxu1 %v1754_v62  ;;  %2349 = vmatpush3.msra.mxu0 %v1754_v62 }
  0xbd   : > { %2401 = vmatpush3.msra.mxu1 %v1754_v62  ;;  %2350 = vmatprep.subr.mxu0 %v1753_v2 }
  0xbe   : > { %2386 = vmatprep.subr.mxu1 %v1753_v2  ;;  %2351 = vmatpush3.msra.mxu0 %v1753_v2 }
  0xbf   : > { %2402 = vmatpush3.msra.mxu1 %v1753_v2  ;;  %2352 = vmatprep.subr.mxu0 %v1752_v3 }
  0xc0   : > { %2387 = vmatprep.subr.mxu1 %v1752_v3  ;;  %2353 = vmatpush3.msra.mxu0 %v1752_v3 }
  0xc1   : > { %2403 = vmatpush3.msra.mxu1 %v1752_v3  ;;  %2354 = vmatprep.subr.mxu0 %v1751_v6 }
  0xc2   : > { %2388 = vmatprep.subr.mxu1 %v1751_v6  ;;  %2355 = vmatpush3.msra.mxu0 %v1751_v6 }
  0xc3   : > { %2404 = vmatpush3.msra.mxu1 %v1751_v6  ;;  %2356 = vmatprep.subr.mxu0 %v1750_v7 }
  0xc4   : > { %2389 = vmatprep.subr.mxu1 %v1750_v7  ;;  %2357 = vmatpush3.msra.mxu0 %v1750_v7 }
  0xc5   : > { %2405 = vmatpush3.msra.mxu1 %v1750_v7  ;;  %2358 = vmatprep.subr.mxu0 %v1749_v10 }
  0xc6   : > { %2390 = vmatprep.subr.mxu1 %v1749_v10  ;;  %2359 = vmatpush3.msra.mxu0 %v1749_v10 }
  0xc7   : > { %2406 = vmatpush3.msra.mxu1 %v1749_v10  ;;  %2360 = vmatprep.subr.mxu0 %v1748_v11 }
  0xc8   : > { %2391 = vmatprep.subr.mxu1 %v1748_v11  ;;  %2361 = vmatpush3.msra.mxu0 %v1748_v11 }
  0xc9   : > { %2407 = vmatpush3.msra.mxu1 %v1748_v11  ;;  %2362 = vmatprep.subr.mxu0 %v1747_v22 }
  0xca   : > { %2392 = vmatprep.subr.mxu1 %v1747_v22  ;;  %2363 = vmatpush3.msra.mxu0 %v1747_v22 }
  0xcb   : > { %2408 = vmatpush3.msra.mxu1 %v1747_v22  ;;  %2364 = vmatprep.subr.mxu0 %v1746_v23 }
  0xcc   : > { %2393 = vmatprep.subr.mxu1 %v1746_v23  ;;  %2365 = vmatpush3.msra.mxu0 %v1746_v23 }
  0xcd   : > { %2409 = vmatpush3.msra.mxu1 %v1746_v23  ;;  %2366 = vmatprep.mubr.f32.mxu0 %v2758_v18 }
  0xce   : > { %2372 = vmatprep.mubr.f32.mxu1 %v2800_v33  ;;  %2367 = vmatmul.mubr.f32.vlgmr.msra.gmra.mxu0 %v2775_v24 }
  0xcf   : > { %2373 = vmatmul.mubr.f32.vlgmr.msra.gmra.mxu1 %v2819_v42  ;;  %2369 = vmatprep.mubr.f32.mxu0 %v2778_v25 }
  0xd0   : > { %2375 = vmatprep.mubr.f32.mxu1 %v2822_v43 }
  0xd2   : > { %2370 = vmatmul.mubr.f32.gmra.mxu0 %v2797_v32 }
  0xd3   : > { %2376 = vmatmul.mubr.f32.gmra.mxu1 %v1745_v26 }
  0xee   : > { %v2016_v27 = vpop.f32.mrf.mxu0 }
  0xef   : > { %v2060_v30 = vpop.f32.mrf.mxu1 }
  0xf0   : > { %v319_v28 = vpop.f32.mrf.mxu0  ;;  %v430_v63 = vadd.f32 %v2060_v30, %v2016_v27 }
  0xf1   : > { %v424_v31 = vpop.f32.mrf.mxu1 }
  0xf2   : > { %v425_v7 = vadd.f32 %v424_v31, %v319_v28 }
 0x103   : > { %v3072_v29 = vpop.f32.mrf.mxu0 }
 0x104   : > { %v2063_v33 = vpop.f32.mrf.mxu1 }
 0x105   : > { %v329_v18 = vpop.f32.mrf.mxu0 }
 0x106   : > { %v434_v24 = vpop.f32.mrf.mxu1 }
 0x109   : > { %v2022_v36 = vpop.f32.mrf.mxu0 }
 0x10a   : > { %v2066_v42 = vpop.f32.mrf.mxu1 }
 0x10b   : > { %v339_v37 = vpop.f32.mrf.mxu0  ;;  %v450_v2 = vadd.f32 %v2066_v42, %v2022_v36 }
 0x10c   : > { %v444_v25 = vpop.f32.mrf.mxu1 }
 0x10d   : > { %v445_v10 = vadd.f32 %v444_v25, %v339_v37 }
 0x10f   : > { %v2025_v38 = vpop.f32.mrf.mxu0 }
 0x110   : > { %v2069_v43 = vpop.f32.mrf.mxu1 }
 0x111   : > { %v349_v39 = vpop.f32.mrf.mxu0 }
 0x112   : > { %v454_v41 = vpop.f32.mrf.mxu1 }
 0x113   : > { %v455_v27 = vadd.f32 %v454_v41, %v349_v39 }
 0x116   : > { %v2104_v40 = vpop.f32.mrf.mxu0 }
 0x117   : > { %v2148_v44 = vpop.f32.mrf.mxu1  ;;  %v594_v11 = vadd.f32 %v2104_v40, %v430_v63 }
 0x118   : > { %v554_v32 = vpop.f32.mrf.mxu0 }
 0x119   : > { %v694_v46 = vpop.f32.mrf.mxu1  ;;  %v593_v23 = vadd.f32 %v554_v32, %v425_v7  ;;  %v734_v36 = vadd.f32 %v2148_v44, %v594_v11 }
 0x11b   : > { %v733_v37 = vadd.f32 %v694_v46, %v593_v23 }
 0x11c   : > { %v2107_v45 = vpop.f32.mrf.mxu0 }
 0x11e   : > { %v564_v47 = vpop.f32.mrf.mxu0 }
 0x11f   : > { %v2151_v48 = vpop.f32.mrf.mxu1 }
 0x121   : > { %v704_v50 = vpop.f32.mrf.mxu1 }
 0x122   : > { %v2110_v49 = vpop.f32.mrf.mxu0 }
 0x123   : > { %v598_v22 = vadd.f32 %v2110_v49, %v450_v2 }
 0x124   : > { %v574_v51 = vpop.f32.mrf.mxu0 }
 0x125   : > { %v2154_v52 = vpop.f32.mrf.mxu1  ;;  %v597_v26 = vadd.f32 %v574_v51, %v445_v10 }
 0x126   : > { %v738_v42 = vadd.f32 %v2154_v52, %v598_v22 }
 0x127   : > { %v714_v56 = vpop.f32.mrf.mxu1 }
 0x128   : > { %v2113_v53 = vpop.f32.mrf.mxu0  ;;  %v737_v40 = vadd.f32 %v714_v56, %v597_v26 }
 0x12a   : > { %v584_v57 = vpop.f32.mrf.mxu0 }
 0x12b   : > { %v2157_v60 = vpop.f32.mrf.mxu1  ;;  %v599_v25 = vadd.f32 %v584_v57, %v455_v27 }
 0x12d   : > { %v724_v0 = vpop.f32.mrf.mxu1 }
 0x13e   : > { %v2192_v61 = vpop.f32.mrf.mxu0 }
 0x13f   : > { %v2236_v4 = vpop.f32.mrf.mxu1  ;;  %v874_v63 = vadd.f32 %v2192_v61, %v734_v36 }
 0x140   : > { %v834_v1 = vpop.f32.mrf.mxu0 }
 0x141   : > { %v972_v8 = vpop.f32.mrf.mxu1  ;;  %v873_v2 = vadd.f32 %v834_v1, %v733_v37 }
 0x143   : > { %v1011_v52 = vadd.f32 %v972_v8, %v873_v2 }
 0x144   : > { %v2195_v5 = vpop.f32.mrf.mxu0 }
 0x146   : > { %v844_v12 = vpop.f32.mrf.mxu0 }
 0x147   : > { %v3074_v9 = vpop.f32.mrf.mxu1 }
 0x148   : > { %3114 = vst [vmem:[#allocation2_spill] sm:$0xff] %v3074_v9  ;;  %v440_v9 = vadd.f32 %v2063_v33, %v3072_v29 }
 0x149   : > { %v3076_v13 = vpop.f32.mrf.mxu1 }
 0x14a   : > { %3115 = vst [vmem:[#allocation3_spill] sm:$0xff] %v3076_v13  ;;  %v2198_v14 = vpop.f32.mrf.mxu0 }
 0x14b   : > { %v878_v49 = vadd.f32 %v2198_v14, %v738_v42 }
 0x14c   : > { %v854_v16 = vpop.f32.mrf.mxu0 }
 0x14d   : > { %v2242_v15 = vpop.f32.mrf.mxu1  ;;  %v877_v7 = vadd.f32 %v854_v16, %v737_v40 }
 0x14e   : > { %v1016_v39 = vadd.f32 %v2242_v15, %v878_v49 }
 0x14f   : > { %v992_v17 = vpop.f32.mrf.mxu1 }
 0x150   : > { %v2201_v19 = vpop.f32.mrf.mxu0 }
 0x152   : > { %v864_v21 = vpop.f32.mrf.mxu0 }
 0x153   : > { %v2245_v20 = vpop.f32.mrf.mxu1 }
 0x155   : > { %v1002_v34 = vpop.f32.mrf.mxu1 }
 0x166   : > { %v2280_v35 = vpop.f32.mrf.mxu0 }
 0x167   : > { %v2324_v54 = vpop.f32.mrf.mxu1 }
 0x168   : > { %v1113_v55 = vpop.f32.mrf.mxu0 }
 0x169   : > { %v3078_v58 = vpop.f32.mrf.mxu1  ;;  %v1152_v61 = vadd.f32 %v1113_v55, %v1011_v52 }
 0x16a   : > { %3116 = vst [vmem:[#allocation4_spill] sm:$0xff] %v3078_v58  ;;  %v435_v58 = vadd.f32 %v434_v24, %v329_v18  ;;  %v739_v24 = vadd.f32 %v724_v0, %v599_v25  ;;  %v3120_v0 = vld [vmem:[#allocation3_spill] sm:$0xff] }
 0x16c   : > { %v2283_v59 = vpop.f32.mrf.mxu0  ;;  %v595_v28 = vadd.f32 %v564_v47, %v435_v58  ;;  %v879_v46 = vadd.f32 %v864_v21, %v739_v24  ;;  %v1762_v21 = vld [vmem:[%s3112_s2] ss:$0 sm:$0xff] }
 0x16e   : > { %v1123_v3 = vpop.f32.mrf.mxu0  ;;  %v735_v18 = vadd.f32 %v704_v50, %v595_v28  ;;  %v3119_v50 = vld [vmem:[#allocation2_spill] sm:$0xff] }
 0x16f   : > { %v3080_v62 = vpop.f32.mrf.mxu1 }
 0x170   : > { %3117 = vst [vmem:[#allocation5_spill] sm:$0xff] %v3080_v62  ;;  %v460_v62 = vadd.f32 %v2069_v43, %v2025_v38  ;;  %v1012_v38 = vadd.f32 %v2236_v4, %v874_v63  ;;  %v875_v44 = vadd.f32 %v844_v12, %v735_v18 }
 0x171   : > { %v3082_v6 = vpop.f32.mrf.mxu1  ;;  %v3121_v55 = vld [vmem:[#allocation4_spill] sm:$0xff] }
 0x172   : > { %3118 = vst [vmem:[#allocation6_spill] sm:$0xff] %v3082_v6  ;;  %v2286_v13 = vpop.f32.mrf.mxu0  ;;  %v596_v6 = vadd.f32 %v2107_v45, %v440_v9  ;;  %v600_v31 = vadd.f32 %v2113_v53, %v460_v62  ;;  %v1015_v53 = vadd.f32 %v992_v17, %v877_v7  ;;  %v1153_v56 = vadd.f32 %v2280_v35, %v1012_v38 }
 0x173   : > { %v1157_v57 = vadd.f32 %v2286_v13, %v1016_v39  ;;  %v1013_v4 = vadd.f32 %v3120_v0, %v875_v44  ;;  %v1292_v58 = vadd.f32 %v3121_v55, %v1152_v61 }
 0x174   : > { %v1133_v32 = vpop.f32.mrf.mxu0  ;;  %v736_v29 = vadd.f32 %v2151_v48, %v596_v6  ;;  %v740_v33 = vadd.f32 %v2157_v60, %v600_v31  ;;  %v1293_v14 = vadd.f32 %v2324_v54, %v1153_v56 }
 0x175   : > { %v2330_v30 = vpop.f32.mrf.mxu1  ;;  %v1156_v1 = vadd.f32 %v1133_v32, %v1015_v53  ;;  %v1154_v8 = vadd.f32 %v1123_v3, %v1013_v4 }
 0x176   : > { %v876_v41 = vadd.f32 %v2195_v5, %v736_v29  ;;  %v880_v45 = vadd.f32 %v2201_v19, %v740_v33  ;;  %v1017_v5 = vadd.f32 %v1002_v34, %v879_v46  ;;  %v1297_v15 = vadd.f32 %v2330_v30, %v1157_v57 }
 0x177   : > { %v1273_v51 = vpop.f32.mrf.mxu1  ;;  %v3122_v22 = vld [vmem:[#allocation5_spill] sm:$0xff] }
 0x178   : > { %v2289_v43 = vpop.f32.mrf.mxu0  ;;  %v1014_v60 = vadd.f32 %v3119_v50, %v876_v41  ;;  %v1018_v9 = vadd.f32 %v2245_v20, %v880_v45  ;;  %v1296_v62 = vadd.f32 %v1273_v51, %v1156_v1 }
 0x179   : > { %v3123_v26 = vld [vmem:[#allocation6_spill] sm:$0xff] }
 0x17a   : > { %v1143_v48 = vpop.f32.mrf.mxu0  ;;  %v1155_v16 = vadd.f32 %v2283_v59, %v1014_v60  ;;  %v1159_v17 = vadd.f32 %v2289_v43, %v1018_v9  ;;  %v1294_v27 = vadd.f32 %v3123_v26, %v1154_v8 }
 0x17b   : > { %v2333_v47 = vpop.f32.mrf.mxu1  ;;  %v1158_v19 = vadd.f32 %v1143_v48, %v1017_v5 }
 0x17c   : > { %v1295_v23 = vadd.f32 %v3122_v22, %v1155_v16  ;;  %v1299_v30 = vadd.f32 %v2333_v47, %v1159_v17 }
 0x17d   : > { %v1283_v12 = vpop.f32.mrf.mxu1 }
 0x17e   : > { %v1298_v36 = vadd.f32 %v1283_v12, %v1158_v19 }
 0x18e   : > { %v2368_v13 = vpop.f32.mrf.mxu0 }
 0x18f   : > { %v2374_v35 = vpop.f32.mrf.mxu1  ;;  %v1431_v6 = vadd.f32 %v2368_v13, %v1293_v14 }
 0x190   : > { %v1435_v20 = vadd.f32 %v2374_v35, %v1297_v15  ;;  %v1391_v34 = vpop.f32.mrf.mxu0 }
 0x191   : > { %v1411_v10 = vpop.f32.mrf.mxu1  ;;  %v1446_v54 = vadd.f32 %v1762_v21, %v1431_v6  ;;  %v1430_v59 = vadd.f32 %v1391_v34, %v1292_v58 }
 0x192   : > { %v1450_v11 = vadd.f32 %v1762_v21, %v1435_v20  ;;  %v1434_v3 = vadd.f32 %v1411_v10, %v1296_v62  ;;  %v2371_v42 = vpop.f32.mrf.mxu0 }
 0x193   : > { %v2377_v28 = vpop.f32.mrf.mxu1  ;;  %v1454_v31 = vmax.f32 %v1446_v54, 0.0  ;;  %v1445_v37 = vadd.f32 %v1762_v21, %v1430_v59  ;;  %v1433_v63 = vadd.f32 %v2371_v42, %v1295_v23 }
 0x194   : > { %v1458_v25 = vmax.f32 %v1450_v11, 0.0  ;;  %v1449_v40 = vadd.f32 %v1762_v21, %v1434_v3  ;;  %v1437_v49 = vadd.f32 %v2377_v28, %v1299_v30  ;;  %v1401_v32 = vpop.f32.mrf.mxu0 }
 0x195   : > { %v1421_v51 = vpop.f32.mrf.mxu1  ;;  %1462 = vst [vmem:[%s197_s25 + $0x8] sm:$0xff] %v1454_v31  ;;  %v1453_v2 = vmax.f32 %v1445_v37, 0.0  ;;  %v1432_v29 = vadd.f32 %v1401_v32, %v1294_v27  ;;  %v1448_v33 = vadd.f32 %v1762_v21, %v1433_v63 }
 0x196   : > { %1466 = vst [vmem:[%s197_s25 + $0x28] sm:$0xff] %v1458_v25  ;;  %v1457_v7 = vmax.f32 %v1449_v40, 0.0  ;;  %v1436_v18 = vadd.f32 %v1421_v51, %v1298_v36  ;;  %v1452_v24 = vadd.f32 %v1762_v21, %v1437_v49 }
 0x197   : > { %1461 = vst [vmem:[%s197_s25] sm:$0xff] %v1453_v2  ;;  %v1447_v38 = vadd.f32 %v1762_v21, %v1432_v29  ;;  %v1456_v43 = vmax.f32 %v1448_v33, 0.0 }
 0x198   : > { %1465 = vst [vmem:[%s197_s25 + $0x20] sm:$0xff] %v1457_v7  ;;  %v1451_v39 = vadd.f32 %v1762_v21, %v1436_v18  ;;  %v1460_v41 = vmax.f32 %v1452_v24, 0.0 }
 0x199   : > { %v1455_v44 = vmax.f32 %v1447_v38, 0.0  ;;  %1464 = vst [vmem:[%s197_s25 + $0x18] sm:$0xff] %v1456_v43 }
 0x19a   : > { %v1459_v45 = vmax.f32 %v1451_v39, 0.0  ;;  %1468 = vst [vmem:[%s197_s25 + $0x38] sm:$0xff] %v1460_v41 }
 0x19b   : > { %1463 = vst [vmem:[%s197_s25 + $0x10] sm:$0xff] %v1455_v44 }
 0x19c   : > { %1467 = vst [vmem:[%s197_s25 + $0x30] sm:$0xff] %v1459_v45 }
 0x19d PF: > { %s13_s14 = sadd.s32 1, %s2457_s14   ;;  %s3124_s12 = smov %s2453_s13 }
 0x19e   : > { %p10_p6 = scmp.ge.s32.totalorder %s13_s14, 4   ;;  %s3125_s13 = smov %s3127_s15 }
 0x1a0   :  { %12 = sbr.rel (!%p10_p6) target bundleno = 2 (0x2), region = 76 }

// kernel: basic_block_forward.5
= control target key start
LH: loop header
LB: loop body
LE: loop exit
PB: predicated region body
PF: predicated region fallthrough
CT: control target
= control target key end

     0   :  { %s2548_s15 = smov 0   ;;  %s2550_s16 = smov 0   ;;  %s3215_s0 = inlined_call_operand.vmem [shape: f32[2,10,10,128], index: 0, kind: input, shape index: {}]   ;;  %s3216_s1 = inlined_call_operand.vmem [shape: f32[9,128,128], index: 1, kind: input, shape index: {}]   ;;  %s3217_s2 = inlined_call_operand.vmem [shape: f32[1,128], index: 2, kind: input, shape index: {}]   ;;  %s3218_s3 = inlined_call_operand.vmem [shape: f32[2,8,8,128], index: 3, kind: input, shape index: {}]   ;;  %s3219_s4 = inlined_call_operand.vmem [shape: f32[2,8,8,128], index: 4, kind: output, shape index: {}]  }
   0x1   :  { %s2552_s17 = smov 0  }
   0x2 LB: > { %s26_s18 = sadd.s32 1, %s2517_s16  ;;  %p1643_p0 = scmp.ge.s32.totalorder %s2521_s17, 1  ;;  %s2521_s17 = sphi %s2552_s17, %s14_s17   ;;  %s2517_s16 = sphi %s2550_s16, %s3231_s16   ;;  %s2513_s15 = sphi %s2548_s15, %s3230_s15  }
   0x3   : > { %p28_p1 = scmp.ge.s32.totalorder %s26_s18, 2  ;;  %p193_p2 = scmp.lt.s32.totalorder %s2521_s17, 3 }
   0x5   : > { %s3233_s18 = smov (%p28_p1, %s26_s18), 0  ;;  %p194_p3 = pnand %p1643_p0, %p193_p2 }
   0x7   : > { %197 = sbr.rel (%p194_p3) target bundleno = 413 (0x19d), region = 36 }
   0xc   : > { %v1664_v0 = vld [vmem:[%s3216_s1 + $0xf8] sm:$0xff]  ;;  %v1663_v2 = vld [vmem:[%s3216_s1 + $0xf0] sm:$0xff]  ;;  %v1662_v4 = vld [vmem:[%s3216_s1 + $0xe8] sm:$0xff]  ;;  %p232_p4 = scmp.lt.s32.totalorder %s2513_s15, 1 }
   0xd   : > { %v283_v1 = vld [vmem:[%s3216_s1 + $0x78] sm:$0xff]  ;;  %2046 = vmatprep.subr.mxu0 %v1664_v0  ;;  %v282_v3 = vld [vmem:[%s3216_s1 + $0x70] sm:$0xff]  ;;  %v281_v5 = vld [vmem:[%s3216_s1 + $0x68] sm:$0xff] }
   0xe   : > { %2090 = vmatprep.subr.mxu1 %v283_v1  ;;  %2047 = vmatpush3.msra.mxu0 %v1664_v0  ;;  %v1661_v6 = vld [vmem:[%s3216_s1 + $0xe0] sm:$0xff]  ;;  %v1660_v8 = vld [vmem:[%s3216_s1 + $0xd8] sm:$0xff]  ;;  %v1659_v10 = vld [vmem:[%s3216_s1 + $0xd0] sm:$0xff]  ;;  %s3235_s15 = smov (!%p232_p4, %s2513_s15), 1 }
   0xf   : > { %2091 = vmatpush3.msra.mxu1 %v283_v1  ;;  %2048 = vmatprep.subr.mxu0 %v1663_v2  ;;  %v280_v7 = vld [vmem:[%s3216_s1 + $0x60] sm:$0xff]  ;;  %v279_v9 = vld [vmem:[%s3216_s1 + $0x58] sm:$0xff]  ;;  %v278_v11 = vld [vmem:[%s3216_s1 + $0x50] sm:$0xff]  ;;  %s2474_s27 = smul.u32 160, %s3235_s15 }
  0x10   : > { %2092 = vmatprep.subr.mxu1 %v282_v3  ;;  %2049 = vmatpush3.msra.mxu0 %v1663_v2  ;;  %v1658_v12 = vld [vmem:[%s3216_s1 + $0xc8] sm:$0xff]  ;;  %v1657_v14 = vld [vmem:[%s3216_s1 + $0xc0] sm:$0xff]  ;;  %v1656_v16 = vld [vmem:[%s3216_s1 + $0xb8] sm:$0xff] }
  0x11   : > { %2093 = vmatpush3.msra.mxu1 %v282_v3  ;;  %2050 = vmatprep.subr.mxu0 %v1662_v4  ;;  %v277_v13 = vld [vmem:[%s3216_s1 + $0x48] sm:$0xff]  ;;  %v276_v15 = vld [vmem:[%s3216_s1 + $0x40] sm:$0xff]  ;;  %v275_v17 = vld [vmem:[%s3216_s1 + $0x38] sm:$0xff]  ;;  %s2666_s12 = scalar_lea.vmem %s3215_s0, %s2474_s27 }
  0x12   : > { %2094 = vmatprep.subr.mxu1 %v281_v5  ;;  %2051 = vmatpush3.msra.mxu0 %v1662_v4  ;;  %v1655_v18 = vld [vmem:[%s3216_s1 + $0xb0] sm:$0xff]  ;;  %v1654_v20 = vld [vmem:[%s3216_s1 + $0xa8] sm:$0xff]  ;;  %v1653_v22 = vld [vmem:[%s3216_s1 + $0xa0] sm:$0xff] }
  0x13   : > { %2095 = vmatpush3.msra.mxu1 %v281_v5  ;;  %2052 = vmatprep.subr.mxu0 %v1661_v6  ;;  %v274_v19 = vld [vmem:[%s3216_s1 + $0x30] sm:$0xff]  ;;  %v273_v21 = vld [vmem:[%s3216_s1 + $0x28] sm:$0xff]  ;;  %v272_v23 = vld [vmem:[%s3216_s1 + $0x20] sm:$0xff] }
  0x14   : > { %2096 = vmatprep.subr.mxu1 %v280_v7  ;;  %2053 = vmatpush3.msra.mxu0 %v1661_v6  ;;  %v1652_v24 = vld [vmem:[%s3216_s1 + $0x98] sm:$0xff]  ;;  %v1651_v26 = vld [vmem:[%s3216_s1 + $0x90] sm:$0xff]  ;;  %v1650_v28 = vld [vmem:[%s3216_s1 + $0x88] sm:$0xff] }
  0x15   : > { %2097 = vmatpush3.msra.mxu1 %v280_v7  ;;  %2054 = vmatprep.subr.mxu0 %v1660_v8  ;;  %v271_v25 = vld [vmem:[%s3216_s1 + $0x18] sm:$0xff]  ;;  %v270_v27 = vld [vmem:[%s3216_s1 + $0x10] sm:$0xff]  ;;  %v269_v29 = vld [vmem:[%s3216_s1 + $0x8] sm:$0xff] }
  0x16   : > { %2098 = vmatprep.subr.mxu1 %v279_v9  ;;  %2055 = vmatpush3.msra.mxu0 %v1660_v8  ;;  %v1649_v30 = vld [vmem:[%s3216_s1 + $0x80] sm:$0xff]  ;;  %v2677_v34 = vld [vmem:[%s2666_s12 + $0x11] sm:$0xff]  ;;  %v1678_v40 = vld [vmem:[%s3216_s1 + $0x168] sm:$0xff] }
  0x17   : > { %2099 = vmatpush3.msra.mxu1 %v279_v9  ;;  %2056 = vmatprep.subr.mxu0 %v1659_v10  ;;  %v268_v31 = vld [vmem:[%s3216_s1] sm:$0xff]  ;;  %v2680_v35 = vld [vmem:[%s2666_s12 + $0x10] sm:$0xff]  ;;  %v1680_v36 = vld [vmem:[%s3216_s1 + $0x178] sm:$0xff] }
  0x18   : > { %2100 = vmatprep.subr.mxu1 %v278_v11  ;;  %2057 = vmatpush3.msra.mxu0 %v1659_v10  ;;  %v284_v32 = vld [vmem:[%s2666_s12 + $0x1] sm:$0xff]  ;;  %v1704_v37 = vld [vmem:[%s3216_s1 + $0x1f8] sm:$0xff]  ;;  %v1679_v38 = vld [vmem:[%s3216_s1 + $0x170] sm:$0xff] }
  0x19   : > { %2101 = vmatpush3.msra.mxu1 %v278_v11  ;;  %2058 = vmatprep.subr.mxu0 %v1658_v12  ;;  %v260_v33 = vld [vmem:[%s2666_s12] sm:$0xff]  ;;  %v1703_v39 = vld [vmem:[%s3216_s1 + $0x1f0] sm:$0xff]  ;;  %v1702_v41 = vld [vmem:[%s3216_s1 + $0x1e8] sm:$0xff] }
  0x1a   : > { %2102 = vmatprep.subr.mxu1 %v277_v13  ;;  %2059 = vmatpush3.msra.mxu0 %v1658_v12  ;;  %v1677_v42 = vld [vmem:[%s3216_s1 + $0x160] sm:$0xff]  ;;  %v1676_v44 = vld [vmem:[%s3216_s1 + $0x158] sm:$0xff]  ;;  %v1675_v46 = vld [vmem:[%s3216_s1 + $0x150] sm:$0xff] }
  0x1b   : > { %2103 = vmatpush3.msra.mxu1 %v277_v13  ;;  %2060 = vmatprep.subr.mxu0 %v1657_v14  ;;  %v1701_v43 = vld [vmem:[%s3216_s1 + $0x1e0] sm:$0xff]  ;;  %v1700_v45 = vld [vmem:[%s3216_s1 + $0x1d8] sm:$0xff]  ;;  %v1699_v47 = vld [vmem:[%s3216_s1 + $0x1d0] sm:$0xff] }
  0x1c   : > { %2104 = vmatprep.subr.mxu1 %v276_v15  ;;  %2061 = vmatpush3.msra.mxu0 %v1657_v14  ;;  %v1674_v48 = vld [vmem:[%s3216_s1 + $0x148] sm:$0xff]  ;;  %v1673_v50 = vld [vmem:[%s3216_s1 + $0x140] sm:$0xff]  ;;  %v1672_v52 = vld [vmem:[%s3216_s1 + $0x138] sm:$0xff] }
  0x1d   : > { %2105 = vmatpush3.msra.mxu1 %v276_v15  ;;  %2062 = vmatprep.subr.mxu0 %v1656_v16  ;;  %v1698_v49 = vld [vmem:[%s3216_s1 + $0x1c8] sm:$0xff]  ;;  %v1697_v51 = vld [vmem:[%s3216_s1 + $0x1c0] sm:$0xff]  ;;  %v1696_v53 = vld [vmem:[%s3216_s1 + $0x1b8] sm:$0xff] }
  0x1e   : > { %2106 = vmatprep.subr.mxu1 %v275_v17  ;;  %2063 = vmatpush3.msra.mxu0 %v1656_v16  ;;  %v2739_v54 = vld [vmem:[%s2666_s12 + $0x21] sm:$0xff]  ;;  %v1671_v56 = vld [vmem:[%s3216_s1 + $0x130] sm:$0xff]  ;;  %v1668_v4 = vld [vmem:[%s3216_s1 + $0x118] sm:$0xff] }
  0x1f   : > { %2107 = vmatpush3.msra.mxu1 %v275_v17  ;;  %2064 = vmatprep.subr.mxu0 %v1655_v18  ;;  %v2742_v55 = vld [vmem:[%s2666_s12 + $0x20] sm:$0xff]  ;;  %v1695_v57 = vld [vmem:[%s3216_s1 + $0x1b0] sm:$0xff]  ;;  %v1670_v60 = vld [vmem:[%s3216_s1 + $0x128] sm:$0xff] }
  0x20   : > { %2108 = vmatprep.subr.mxu1 %v274_v19  ;;  %2065 = vmatpush3.msra.mxu0 %v1655_v18  ;;  %v2751_v58 = vld [vmem:[%s2666_s12 + $0x31] sm:$0xff]  ;;  %v1694_v61 = vld [vmem:[%s3216_s1 + $0x1a8] sm:$0xff]  ;;  %v2770_v63 = vld [vmem:[%s2666_s12 + $0x40] sm:$0xff] }
  0x21   : > { %2109 = vmatpush3.msra.mxu1 %v274_v19  ;;  %2066 = vmatprep.subr.mxu0 %v1654_v20  ;;  %v2754_v59 = vld [vmem:[%s2666_s12 + $0x30] sm:$0xff]  ;;  %v2767_v62 = vld [vmem:[%s2666_s12 + $0x41] sm:$0xff]  ;;  %v1692_v5 = vld [vmem:[%s3216_s1 + $0x198] sm:$0xff] }
  0x22   : > { %2110 = vmatprep.subr.mxu1 %v273_v21  ;;  %2067 = vmatpush3.msra.mxu0 %v1654_v20  ;;  %v1669_v0 = vld [vmem:[%s3216_s1 + $0x120] sm:$0xff]  ;;  %v2779_v2 = vld [vmem:[%s2666_s12 + $0x51] sm:$0xff]  ;;  %v1666_v12 = vld [vmem:[%s3216_s1 + $0x108] sm:$0xff] }
  0x23   : > { %2111 = vmatpush3.msra.mxu1 %v273_v21  ;;  %2068 = vmatprep.subr.mxu0 %v1653_v22  ;;  %v1693_v1 = vld [vmem:[%s3216_s1 + $0x1a0] sm:$0xff]  ;;  %v2782_v3 = vld [vmem:[%s2666_s12 + $0x50] sm:$0xff]  ;;  %v1690_v13 = vld [vmem:[%s3216_s1 + $0x188] sm:$0xff] }
  0x24   : > { %2112 = vmatprep.subr.mxu1 %v272_v23  ;;  %2069 = vmatpush3.msra.mxu0 %v1653_v22  ;;  %v2795_v6 = vld [vmem:[%s2666_s12 + $0x61] sm:$0xff]  ;;  %v1667_v8 = vld [vmem:[%s3216_s1 + $0x110] sm:$0xff]  ;;  %v1728_v18 = vld [vmem:[%s3216_s1 + $0x278] sm:$0xff] }
  0x25   : > { %2113 = vmatpush3.msra.mxu1 %v272_v23  ;;  %2070 = vmatprep.subr.mxu0 %v1652_v24  ;;  %v2798_v7 = vld [vmem:[%s2666_s12 + $0x60] sm:$0xff]  ;;  %v1691_v9 = vld [vmem:[%s3216_s1 + $0x190] sm:$0xff]  ;;  %v1752_v19 = vld [vmem:[%s3216_s1 + $0x2f8] sm:$0xff] }
  0x26   : > { %2114 = vmatprep.subr.mxu1 %v271_v25  ;;  %2071 = vmatpush3.msra.mxu0 %v1652_v24  ;;  %v2807_v10 = vld [vmem:[%s2666_s12 + $0x71] sm:$0xff]  ;;  %v1665_v14 = vld [vmem:[%s3216_s1 + $0x100] sm:$0xff]  ;;  %v1726_v24 = vld [vmem:[%s3216_s1 + $0x268] sm:$0xff] }
  0x27   : > { %2115 = vmatpush3.msra.mxu1 %v271_v25  ;;  %2072 = vmatprep.subr.mxu0 %v1651_v26  ;;  %v2810_v11 = vld [vmem:[%s2666_s12 + $0x70] sm:$0xff]  ;;  %v1689_v15 = vld [vmem:[%s3216_s1 + $0x180] sm:$0xff]  ;;  %v1750_v25 = vld [vmem:[%s3216_s1 + $0x2e8] sm:$0xff] }
  0x28   : > { %2116 = vmatprep.subr.mxu1 %v270_v27  ;;  %2073 = vmatpush3.msra.mxu0 %v1651_v26  ;;  %v519_v16 = vld [vmem:[%s2666_s12 + $0x2] sm:$0xff]  ;;  %v2830_v17 = vld [vmem:[%s2666_s12 + $0x12] sm:$0xff] }
  0x29   : > { %2117 = vmatpush3.msra.mxu1 %v270_v27  ;;  %2074 = vmatprep.subr.mxu0 %v1650_v28  ;;  %v1727_v20 = vld [vmem:[%s3216_s1 + $0x270] sm:$0xff]  ;;  %v2848_v22 = vld [vmem:[%s2666_s12 + $0x22] sm:$0xff] }
  0x2a   : > { %2118 = vmatprep.subr.mxu1 %v269_v29  ;;  %2075 = vmatpush3.msra.mxu0 %v1650_v28  ;;  %v1751_v21 = vld [vmem:[%s3216_s1 + $0x2f0] sm:$0xff]  ;;  %v1725_v26 = vld [vmem:[%s3216_s1 + $0x260] sm:$0xff] }
  0x2b   : > { %2119 = vmatpush3.msra.mxu1 %v269_v29  ;;  %2076 = vmatprep.subr.mxu0 %v1649_v30  ;;  %v2851_v23 = vld [vmem:[%s2666_s12 + $0x32] sm:$0xff]  ;;  %v1749_v27 = vld [vmem:[%s3216_s1 + $0x2e0] sm:$0xff] }
  0x2c   : > { %2120 = vmatprep.subr.mxu1 %v268_v31  ;;  %2077 = vmatpush3.msra.mxu0 %v1649_v30  ;;  %v2869_v28 = vld [vmem:[%s2666_s12 + $0x42] sm:$0xff]  ;;  %v2872_v29 = vld [vmem:[%s2666_s12 + $0x52] sm:$0xff] }
  0x2d   : > { %2078 = vmatprep.mubr.f32.mxu0 %v284_v32  ;;  %2121 = vmatpush3.msra.mxu1 %v268_v31  ;;  %v1724_v30 = vld [vmem:[%s3216_s1 + $0x258] sm:$0xff]  ;;  %v1723_v32 = vld [vmem:[%s3216_s1 + $0x250] sm:$0xff] }
  0x2e   : > { %2122 = vmatprep.mubr.f32.mxu1 %v260_v33  ;;  %2079 = vmatmul.mubr.f32.vlgmr.msra.gmra.mxu0 %v2677_v34  ;;  %v1748_v31 = vld [vmem:[%s3216_s1 + $0x2d8] sm:$0xff]  ;;  %v1747_v33 = vld [vmem:[%s3216_s1 + $0x2d0] sm:$0xff] }
  0x2f   : > { %2123 = vmatmul.mubr.f32.vlgmr.msra.gmra.mxu1 %v2680_v35  ;;  %2134 = vmatprep.subr.mxu0 %v1680_v36 }
  0x30   : > { %2178 = vmatprep.subr.mxu1 %v1704_v37  ;;  %2135 = vmatpush3.msra.mxu0 %v1680_v36  ;;  %v2894_v36 = vld [vmem:[%s2666_s12 + $0x72] sm:$0xff] }
  0x31   : > { %2179 = vmatpush3.msra.mxu1 %v1704_v37  ;;  %2136 = vmatprep.subr.mxu0 %v1679_v38  ;;  %v1722_v37 = vld [vmem:[%s3216_s1 + $0x248] sm:$0xff] }
  0x32   : > { %2180 = vmatprep.subr.mxu1 %v1703_v39  ;;  %2137 = vmatpush3.msra.mxu0 %v1679_v38  ;;  %v1746_v38 = vld [vmem:[%s3216_s1 + $0x2c8] sm:$0xff] }
  0x33   : > { %2181 = vmatpush3.msra.mxu1 %v1703_v39  ;;  %2138 = vmatprep.subr.mxu0 %v1678_v40  ;;  %v1721_v39 = vld [vmem:[%s3216_s1 + $0x240] sm:$0xff] }
  0x34   : > { %2182 = vmatprep.subr.mxu1 %v1702_v41  ;;  %2139 = vmatpush3.msra.mxu0 %v1678_v40  ;;  %v2909_v40 = vld [vmem:[%s2666_s12 + $0x80] sm:$0xff] }
  0x35   : > { %2183 = vmatpush3.msra.mxu1 %v1702_v41  ;;  %2140 = vmatprep.subr.mxu0 %v1677_v42  ;;  %v1745_v41 = vld [vmem:[%s3216_s1 + $0x2c0] sm:$0xff] }
  0x36   : > { %2184 = vmatprep.subr.mxu1 %v1701_v43  ;;  %2141 = vmatpush3.msra.mxu0 %v1677_v42  ;;  %v1720_v42 = vld [vmem:[%s3216_s1 + $0x238] sm:$0xff] }
  0x37   : > { %2185 = vmatpush3.msra.mxu1 %v1701_v43  ;;  %2142 = vmatprep.subr.mxu0 %v1676_v44  ;;  %v1744_v43 = vld [vmem:[%s3216_s1 + $0x2b8] sm:$0xff] }
  0x38   : > { %2186 = vmatprep.subr.mxu1 %v1700_v45  ;;  %2143 = vmatpush3.msra.mxu0 %v1676_v44  ;;  %v1719_v44 = vld [vmem:[%s3216_s1 + $0x230] sm:$0xff] }
  0x39   : > { %2187 = vmatpush3.msra.mxu1 %v1700_v45  ;;  %2144 = vmatprep.subr.mxu0 %v1675_v46  ;;  %v1743_v45 = vld [vmem:[%s3216_s1 + $0x2b0] sm:$0xff] }
  0x3a   : > { %2188 = vmatprep.subr.mxu1 %v1699_v47  ;;  %2145 = vmatpush3.msra.mxu0 %v1675_v46  ;;  %v1718_v46 = vld [vmem:[%s3216_s1 + $0x228] sm:$0xff] }
  0x3b   : > { %2189 = vmatpush3.msra.mxu1 %v1699_v47  ;;  %2146 = vmatprep.subr.mxu0 %v1674_v48  ;;  %v1742_v47 = vld [vmem:[%s3216_s1 + $0x2a8] sm:$0xff] }
  0x3c   : > { %2190 = vmatprep.subr.mxu1 %v1698_v49  ;;  %2147 = vmatpush3.msra.mxu0 %v1674_v48  ;;  %v1717_v48 = vld [vmem:[%s3216_s1 + $0x220] sm:$0xff] }
  0x3d   : > { %2191 = vmatpush3.msra.mxu1 %v1698_v49  ;;  %2148 = vmatprep.subr.mxu0 %v1673_v50  ;;  %v1741_v49 = vld [vmem:[%s3216_s1 + $0x2a0] sm:$0xff] }
  0x3e   : > { %2192 = vmatprep.subr.mxu1 %v1697_v51  ;;  %2149 = vmatpush3.msra.mxu0 %v1673_v50  ;;  %v1716_v50 = vld [vmem:[%s3216_s1 + $0x218] sm:$0xff] }
  0x3f   : > { %2193 = vmatpush3.msra.mxu1 %v1697_v51  ;;  %2150 = vmatprep.subr.mxu0 %v1672_v52  ;;  %v1740_v51 = vld [vmem:[%s3216_s1 + $0x298] sm:$0xff] }
  0x40   : > { %2194 = vmatprep.subr.mxu1 %v1696_v53  ;;  %2151 = vmatpush3.msra.mxu0 %v1672_v52  ;;  %v1715_v52 = vld [vmem:[%s3216_s1 + $0x210] sm:$0xff] }
  0x41   : > { %2195 = vmatpush3.msra.mxu1 %v1696_v53  ;;  %2081 = vmatprep.mubr.f32.mxu0 %v2739_v54  ;;  %v1739_v53 = vld [vmem:[%s3216_s1 + $0x290] sm:$0xff] }
  0x42   : > { %2125 = vmatprep.mubr.f32.mxu1 %v2742_v55  ;;  %2152 = vmatprep.subr.mxu0 %v1671_v56 }
  0x43   : > { %2196 = vmatprep.subr.mxu1 %v1695_v57  ;;  %2082 = vmatmul.mubr.f32.gmra.mxu0 %v2751_v58 }
  0x44   : > { %2126 = vmatmul.mubr.f32.gmra.mxu1 %v2754_v59  ;;  %2153 = vmatpush3.msra.mxu0 %v1671_v56  ;;  %v1714_v56 = vld [vmem:[%s3216_s1 + $0x208] sm:$0xff] }
  0x45   : > { %2197 = vmatpush3.msra.mxu1 %v1695_v57  ;;  %2154 = vmatprep.subr.mxu0 %v1670_v60  ;;  %v1738_v57 = vld [vmem:[%s3216_s1 + $0x288] sm:$0xff] }
  0x46   : > { %2198 = vmatprep.subr.mxu1 %v1694_v61  ;;  %2155 = vmatpush3.msra.mxu0 %v1670_v60  ;;  %v1713_v60 = vld [vmem:[%s3216_s1 + $0x200] sm:$0xff] }
  0x47   : > { %2199 = vmatpush3.msra.mxu1 %v1694_v61  ;;  %2084 = vmatprep.mubr.f32.mxu0 %v2767_v62  ;;  %v1737_v61 = vld [vmem:[%s3216_s1 + $0x280] sm:$0xff] }
  0x48   : > { %2128 = vmatprep.mubr.f32.mxu1 %v2770_v63  ;;  %2156 = vmatprep.subr.mxu0 %v1669_v0 }
  0x49   : > { %2200 = vmatprep.subr.mxu1 %v1693_v1  ;;  %2085 = vmatmul.mubr.f32.gmra.mxu0 %v2779_v2 }
  0x4a   : > { %2129 = vmatmul.mubr.f32.gmra.mxu1 %v2782_v3  ;;  %2157 = vmatpush3.msra.mxu0 %v1669_v0  ;;  %v1776_v0 = vld [vmem:[%s3216_s1 + $0x378] sm:$0xff] }
  0x4b   : > { %2201 = vmatpush3.msra.mxu1 %v1693_v1  ;;  %2158 = vmatprep.subr.mxu0 %v1668_v4  ;;  %v1800_v1 = vld [vmem:[%s3216_s1 + $0x3f8] sm:$0xff] }
  0x4c   : > { %2202 = vmatprep.subr.mxu1 %v1692_v5  ;;  %2159 = vmatpush3.msra.mxu0 %v1668_v4  ;;  %v1775_v4 = vld [vmem:[%s3216_s1 + $0x370] sm:$0xff] }
  0x4d   : > { %2203 = vmatpush3.msra.mxu1 %v1692_v5  ;;  %2087 = vmatprep.mubr.f32.mxu0 %v2795_v6  ;;  %v1774_v5 = vld [vmem:[%s3216_s1 + $0x368] sm:$0xff] }
  0x4e   : > { %2131 = vmatprep.mubr.f32.mxu1 %v2798_v7  ;;  %2160 = vmatprep.subr.mxu0 %v1667_v8 }
  0x4f   : > { %2204 = vmatprep.subr.mxu1 %v1691_v9  ;;  %2088 = vmatmul.mubr.f32.gmra.mxu0 %v2807_v10 }
  0x50   : > { %2132 = vmatmul.mubr.f32.gmra.mxu1 %v2810_v11  ;;  %2161 = vmatpush3.msra.mxu0 %v1667_v8  ;;  %v1798_v8 = vld [vmem:[%s3216_s1 + $0x3e8] sm:$0xff] }
  0x51   : > { %2205 = vmatpush3.msra.mxu1 %v1691_v9  ;;  %2162 = vmatprep.subr.mxu0 %v1666_v12  ;;  %v1773_v9 = vld [vmem:[%s3216_s1 + $0x360] sm:$0xff] }
  0x52   : > { %2206 = vmatprep.subr.mxu1 %v1690_v13  ;;  %2163 = vmatpush3.msra.mxu0 %v1666_v12  ;;  %v1797_v12 = vld [vmem:[%s3216_s1 + $0x3e0] sm:$0xff] }
  0x53   : > { %2207 = vmatpush3.msra.mxu1 %v1690_v13  ;;  %2164 = vmatprep.subr.mxu0 %v1665_v14  ;;  %v1772_v13 = vld [vmem:[%s3216_s1 + $0x358] sm:$0xff] }
  0x54   : > { %2208 = vmatprep.subr.mxu1 %v1689_v15  ;;  %2165 = vmatpush3.msra.mxu0 %v1665_v14  ;;  %v1796_v14 = vld [vmem:[%s3216_s1 + $0x3d8] sm:$0xff] }
  0x55   : > { %2166 = vmatprep.mubr.f32.mxu0 %v519_v16  ;;  %2209 = vmatpush3.msra.mxu1 %v1689_v15  ;;  %v1771_v15 = vld [vmem:[%s3216_s1 + $0x350] sm:$0xff] }
  0x56   : > { %2210 = vmatprep.mubr.f32.mxu1 %v2680_v35  ;;  %2167 = vmatmul.mubr.f32.vlgmr.msra.gmra.mxu0 %v2830_v17  ;;  %v2891_v35 = vld [vmem:[%s2666_s12 + $0x62] sm:$0xff]  ;;  %v1795_v16 = vld [vmem:[%s3216_s1 + $0x3d0] sm:$0xff] }
  0x57   : > { %2211 = vmatmul.mubr.f32.vlgmr.msra.gmra.mxu1 %v2742_v55  ;;  %2222 = vmatprep.subr.mxu0 %v1728_v18 }
  0x58   : > { %2266 = vmatprep.subr.mxu1 %v1752_v19  ;;  %2223 = vmatpush3.msra.mxu0 %v1728_v18  ;;  %v1770_v18 = vld [vmem:[%s3216_s1 + $0x348] sm:$0xff] }
  0x59   : > { %2267 = vmatpush3.msra.mxu1 %v1752_v19  ;;  %2224 = vmatprep.subr.mxu0 %v1727_v20  ;;  %v1794_v19 = vld [vmem:[%s3216_s1 + $0x3c8] sm:$0xff] }
  0x5a   : > { %2268 = vmatprep.subr.mxu1 %v1751_v21  ;;  %2169 = vmatprep.mubr.f32.mxu0 %v2848_v22 }
  0x5b   : > { %2225 = vmatpush3.msra.mxu0 %v1727_v20  ;;  %2269 = vmatpush3.msra.mxu1 %v1751_v21  ;;  %v1769_v20 = vld [vmem:[%s3216_s1 + $0x340] sm:$0xff] }
  0x5c   : > { %2170 = vmatmul.mubr.f32.gmra.mxu0 %v2851_v23  ;;  %2226 = vmatprep.subr.mxu0 %v1726_v24  ;;  %v3027_v21 = vld [vmem:[%s2666_s12 + $0x82] sm:$0xff] }
  0x5d   : > { %2270 = vmatprep.subr.mxu1 %v1750_v25  ;;  %2213 = vmatprep.mubr.f32.mxu1 %v2754_v59 }
  0x5e   : > { %2227 = vmatpush3.msra.mxu0 %v1726_v24  ;;  %2271 = vmatpush3.msra.mxu1 %v1750_v25  ;;  %v1793_v24 = vld [vmem:[%s3216_s1 + $0x3c0] sm:$0xff]  ;;  %v1768_v25 = vld [vmem:[%s3216_s1 + $0x338] sm:$0xff] }
  0x5f   : > { %2228 = vmatprep.subr.mxu0 %v1725_v26  ;;  %2214 = vmatmul.mubr.f32.gmra.mxu1 %v2770_v63 }
  0x60   : > { %2272 = vmatprep.subr.mxu1 %v1749_v27  ;;  %2172 = vmatprep.mubr.f32.mxu0 %v2869_v28 }
  0x61   : > { %2229 = vmatpush3.msra.mxu0 %v1725_v26  ;;  %2273 = vmatpush3.msra.mxu1 %v1749_v27  ;;  %v1792_v26 = vld [vmem:[%s3216_s1 + $0x3b8] sm:$0xff]  ;;  %v1767_v27 = vld [vmem:[%s3216_s1 + $0x330] sm:$0xff] }
  0x62   : > { %2173 = vmatmul.mubr.f32.gmra.mxu0 %v2872_v29  ;;  %2230 = vmatprep.subr.mxu0 %v1724_v30 }
  0x63   : > { %2274 = vmatprep.subr.mxu1 %v1748_v31  ;;  %2216 = vmatprep.mubr.f32.mxu1 %v2782_v3 }
  0x64   : > { %2231 = vmatpush3.msra.mxu0 %v1724_v30  ;;  %2275 = vmatpush3.msra.mxu1 %v1748_v31  ;;  %v1791_v30 = vld [vmem:[%s3216_s1 + $0x3b0] sm:$0xff]  ;;  %v1766_v31 = vld [vmem:[%s3216_s1 + $0x328] sm:$0xff] }
  0x65   : > { %2232 = vmatprep.subr.mxu0 %v1723_v32  ;;  %2217 = vmatmul.mubr.f32.gmra.mxu1 %v2798_v7 }
  0x66   : > { %2276 = vmatprep.subr.mxu1 %v1747_v33  ;;  %2175 = vmatprep.mubr.f32.mxu0 %v2891_v35 }
  0x67   : > { %2233 = vmatpush3.msra.mxu0 %v1723_v32  ;;  %2277 = vmatpush3.msra.mxu1 %v1747_v33  ;;  %v1790_v32 = vld [vmem:[%s3216_s1 + $0x3a8] sm:$0xff]  ;;  %v1765_v33 = vld [vmem:[%s3216_s1 + $0x320] sm:$0xff] }
  0x68   : > { %2176 = vmatmul.mubr.f32.gmra.mxu0 %v2894_v36  ;;  %2234 = vmatprep.subr.mxu0 %v1722_v37 }
  0x69   : > { %2278 = vmatprep.subr.mxu1 %v1746_v38  ;;  %2219 = vmatprep.mubr.f32.mxu1 %v2810_v11 }
  0x6a   : > { %2235 = vmatpush3.msra.mxu0 %v1722_v37  ;;  %2279 = vmatpush3.msra.mxu1 %v1746_v38  ;;  %v1789_v37 = vld [vmem:[%s3216_s1 + $0x3a0] sm:$0xff]  ;;  %v1764_v38 = vld [vmem:[%s3216_s1 + $0x318] sm:$0xff] }
  0x6b   : > { %2236 = vmatprep.subr.mxu0 %v1721_v39  ;;  %2220 = vmatmul.mubr.f32.gmra.mxu1 %v2909_v40 }
  0x6c   : > { %2280 = vmatprep.subr.mxu1 %v1745_v41  ;;  %2237 = vmatpush3.msra.mxu0 %v1721_v39  ;;  %v1788_v39 = vld [vmem:[%s3216_s1 + $0x398] sm:$0xff] }
  0x6d   : > { %2281 = vmatpush3.msra.mxu1 %v1745_v41  ;;  %2238 = vmatprep.subr.mxu0 %v1720_v42  ;;  %v1763_v41 = vld [vmem:[%s3216_s1 + $0x310] sm:$0xff] }
  0x6e   : > { %2282 = vmatprep.subr.mxu1 %v1744_v43  ;;  %2239 = vmatpush3.msra.mxu0 %v1720_v42  ;;  %v1787_v42 = vld [vmem:[%s3216_s1 + $0x390] sm:$0xff] }
  0x6f   : > { %2283 = vmatpush3.msra.mxu1 %v1744_v43  ;;  %2240 = vmatprep.subr.mxu0 %v1719_v44  ;;  %v1762_v43 = vld [vmem:[%s3216_s1 + $0x308] sm:$0xff] }
  0x70   : > { %2284 = vmatprep.subr.mxu1 %v1743_v45  ;;  %2241 = vmatpush3.msra.mxu0 %v1719_v44  ;;  %v1786_v44 = vld [vmem:[%s3216_s1 + $0x388] sm:$0xff] }
  0x71   : > { %2285 = vmatpush3.msra.mxu1 %v1743_v45  ;;  %2242 = vmatprep.subr.mxu0 %v1718_v46  ;;  %v1761_v45 = vld [vmem:[%s3216_s1 + $0x300] sm:$0xff] }
  0x72   : > { %2286 = vmatprep.subr.mxu1 %v1742_v47  ;;  %2243 = vmatpush3.msra.mxu0 %v1718_v46  ;;  %v1785_v46 = vld [vmem:[%s3216_s1 + $0x380] sm:$0xff] }
  0x73   : > { %2287 = vmatpush3.msra.mxu1 %v1742_v47  ;;  %2244 = vmatprep.subr.mxu0 %v1717_v48  ;;  %v1824_v47 = vld [vmem:[%s3216_s1 + $0x478] sm:$0xff] }
  0x74   : > { %2288 = vmatprep.subr.mxu1 %v1741_v49  ;;  %2245 = vmatpush3.msra.mxu0 %v1717_v48  ;;  %v1823_v48 = vld [vmem:[%s3216_s1 + $0x470] sm:$0xff] }
  0x75   : > { %2289 = vmatpush3.msra.mxu1 %v1741_v49  ;;  %2246 = vmatprep.subr.mxu0 %v1716_v50  ;;  %v1811_v49 = vld [vmem:[%s3216_s1 + $0x410] sm:$0xff] }
  0x76   : > { %2290 = vmatprep.subr.mxu1 %v1740_v51  ;;  %2247 = vmatpush3.msra.mxu0 %v1716_v50  ;;  %v1810_v50 = vld [vmem:[%s3216_s1 + $0x408] sm:$0xff] }
  0x77   : > { %2291 = vmatpush3.msra.mxu1 %v1740_v51  ;;  %2248 = vmatprep.subr.mxu0 %v1715_v52  ;;  %v1809_v51 = vld [vmem:[%s3216_s1 + $0x400] sm:$0xff] }
  0x78   : > { %2292 = vmatprep.subr.mxu1 %v1739_v53  ;;  %2249 = vmatpush3.msra.mxu0 %v1715_v52  ;;  %v1808_v52 = vld [vmem:[%s2666_s12 + $0x92] sm:$0xff] }
  0x79   : > { %2293 = vmatpush3.msra.mxu1 %v1739_v53  ;;  %2250 = vmatprep.subr.mxu0 %v1714_v56 }
  0x7a   : > { %2294 = vmatprep.subr.mxu1 %v1738_v57  ;;  %2251 = vmatpush3.msra.mxu0 %v1714_v56 }
  0x7b   : > { %2295 = vmatpush3.msra.mxu1 %v1738_v57  ;;  %2252 = vmatprep.subr.mxu0 %v1713_v60 }
  0x7c   : > { %2296 = vmatprep.subr.mxu1 %v1737_v61  ;;  %2253 = vmatpush3.msra.mxu0 %v1713_v60 }
  0x7d   : > { %2254 = vmatprep.mubr.f32.mxu0 %v2677_v34  ;;  %2297 = vmatpush3.msra.mxu1 %v1737_v61  ;;  %v1799_v34 = vld [vmem:[%s3216_s1 + $0x3f0] sm:$0xff] }
  0x7e   : > { %2298 = vmatprep.mubr.f32.mxu1 %v2830_v17  ;;  %2255 = vmatmul.mubr.f32.vlgmr.msra.gmra.mxu0 %v2739_v54  ;;  %v3012_v17 = vld [vmem:[%s2666_s12 + $0x81] sm:$0xff] }
  0x7f   : > { %2299 = vmatmul.mubr.f32.vlgmr.msra.gmra.mxu1 %v2848_v22  ;;  %2310 = vmatprep.subr.mxu0 %v1776_v0 }
  0x80   : > { %2354 = vmatprep.subr.mxu1 %v1800_v1  ;;  %2311 = vmatpush3.msra.mxu0 %v1776_v0 }
  0x81   : > { %2355 = vmatpush3.msra.mxu1 %v1800_v1  ;;  %2312 = vmatprep.subr.mxu0 %v1775_v4 }
  0x82   : > { %2356 = vmatprep.subr.mxu1 %v1799_v34  ;;  %2257 = vmatprep.mubr.f32.mxu0 %v2751_v58 }
  0x83   : > { %2313 = vmatpush3.msra.mxu0 %v1775_v4  ;;  %2357 = vmatpush3.msra.mxu1 %v1799_v34 }
  0x84   : > { %2258 = vmatmul.mubr.f32.gmra.mxu0 %v2767_v62  ;;  %2314 = vmatprep.subr.mxu0 %v1774_v5 }
  0x85   : > { %2358 = vmatprep.subr.mxu1 %v1798_v8  ;;  %2301 = vmatprep.mubr.f32.mxu1 %v2851_v23 }
  0x86   : > { %2315 = vmatpush3.msra.mxu0 %v1774_v5  ;;  %2359 = vmatpush3.msra.mxu1 %v1798_v8 }
  0x87   : > { %2316 = vmatprep.subr.mxu0 %v1773_v9  ;;  %2302 = vmatmul.mubr.f32.gmra.mxu1 %v2869_v28 }
  0x88   : > { %2360 = vmatprep.subr.mxu1 %v1797_v12  ;;  %2260 = vmatprep.mubr.f32.mxu0 %v2779_v2 }
  0x89   : > { %2317 = vmatpush3.msra.mxu0 %v1773_v9  ;;  %2361 = vmatpush3.msra.mxu1 %v1797_v12 }
  0x8a   : > { %2261 = vmatmul.mubr.f32.gmra.mxu0 %v2795_v6  ;;  %2318 = vmatprep.subr.mxu0 %v1772_v13 }
  0x8b   : > { %2362 = vmatprep.subr.mxu1 %v1796_v14  ;;  %2304 = vmatprep.mubr.f32.mxu1 %v2872_v29 }
  0x8c   : > { %2319 = vmatpush3.msra.mxu0 %v1772_v13  ;;  %2363 = vmatpush3.msra.mxu1 %v1796_v14 }
  0x8d   : > { %2320 = vmatprep.subr.mxu0 %v1771_v15  ;;  %2305 = vmatmul.mubr.f32.gmra.mxu1 %v2891_v35 }
  0x8e   : > { %2364 = vmatprep.subr.mxu1 %v1795_v16  ;;  %2263 = vmatprep.mubr.f32.mxu0 %v2807_v10 }
  0x8f   : > { %2321 = vmatpush3.msra.mxu0 %v1771_v15  ;;  %2365 = vmatpush3.msra.mxu1 %v1795_v16 }
  0x90   : > { %2264 = vmatmul.mubr.f32.gmra.mxu0 %v3012_v17  ;;  %2322 = vmatprep.subr.mxu0 %v1770_v18 }
  0x91   : > { %2366 = vmatprep.subr.mxu1 %v1794_v19  ;;  %2307 = vmatprep.mubr.f32.mxu1 %v2894_v36 }
  0x92   : > { %2323 = vmatpush3.msra.mxu0 %v1770_v18  ;;  %2367 = vmatpush3.msra.mxu1 %v1794_v19 }
  0x93   : > { %2324 = vmatprep.subr.mxu0 %v1769_v20  ;;  %2308 = vmatmul.mubr.f32.gmra.mxu1 %v3027_v21 }
  0x94   : > { %2368 = vmatprep.subr.mxu1 %v1793_v24  ;;  %2325 = vmatpush3.msra.mxu0 %v1769_v20 }
  0x95   : > { %2369 = vmatpush3.msra.mxu1 %v1793_v24  ;;  %2326 = vmatprep.subr.mxu0 %v1768_v25 }
  0x96   : > { %2370 = vmatprep.subr.mxu1 %v1792_v26  ;;  %2327 = vmatpush3.msra.mxu0 %v1768_v25 }
  0x97   : > { %2371 = vmatpush3.msra.mxu1 %v1792_v26  ;;  %2328 = vmatprep.subr.mxu0 %v1767_v27 }
  0x98   : > { %2372 = vmatprep.subr.mxu1 %v1791_v30  ;;  %2329 = vmatpush3.msra.mxu0 %v1767_v27 }
  0x99   : > { %2373 = vmatpush3.msra.mxu1 %v1791_v30  ;;  %2330 = vmatprep.subr.mxu0 %v1766_v31 }
  0x9a   : > { %2374 = vmatprep.subr.mxu1 %v1790_v32  ;;  %2331 = vmatpush3.msra.mxu0 %v1766_v31 }
  0x9b   : > { %2375 = vmatpush3.msra.mxu1 %v1790_v32  ;;  %2332 = vmatprep.subr.mxu0 %v1765_v33 }
  0x9c   : > { %2376 = vmatprep.subr.mxu1 %v1789_v37  ;;  %2333 = vmatpush3.msra.mxu0 %v1765_v33 }
  0x9d   : > { %2377 = vmatpush3.msra.mxu1 %v1789_v37  ;;  %2334 = vmatprep.subr.mxu0 %v1764_v38 }
  0x9e   : > { %2378 = vmatprep.subr.mxu1 %v1788_v39  ;;  %2335 = vmatpush3.msra.mxu0 %v1764_v38 }
  0x9f   : > { %2379 = vmatpush3.msra.mxu1 %v1788_v39  ;;  %2336 = vmatprep.subr.mxu0 %v1763_v41 }
  0xa0   : > { %2380 = vmatprep.subr.mxu1 %v1787_v42  ;;  %2337 = vmatpush3.msra.mxu0 %v1763_v41 }
  0xa1   : > { %2381 = vmatpush3.msra.mxu1 %v1787_v42  ;;  %2338 = vmatprep.subr.mxu0 %v1762_v43 }
  0xa2   : > { %2382 = vmatprep.subr.mxu1 %v1786_v44  ;;  %2339 = vmatpush3.msra.mxu0 %v1762_v43 }
  0xa3   : > { %2383 = vmatpush3.msra.mxu1 %v1786_v44  ;;  %2340 = vmatprep.subr.mxu0 %v1761_v45 }
  0xa4   : > { %2384 = vmatprep.subr.mxu1 %v1785_v46  ;;  %2341 = vmatpush3.msra.mxu0 %v1761_v45 }
  0xa5   : > { %2342 = vmatprep.mubr.f32.mxu0 %v2742_v55  ;;  %2385 = vmatpush3.msra.mxu1 %v1785_v46  ;;  %v1822_v55 = vld [vmem:[%s3216_s1 + $0x468] sm:$0xff] }
  0xa6   : > { %2386 = vmatprep.mubr.f32.mxu1 %v2739_v54  ;;  %2343 = vmatmul.mubr.f32.vlgmr.msra.gmra.mxu0 %v2754_v59  ;;  %v1821_v54 = vld [vmem:[%s3216_s1 + $0x460] sm:$0xff]  ;;  %v1819_v59 = vld [vmem:[%s3216_s1 + $0x450] sm:$0xff] }
  0xa7   : > { %2387 = vmatmul.mubr.f32.vlgmr.msra.gmra.mxu1 %v2751_v58  ;;  %2398 = vmatprep.subr.mxu0 %v1824_v47  ;;  %v1820_v58 = vld [vmem:[%s3216_s1 + $0x458] sm:$0xff] }
  0xa8   : > { %2442 = vmatprep.subr.mxu1 %v1824_v47  ;;  %2399 = vmatpush3.msra.mxu0 %v1824_v47 }
  0xa9   : > { %2458 = vmatpush3.msra.mxu1 %v1824_v47  ;;  %2400 = vmatprep.subr.mxu0 %v1823_v48 }
  0xaa   : > { %2443 = vmatprep.subr.mxu1 %v1823_v48  ;;  %2345 = vmatprep.mubr.f32.mxu0 %v2770_v63  ;;  %v1818_v63 = vld [vmem:[%s3216_s1 + $0x448] sm:$0xff] }
  0xab   : > { %2401 = vmatpush3.msra.mxu0 %v1823_v48  ;;  %2459 = vmatpush3.msra.mxu1 %v1823_v48 }
  0xac   : > { %2346 = vmatmul.mubr.f32.gmra.mxu0 %v2782_v3  ;;  %2402 = vmatprep.subr.mxu0 %v1822_v55  ;;  %v1784_v3 = vld [vmem:[%s2666_s12 + $0x91] sm:$0xff] }
  0xad   : > { %2444 = vmatprep.subr.mxu1 %v1822_v55  ;;  %2389 = vmatprep.mubr.f32.mxu1 %v2767_v62  ;;  %v1760_v62 = vld [vmem:[%s2666_s12 + $0x90] sm:$0xff]  ;;  %s1828_s12 = sshll.u32 %s3235_s15, 6 }
  0xae   : > { %2403 = vmatpush3.msra.mxu0 %v1822_v55  ;;  %2460 = vmatpush3.msra.mxu1 %v1822_v55  ;;  %s3175_s11 = scalar_lea.vmem %s3218_s3, %s1828_s12  ;;  %s3190_s21 = scalar_lea.vmem %s3219_s4, %s1828_s12 }
  0xaf   : > { %2404 = vmatprep.subr.mxu0 %v1821_v54  ;;  %2390 = vmatmul.mubr.f32.gmra.mxu1 %v2779_v2  ;;  %v1817_v2 = vld [vmem:[%s3216_s1 + $0x440] sm:$0xff] }
  0xb0   : > { %2445 = vmatprep.subr.mxu1 %v1821_v54  ;;  %2348 = vmatprep.mubr.f32.mxu0 %v2798_v7  ;;  %v1815_v7 = vld [vmem:[%s3216_s1 + $0x430] sm:$0xff] }
  0xb1   : > { %2405 = vmatpush3.msra.mxu0 %v1821_v54  ;;  %2461 = vmatpush3.msra.mxu1 %v1821_v54 }
  0xb2   : > { %2349 = vmatmul.mubr.f32.gmra.mxu0 %v2810_v11  ;;  %2406 = vmatprep.subr.mxu0 %v1820_v58  ;;  %v1813_v11 = vld [vmem:[%s3216_s1 + $0x420] sm:$0xff] }
  0xb3   : > { %2446 = vmatprep.subr.mxu1 %v1820_v58  ;;  %2392 = vmatprep.mubr.f32.mxu1 %v2795_v6  ;;  %v1816_v6 = vld [vmem:[%s3216_s1 + $0x438] sm:$0xff] }
  0xb4   : > { %2407 = vmatpush3.msra.mxu0 %v1820_v58  ;;  %2462 = vmatpush3.msra.mxu1 %v1820_v58 }
  0xb5   : > { %2408 = vmatprep.subr.mxu0 %v1819_v59  ;;  %2393 = vmatmul.mubr.f32.gmra.mxu1 %v2807_v10  ;;  %v1814_v10 = vld [vmem:[%s3216_s1 + $0x428] sm:$0xff] }
  0xb6   : > { %2447 = vmatprep.subr.mxu1 %v1819_v59  ;;  %2351 = vmatprep.mubr.f32.mxu0 %v2909_v40  ;;  %v1812_v40 = vld [vmem:[%s3216_s1 + $0x418] sm:$0xff] }
  0xb7   : > { %2409 = vmatpush3.msra.mxu0 %v1819_v59  ;;  %2463 = vmatpush3.msra.mxu1 %v1819_v59 }
  0xb8   : > { %2352 = vmatmul.mubr.f32.gmra.mxu0 %v1760_v62  ;;  %2410 = vmatprep.subr.mxu0 %v1818_v63 }
  0xb9   : > { %2448 = vmatprep.subr.mxu1 %v1818_v63  ;;  %2395 = vmatprep.mubr.f32.mxu1 %v3012_v17 }
  0xba   : > { %2411 = vmatpush3.msra.mxu0 %v1818_v63  ;;  %2464 = vmatpush3.msra.mxu1 %v1818_v63 }
  0xbb   : > { %2412 = vmatprep.subr.mxu0 %v1817_v2  ;;  %2396 = vmatmul.mubr.f32.gmra.mxu1 %v1784_v3 }
  0xbc   : > { %2449 = vmatprep.subr.mxu1 %v1817_v2  ;;  %2413 = vmatpush3.msra.mxu0 %v1817_v2 }
  0xbd   : > { %2465 = vmatpush3.msra.mxu1 %v1817_v2  ;;  %2414 = vmatprep.subr.mxu0 %v1816_v6 }
  0xbe   : > { %2450 = vmatprep.subr.mxu1 %v1816_v6  ;;  %2415 = vmatpush3.msra.mxu0 %v1816_v6 }
  0xbf   : > { %2466 = vmatpush3.msra.mxu1 %v1816_v6  ;;  %2416 = vmatprep.subr.mxu0 %v1815_v7 }
  0xc0   : > { %2451 = vmatprep.subr.mxu1 %v1815_v7  ;;  %2417 = vmatpush3.msra.mxu0 %v1815_v7 }
  0xc1   : > { %2467 = vmatpush3.msra.mxu1 %v1815_v7  ;;  %2418 = vmatprep.subr.mxu0 %v1814_v10 }
  0xc2   : > { %2452 = vmatprep.subr.mxu1 %v1814_v10  ;;  %2419 = vmatpush3.msra.mxu0 %v1814_v10 }
  0xc3   : > { %2468 = vmatpush3.msra.mxu1 %v1814_v10  ;;  %2420 = vmatprep.subr.mxu0 %v1813_v11 }
  0xc4   : > { %2453 = vmatprep.subr.mxu1 %v1813_v11  ;;  %2421 = vmatpush3.msra.mxu0 %v1813_v11 }
  0xc5   : > { %2469 = vmatpush3.msra.mxu1 %v1813_v11  ;;  %2422 = vmatprep.subr.mxu0 %v1812_v40 }
  0xc6   : > { %2454 = vmatprep.subr.mxu1 %v1812_v40  ;;  %2423 = vmatpush3.msra.mxu0 %v1812_v40 }
  0xc7   : > { %2470 = vmatpush3.msra.mxu1 %v1812_v40  ;;  %2424 = vmatprep.subr.mxu0 %v1811_v49 }
  0xc8   : > { %2455 = vmatprep.subr.mxu1 %v1811_v49  ;;  %2425 = vmatpush3.msra.mxu0 %v1811_v49 }
  0xc9   : > { %2471 = vmatpush3.msra.mxu1 %v1811_v49  ;;  %2426 = vmatprep.subr.mxu0 %v1810_v50 }
  0xca   : > { %2456 = vmatprep.subr.mxu1 %v1810_v50  ;;  %2427 = vmatpush3.msra.mxu0 %v1810_v50 }
  0xcb   : > { %2472 = vmatpush3.msra.mxu1 %v1810_v50  ;;  %2428 = vmatprep.subr.mxu0 %v1809_v51 }
  0xcc   : > { %2457 = vmatprep.subr.mxu1 %v1809_v51  ;;  %2429 = vmatpush3.msra.mxu0 %v1809_v51 }
  0xcd   : > { %2473 = vmatpush3.msra.mxu1 %v1809_v51  ;;  %2430 = vmatprep.mubr.f32.mxu0 %v2848_v22 }
  0xce   : > { %2436 = vmatprep.mubr.f32.mxu1 %v2891_v35  ;;  %2431 = vmatmul.mubr.f32.vlgmr.msra.gmra.mxu0 %v2851_v23 }
  0xcf   : > { %2437 = vmatmul.mubr.f32.vlgmr.msra.gmra.mxu1 %v2894_v36  ;;  %2433 = vmatprep.mubr.f32.mxu0 %v2869_v28 }
  0xd0   : > { %2439 = vmatprep.mubr.f32.mxu1 %v3027_v21 }
  0xd2   : > { %2434 = vmatmul.mubr.f32.gmra.mxu0 %v2872_v29 }
  0xd3   : > { %2440 = vmatmul.mubr.f32.gmra.mxu1 %v1808_v52 }
  0xee   : > { %v2080_v53 = vpop.f32.mrf.mxu0 }
  0xef   : > { %v2124_v60 = vpop.f32.mrf.mxu1 }
  0xf0   : > { %v375_v56 = vpop.f32.mrf.mxu0  ;;  %v486_v3 = vadd.f32 %v2124_v60, %v2080_v53 }
  0xf1   : > { %v480_v61 = vpop.f32.mrf.mxu1 }
  0xf2   : > { %v481_v11 = vadd.f32 %v480_v61, %v375_v56 }
 0x103   : > { %v3154_v57 = vpop.f32.mrf.mxu0 }
 0x104   : > { %v2127_v35 = vpop.f32.mrf.mxu1 }
 0x105   : > { %v385_v22 = vpop.f32.mrf.mxu0 }
 0x106   : > { %v490_v23 = vpop.f32.mrf.mxu1 }
 0x109   : > { %v2086_v0 = vpop.f32.mrf.mxu0 }
 0x10a   : > { %v2130_v36 = vpop.f32.mrf.mxu1 }
 0x10b   : > { %v395_v1 = vpop.f32.mrf.mxu0  ;;  %v506_v6 = vadd.f32 %v2130_v36, %v2086_v0 }
 0x10c   : > { %v500_v28 = vpop.f32.mrf.mxu1 }
 0x10d   : > { %v501_v40 = vadd.f32 %v500_v28, %v395_v1 }
 0x10f   : > { %v2089_v4 = vpop.f32.mrf.mxu0 }
 0x110   : > { %v2133_v5 = vpop.f32.mrf.mxu1 }
 0x111   : > { %v405_v34 = vpop.f32.mrf.mxu0 }
 0x112   : > { %v510_v9 = vpop.f32.mrf.mxu1 }
 0x113   : > { %v511_v53 = vadd.f32 %v510_v9, %v405_v34 }
 0x116   : > { %v2168_v8 = vpop.f32.mrf.mxu0 }
 0x117   : > { %v2212_v12 = vpop.f32.mrf.mxu1  ;;  %v650_v49 = vadd.f32 %v2168_v8, %v486_v3 }
 0x118   : > { %v610_v29 = vpop.f32.mrf.mxu0 }
 0x119   : > { %v751_v14 = vpop.f32.mrf.mxu1  ;;  %v649_v51 = vadd.f32 %v610_v29, %v481_v11  ;;  %v791_v0 = vadd.f32 %v2212_v12, %v650_v49 }
 0x11b   : > { %v790_v28 = vadd.f32 %v751_v14, %v649_v51 }
 0x11c   : > { %v2171_v13 = vpop.f32.mrf.mxu0 }
 0x11e   : > { %v620_v15 = vpop.f32.mrf.mxu0 }
 0x11f   : > { %v2215_v16 = vpop.f32.mrf.mxu1 }
 0x121   : > { %v761_v18 = vpop.f32.mrf.mxu1 }
 0x122   : > { %v2174_v17 = vpop.f32.mrf.mxu0 }
 0x123   : > { %v654_v50 = vadd.f32 %v2174_v17, %v506_v6 }
 0x124   : > { %v630_v19 = vpop.f32.mrf.mxu0 }
 0x125   : > { %v2218_v20 = vpop.f32.mrf.mxu1  ;;  %v653_v52 = vadd.f32 %v630_v19, %v501_v40 }
 0x126   : > { %v795_v36 = vadd.f32 %v2218_v20, %v654_v50 }
 0x127   : > { %v771_v24 = vpop.f32.mrf.mxu1 }
 0x128   : > { %v2177_v21 = vpop.f32.mrf.mxu0  ;;  %v794_v3 = vadd.f32 %v771_v24, %v653_v52 }
 0x12a   : > { %v640_v25 = vpop.f32.mrf.mxu0 }
 0x12b   : > { %v2221_v26 = vpop.f32.mrf.mxu1  ;;  %v655_v1 = vadd.f32 %v640_v25, %v511_v53 }
 0x12d   : > { %v781_v30 = vpop.f32.mrf.mxu1 }
 0x13e   : > { %v2256_v27 = vpop.f32.mrf.mxu0 }
 0x13f   : > { %v2300_v32 = vpop.f32.mrf.mxu1  ;;  %v929_v8 = vadd.f32 %v2256_v27, %v791_v0 }
 0x140   : > { %v889_v31 = vpop.f32.mrf.mxu0 }
 0x141   : > { %v1027_v37 = vpop.f32.mrf.mxu1  ;;  %v928_v19 = vadd.f32 %v889_v31, %v790_v28 }
 0x144   : > { %v2259_v33 = vpop.f32.mrf.mxu0 }
 0x146   : > { %v899_v39 = vpop.f32.mrf.mxu0 }
 0x147   : > { %v3156_v38 = vpop.f32.mrf.mxu1 }
 0x148   : > { %3220 = vst [vmem:[#allocation2_spill] sm:$0xff] %v3156_v38  ;;  %v496_v38 = vadd.f32 %v2127_v35, %v3154_v57  ;;  %v796_v35 = vadd.f32 %v781_v30, %v655_v1  ;;  %v1510_v1 = vld [vmem:[%s3175_s11 + $0x20] sm:$0xff] }
 0x149   : > { %v3158_v41 = vpop.f32.mrf.mxu1 }
 0x14a   : > { %3221 = vst [vmem:[#allocation3_spill] sm:$0xff] %v3158_v41  ;;  %v2262_v42 = vpop.f32.mrf.mxu0 }
 0x14b   : > { %v933_v6 = vadd.f32 %v2262_v42, %v795_v36 }
 0x14c   : > { %v909_v44 = vpop.f32.mrf.mxu0 }
 0x14d   : > { %v2306_v43 = vpop.f32.mrf.mxu1  ;;  %v932_v11 = vadd.f32 %v909_v44, %v794_v3 }
 0x14f   : > { %v1047_v45 = vpop.f32.mrf.mxu1 }
 0x150   : > { %v2265_v46 = vpop.f32.mrf.mxu0  ;;  %v1070_v20 = vadd.f32 %v1047_v45, %v932_v11 }
 0x151   : > { %v3226_v30 = vld [vmem:[#allocation3_spill] sm:$0xff] }
 0x152   : > { %v919_v48 = vpop.f32.mrf.mxu0 }
 0x153   : > { %v2309_v47 = vpop.f32.mrf.mxu1 }
 0x155   : > { %v1057_v54 = vpop.f32.mrf.mxu1 }
 0x166   : > { %v2344_v55 = vpop.f32.mrf.mxu0 }
 0x167   : > { %v2388_v58 = vpop.f32.mrf.mxu1 }
 0x168   : > { %v1168_v59 = vpop.f32.mrf.mxu0 }
 0x169   : > { %v3160_v62 = vpop.f32.mrf.mxu1 }
 0x16a   : > { %3222 = vst [vmem:[#allocation4_spill] sm:$0xff] %v3160_v62  ;;  %v491_v62 = vadd.f32 %v490_v23, %v385_v22  ;;  %v1067_v23 = vadd.f32 %v2300_v32, %v929_v8 }
 0x16c   : > { %v2347_v63 = vpop.f32.mrf.mxu0  ;;  %v651_v56 = vadd.f32 %v620_v15, %v491_v62  ;;  %v1066_v15 = vadd.f32 %v1027_v37, %v928_v19  ;;  %v1507_v62 = vld [vmem:[%s3175_s11 + $0x8] sm:$0xff] }
 0x16e   : > { %v1178_v7 = vpop.f32.mrf.mxu0  ;;  %v792_v57 = vadd.f32 %v761_v18, %v651_v56  ;;  %v1207_v25 = vadd.f32 %v1168_v59, %v1066_v15  ;;  %v3225_v18 = vld [vmem:[#allocation2_spill] sm:$0xff] }
 0x16f   : > { %v3162_v2 = vpop.f32.mrf.mxu1 }
 0x170   : > { %3223 = vst [vmem:[#allocation5_spill] sm:$0xff] %v3162_v2  ;;  %v516_v2 = vadd.f32 %v2133_v5, %v2089_v4  ;;  %v1071_v4 = vadd.f32 %v2306_v43, %v933_v6  ;;  %v930_v9 = vadd.f32 %v899_v39, %v792_v57 }
 0x171   : > { %v3164_v10 = vpop.f32.mrf.mxu1 }
 0x172   : > { %3224 = vst [vmem:[#allocation6_spill] sm:$0xff] %v3164_v10  ;;  %v2350_v41 = vpop.f32.mrf.mxu0  ;;  %v652_v10 = vadd.f32 %v2171_v13, %v496_v38  ;;  %v656_v61 = vadd.f32 %v2177_v21, %v516_v2  ;;  %v934_v13 = vadd.f32 %v919_v48, %v796_v35  ;;  %v1208_v21 = vadd.f32 %v2344_v55, %v1067_v23  ;;  %v3227_v48 = vld [vmem:[#allocation4_spill] sm:$0xff]  ;;  %v1511_v2 = vld [vmem:[%s3175_s11 + $0x28] sm:$0xff]  ;;  %v1509_v23 = vld [vmem:[%s3175_s11 + $0x18] sm:$0xff] }
 0x173   : > { %v1212_v24 = vadd.f32 %v2350_v41, %v1071_v4  ;;  %v1068_v31 = vadd.f32 %v3226_v30, %v930_v9  ;;  %v1345_v55 = vadd.f32 %v3227_v48, %v1207_v25  ;;  %v1513_v4 = vld [vmem:[%s3175_s11 + $0x38] sm:$0xff] }
 0x174   : > { %v1188_v17 = vpop.f32.mrf.mxu0  ;;  %v793_v40 = vadd.f32 %v2215_v16, %v652_v10  ;;  %v797_v22 = vadd.f32 %v2221_v26, %v656_v61  ;;  %v1072_v38 = vadd.f32 %v1057_v54, %v934_v13  ;;  %v1346_v39 = vadd.f32 %v2388_v58, %v1208_v21  ;;  %v1506_v61 = vld [vmem:[%s3175_s11] sm:$0xff]  ;;  %v1508_v13 = vld [vmem:[%s3175_s11 + $0x10] sm:$0xff] }
 0x175   : > { %v2394_v60 = vpop.f32.mrf.mxu1  ;;  %v1211_v16 = vadd.f32 %v1188_v17, %v1070_v20  ;;  %v1209_v41 = vadd.f32 %v1178_v7, %v1068_v31 }
 0x176   : > { %v931_v5 = vadd.f32 %v2259_v33, %v793_v40  ;;  %v935_v12 = vadd.f32 %v2265_v46, %v797_v22  ;;  %v1350_v42 = vadd.f32 %v2394_v60, %v1212_v24  ;;  %v1825_v46 = vld [vmem:[%s3217_s2] ss:$0 sm:$0xff] }
 0x177   : > { %v1326_v29 = vpop.f32.mrf.mxu1  ;;  %v3228_v52 = vld [vmem:[#allocation5_spill] sm:$0xff] }
 0x178   : > { %v2353_v34 = vpop.f32.mrf.mxu0  ;;  %v1069_v26 = vadd.f32 %v3225_v18, %v931_v5  ;;  %v1073_v32 = vadd.f32 %v2309_v47, %v935_v12  ;;  %v1349_v54 = vadd.f32 %v1326_v29, %v1211_v16 }
 0x179   : > { %v3229_v60 = vld [vmem:[#allocation6_spill] sm:$0xff] }
 0x17a   : > { %v1198_v27 = vpop.f32.mrf.mxu0  ;;  %v1210_v37 = vadd.f32 %v2347_v63, %v1069_v26  ;;  %v1214_v43 = vadd.f32 %v2353_v34, %v1073_v32  ;;  %v1347_v0 = vadd.f32 %v3229_v60, %v1209_v41 }
 0x17b   : > { %v2397_v14 = vpop.f32.mrf.mxu1  ;;  %v1213_v44 = vadd.f32 %v1198_v27, %v1072_v38 }
 0x17c   : > { %v1348_v53 = vadd.f32 %v3228_v52, %v1210_v37  ;;  %v1352_v36 = vadd.f32 %v2397_v14, %v1214_v43  ;;  %v1512_v14 = vld [vmem:[%s3175_s11 + $0x30] sm:$0xff] }
 0x17d   : > { %v1336_v33 = vpop.f32.mrf.mxu1 }
 0x17e   : > { %v1351_v56 = vadd.f32 %v1336_v33, %v1213_v44 }
 0x18e   : > { %v2432_v45 = vpop.f32.mrf.mxu0 }
 0x18f   : > { %v2438_v47 = vpop.f32.mrf.mxu1  ;;  %v1484_v58 = vadd.f32 %v2432_v45, %v1346_v39 }
 0x190   : > { %v1488_v59 = vadd.f32 %v2438_v47, %v1350_v42  ;;  %v1444_v63 = vpop.f32.mrf.mxu0 }
 0x191   : > { %v1464_v7 = vpop.f32.mrf.mxu1  ;;  %v1499_v10 = vadd.f32 %v1825_v46, %v1484_v58  ;;  %v1483_v50 = vadd.f32 %v1444_v63, %v1345_v55 }
 0x192   : > { %v1503_v49 = vadd.f32 %v1825_v46, %v1488_v59  ;;  %v1487_v51 = vadd.f32 %v1464_v7, %v1349_v54  ;;  %v2435_v28 = vpop.f32.mrf.mxu0 }
 0x193   : > { %v2441_v3 = vpop.f32.mrf.mxu1  ;;  %v1515_v8 = vadd.f32 %v1507_v62, %v1499_v10  ;;  %v1498_v17 = vadd.f32 %v1825_v46, %v1483_v50  ;;  %v1486_v19 = vadd.f32 %v2435_v28, %v1348_v53 }
 0x194   : > { %v1519_v6 = vadd.f32 %v1511_v2, %v1503_v49  ;;  %v1502_v29 = vadd.f32 %v1825_v46, %v1487_v51  ;;  %v1490_v11 = vadd.f32 %v2441_v3, %v1352_v36  ;;  %v1454_v40 = vpop.f32.mrf.mxu0 }
 0x195   : > { %v1474_v57 = vpop.f32.mrf.mxu1  ;;  %1523 = vst [vmem:[%s3190_s21 + $0x8] sm:$0xff] %v1515_v8  ;;  %v1514_v22 = vadd.f32 %v1506_v61, %v1498_v17  ;;  %v1485_v34 = vadd.f32 %v1454_v40, %v1347_v0  ;;  %v1501_v9 = vadd.f32 %v1825_v46, %v1486_v19 }
 0x196   : > { %1527 = vst [vmem:[%s3190_s21 + $0x28] sm:$0xff] %v1519_v6  ;;  %v1518_v35 = vadd.f32 %v1510_v1, %v1502_v29  ;;  %v1489_v5 = vadd.f32 %v1474_v57, %v1351_v56  ;;  %v1505_v12 = vadd.f32 %v1825_v46, %v1490_v11 }
 0x197   : > { %1522 = vst [vmem:[%s3190_s21] sm:$0xff] %v1514_v22  ;;  %v1500_v15 = vadd.f32 %v1825_v46, %v1485_v34  ;;  %v1517_v21 = vadd.f32 %v1509_v23, %v1501_v9 }
 0x198   : > { %1526 = vst [vmem:[%s3190_s21 + $0x20] sm:$0xff] %v1518_v35  ;;  %v1504_v20 = vadd.f32 %v1825_v46, %v1489_v5  ;;  %v1521_v24 = vadd.f32 %v1513_v4, %v1505_v12 }
 0x199   : > { %v1516_v25 = vadd.f32 %v1508_v13, %v1500_v15  ;;  %1525 = vst [vmem:[%s3190_s21 + $0x18] sm:$0xff] %v1517_v21 }
 0x19a   : > { %v1520_v16 = vadd.f32 %v1512_v14, %v1504_v20  ;;  %1529 = vst [vmem:[%s3190_s21 + $0x38] sm:$0xff] %v1521_v24 }
 0x19b   : > { %1524 = vst [vmem:[%s3190_s21 + $0x10] sm:$0xff] %v1516_v25 }
 0x19c   : > { %1528 = vst [vmem:[%s3190_s21 + $0x30] sm:$0xff] %v1520_v16 }
 0x19d PF: > { %s14_s17 = sadd.s32 1, %s2521_s17   ;;  %s3230_s15 = smov %s2517_s16 }
 0x19e   : > { %p11_p5 = scmp.ge.s32.totalorder %s14_s17, 4   ;;  %s3231_s16 = smov %s3233_s18 }
 0x1a0   :  { %13 = sbr.rel (!%p11_p5) target bundleno = 2 (0x2), region = 80 }

</bundles_post_ra>
